<compile_context>
chip_gen: v7x
topology: tpu7x:2x2x1
jax: 0.10.0
libtpu: 0.0.40
codegen_flags: <defaults>
</compile_context>

<pallas_src>
import numpy as np
import jax
import jax.numpy as jnp
from jax.experimental import pallas as pl
from jax.experimental.pallas import tpu as pltpu

# ----------------------------- small config ---------------------------------
IMAGE_SIZE = 16
PATCH = 8
N_PATCHES = (IMAGE_SIZE // PATCH) ** 2          # 4
V_SEQ = N_PATCHES + 1                           # 4 patches + CLS = 5
VDIM = 32                                       # vision hidden size
V_HEADS = 4
V_HEAD_DIM = VDIM // V_HEADS                    # 8
V_FFN = 64
V_LAYERS = 2   # vision_feature_layer=-2, num_hidden_layers=3 -> build 2 layers

TDIM = 64                                       # text hidden size
T_HEADS = 4
T_HEAD_DIM = TDIM // T_HEADS                    # 16
T_FFN = 128
T_LAYERS = 2
VOCAB = 128
IMAGE_TOKEN_INDEX = 32
LN_EPS = 1e-5
RMS_EPS = 1e-6
ROPE_THETA = 10000.0

_NEG_INF = -1e30
_NT = (((1,), (1,)), ((), ()))   # dot_general dims for q @ k^T

# --- rope_pack plane-0 row layout (metadata packed into one f32 tensor) -----
MAX_T = 8                         # packing assumes seq_len <= MAX_T
_COS_ROW = 0                      # rows [0, T)      : cos tile   (T, TDIM)
_SIN_ROW = MAX_T                  # rows [8, 8+T)    : sin tile
_POSROW_ROW = 2 * MAX_T           # row  16, lanes :T: positions (row vector)
_IDSROW_ROW = 2 * MAX_T + 1       # row  17, lanes :T: input_ids (row vector)
_POSCOL_ROW = 24                  # rows [24,24+T), lane 0: positions (column)
_IDSCOL_ROW = 32                  # rows [32,32+T), lane 0: input_ids (column)


def _build_rot_mat_np():
    """Constant per-head rotate-half matrix R so that x @ R == rotate_half(x)."""
    r = np.zeros((TDIM, TDIM), np.float32)
    half = T_HEAD_DIM // 2
    for h in range(T_HEADS):
        o = h * T_HEAD_DIM
        for j in range(half):
            r[o + half + j, o + j] = -1.0     # first half of output = -x2
            r[o + j, o + half + j] = 1.0      # second half of output = x1
    return r


_ROT_MAT = _build_rot_mat_np()


# ------------------------- in-kernel helper math ------------------------------
def _ln(x, g, b, eps):
    mu = jnp.mean(x, axis=-1, keepdims=True)
    var = jnp.mean((x - mu) * (x - mu), axis=-1, keepdims=True)
    return (x - mu) * jax.lax.rsqrt(var + eps) * g + b


def _rms(x, g, eps):
    var = jnp.mean(x * x, axis=-1, keepdims=True)
    return x * jax.lax.rsqrt(var + eps) * g


def _bf16(x):
    return x.astype(jnp.bfloat16)


def _softmax_rows(s):
    m = jnp.max(s, axis=-1, keepdims=True)
    p = jnp.exp(s - m)
    return p * pl.reciprocal(jnp.sum(p, axis=-1, keepdims=True), approx=True)


# ----------------------- the single fused LLaVA kernel ------------------------
def _llava_kernel(patches_ref, patch_w, v_misc, v_ln, v_bias,
                  v_wqkv, v_wo, v_wfc1, v_wfc2,
                  proj_w1, proj_w2, proj_b,
                  embed_tokens, lm_norms, lm_wqkv, lm_wo, lm_wgu, lm_wdn,
                  rope, out_ref, seq_scr, vis_scr):
    batch = patches_ref.shape[0]
    t_len = out_ref.shape[0]
    n_img = vis_scr.shape[0]                       # batch * N_PATCHES

    # ========================= vision tower + projector ========================
    pos_emb = v_misc[0:V_SEQ, :]                   # (V_SEQ, VDIM)
    cls_emb = v_misc[V_SEQ:V_SEQ + 1, :]           # (1, VDIM)
    pre_g = v_misc[6:7, :]
    pre_b = v_misc[7:8, :]
    v_scale = V_HEAD_DIM ** -0.5

    # TODO(synk): for batch > 1 this static loop should become a 'parallel' grid
    # axis (one image per grid step / per TensorCore on v7x).
    for b in range(batch):
        pe = jnp.dot(_bf16(patches_ref[b]), patch_w[...],
                     preferred_element_type=jnp.float32)              # (NP, VDIM)
        # [CLS ; patch embeds] + positional embedding assembled by scratch stores
        # (no in-kernel concatenate materialization).
        seq_scr[0:1, :] = cls_emb + pos_emb[0:1, :]
        seq_scr[1:V_SEQ, :] = pe + pos_emb[1:V_SEQ, :]
        x = _ln(seq_scr[...], pre_g, pre_b, LN_EPS)                    # (S, VDIM)

        for l in range(V_LAYERS):                                      # static unroll
            # ---- self-attention (pre-LN, fused QKV, full attention, no mask) ----
            h = _ln(x, v_ln[l, 0], v_ln[l, 1], LN_EPS)
            qkv = jnp.dot(_bf16(h), v_wqkv[l],
                          preferred_element_type=jnp.float32) + v_bias[l, 0]
            heads = []
            for hh in range(V_HEADS):
                qo = hh * V_HEAD_DIM
                ko = VDIM + qo
                vo = 2 * VDIM + qo
                q = qkv[:, qo:qo + V_HEAD_DIM]
                k = qkv[:, ko:ko + V_HEAD_DIM]
                v = qkv[:, vo:vo + V_HEAD_DIM]
                s = jax.lax.dot_general(_bf16(q), _bf16(k), _NT,
                                        preferred_element_type=jnp.float32) * v_scale
                p = _softmax_rows(s)
                heads.append(jnp.dot(_bf16(p), _bf16(v),
                                     preferred_element_type=jnp.float32))
            # lane-concat head outputs -> ONE output-projection matmul per layer
            o_cat = jnp.concatenate(heads, axis=-1)                     # (S, VDIM)
            x = x + jnp.dot(_bf16(o_cat), v_wo[l],
                            preferred_element_type=jnp.float32) + v_bias[l, 1][:, :VDIM]

            # ---- MLP (quick_gelu) ----
            h = _ln(x, v_ln[l, 2], v_ln[l, 3], LN_EPS)
            h = jnp.dot(_bf16(h), v_wfc1[l],
                        preferred_element_type=jnp.float32) + v_bias[l, 2][:, :V_FFN]
            h = h * jax.nn.sigmoid(1.702 * h)                          # quick_gelu
            h = jnp.dot(_bf16(h), v_wfc2[l],
                        preferred_element_type=jnp.float32) + v_bias[l, 3][:, :VDIM]
            x = x + h

        # feature-select strategy 'default': drop CLS token
        feats = x[1:, :]                                               # (NP, VDIM)

        # LlavaMultiModalProjector: linear -> gelu -> linear
        # TODO(synk): HF 'gelu' is erf-exact; tanh approximation used here.
        h = jnp.dot(_bf16(feats), proj_w1[...],
                    preferred_element_type=jnp.float32) + proj_b[0]
        h = jax.nn.gelu(h, approximate=True)
        h = jnp.dot(_bf16(h), proj_w2[...],
                    preferred_element_type=jnp.float32) + proj_b[1]
        vis_scr[b * N_PATCHES:(b + 1) * N_PATCHES, :] = h              # (NP, TDIM)

    # ================== embedding lookup + multimodal merge ====================
    pos_col = rope[0, _POSROW_ROW:_POSROW_ROW + 1, 0:t_len]            # (1, T)
    ids_row = rope[0, _IDSROW_ROW:_IDSROW_ROW + 1, 0:t_len]            # (1, T)
    pos_row = rope[0, _POSCOL_ROW:_POSCOL_ROW + t_len, 0:1]            # (T, 1)
    ids_col = rope[0, _IDSCOL_ROW:_IDSCOL_ROW + t_len, 0:1]            # (T, 1)
    cos_t = rope[0, _COS_ROW:_COS_ROW + t_len, :]                      # (T, TDIM)
    sin_t = rope[0, _SIN_ROW:_SIN_ROW + t_len, :]                      # (T, TDIM)
    rot = rope[1]                                                      # (TDIM, TDIM)

    # token-embedding lookup as a one-hot f32 matmul: no XLA gather, the table
    # stays VMEM-resident, exact f32 embedding values preserved.
    ids_i = ids_col.astype(jnp.int32)
    vocab_iota = jax.lax.broadcasted_iota(jnp.int32, (t_len, VOCAB), 1)
    tok_onehot = (ids_i == vocab_iota).astype(jnp.float32)             # (T, VOCAB)
    x = jnp.dot(tok_onehot, embed_tokens[...],
                preferred_element_type=jnp.float32)                    # (T, TDIM)

    # merge_multimodal_embeddings: k-th image token <- k-th projected embedding.
    # TODO(synk): vLLM raises on image-token / embedding count mismatch; here
    # out-of-range image tokens simply receive a zero embedding.
    is_img = ids_i == IMAGE_TOKEN_INDEX                                # (T, 1) bool
    is_img_f = is_img.astype(jnp.float32)
    row_i = jax.lax.broadcasted_iota(jnp.int32, (t_len, t_len), 0)
    col_i = jax.lax.broadcasted_iota(jnp.int32, (t_len, t_len), 1)
    tri = (col_i <= row_i).astype(jnp.float32)                         # lower-tri ones
    img_row_f = (ids_row.astype(jnp.int32) == IMAGE_TOKEN_INDEX).astype(jnp.float32)
    img_idx = jnp.sum(tri * img_row_f, axis=-1, keepdims=True) - 1.0   # (T, 1)
    slot_iota = jax.lax.broadcasted_iota(jnp.int32, (t_len, n_img), 1)
    img_onehot = jnp.logical_and(is_img, img_idx.astype(jnp.int32) == slot_iota)
    img_emb = jnp.dot(img_onehot.astype(jnp.float32), vis_scr[...],
                      preferred_element_type=jnp.float32)              # (T, TDIM)
    x = x * (1.0 - is_img_f) + img_emb

    # ============================== LLaMA stack ================================
    causal = pos_row >= pos_col                                        # (T, T) bool
    t_scale = T_HEAD_DIM ** -0.5
    for l in range(T_LAYERS):                                          # static unroll
        # ---- attention: RMSNorm, fused QKV, RoPE, causal softmax ----
        h = _rms(x, lm_norms[2 * l], RMS_EPS)
        qkv = jnp.dot(_bf16(h), lm_wqkv[l],
                      preferred_element_type=jnp.float32)              # (T, 3*TDIM)
        q = qkv[:, 0:TDIM]
        k = qkv[:, TDIM:2 * TDIM]
        v = qkv[:, 2 * TDIM:3 * TDIM]
        # neox RoPE on the FULL Q/K blocks: rotate-half as one small constant
        # matmul (MXU) instead of per-head half-lane slices / VPU shuffles.
        q = q * cos_t + jnp.dot(q, rot, preferred_element_type=jnp.float32) * sin_t
        k = k * cos_t + jnp.dot(k, rot, preferred_element_type=jnp.float32) * sin_t
        heads = []
        for hh in range(T_HEADS):
            o = hh * T_HEAD_DIM
            q_h = q[:, o:o + T_HEAD_DIM]
            k_h = k[:, o:o + T_HEAD_DIM]
            v_h = v[:, o:o + T_HEAD_DIM]
            s = jax.lax.dot_general(_bf16(q_h), _bf16(k_h), _NT,
                                    preferred_element_type=jnp.float32) * t_scale
            s = jnp.where(causal, s, _NEG_INF)
            p = _softmax_rows(s)
            heads.append(jnp.dot(_bf16(p), _bf16(v_h),
                                 preferred_element_type=jnp.float32))
        o_cat = jnp.concatenate(heads, axis=-1)                        # (T, TDIM)
        x = x + jnp.dot(_bf16(o_cat), lm_wo[l],
                        preferred_element_type=jnp.float32)

        # ---- SwiGLU MLP, fused gate|up matmul (both slices 128-lane aligned) ----
        h = _rms(x, lm_norms[2 * l + 1], RMS_EPS)
        gu = jnp.dot(_bf16(h), lm_wgu[l],
                     preferred_element_type=jnp.float32)               # (T, 2*FFN)
        g = gu[:, :T_FFN]
        u = gu[:, T_FFN:]
        x = x + jnp.dot(_bf16(g * jax.nn.sigmoid(g) * u), lm_wdn[l],
                        preferred_element_type=jnp.float32)

    out_ref[...] = _rms(x, lm_norms[2 * T_LAYERS], RMS_EPS)


# ----------------------------- full Llava forward -----------------------------
def llava_forward(params, input_ids, positions, pixel_values):
    # Patch extraction for the stride==kernel Conv2d patch embedding
    # (layout plumbing; flattening order (C, ph, pw) matches PyTorch Conv2d).
    batch, c, hh, ww = pixel_values.shape
    p = PATCH
    n_p = (hh // p) * (ww // p)
    patches = pixel_values.reshape(batch, c, hh // p, p, ww // p, p)
    patches = patches.transpose(0, 2, 4, 1, 3, 5).reshape(batch, n_p, c * p * p)

    t_len = input_ids.shape[0]
    assert t_len <= MAX_T, "metadata packing assumes seq_len <= MAX_T"
    assert _IDSCOL_ROW + MAX_T <= TDIM and t_len <= TDIM

    # RoPE cos/sin tiled head-wise to full TDIM width + positions / input_ids in
    # both orientations + the constant rotate-half matrix, packed into ONE f32
    # tensor -> a single small DMA instead of six tiny inputs.
    half = T_HEAD_DIM // 2
    inv_freq = 1.0 / (ROPE_THETA ** (jnp.arange(half, dtype=jnp.float32) / half))
    ang = positions.astype(jnp.float32)[:, None] * inv_freq[None, :]
    cos = jnp.cos(ang)
    sin = jnp.sin(ang)
    cos_t = jnp.tile(jnp.concatenate([cos, cos], axis=-1), (1, T_HEADS))  # (T, TDIM)
    sin_t = jnp.tile(jnp.concatenate([sin, sin], axis=-1), (1, T_HEADS))

    pos_f = positions.astype(jnp.float32)
    ids_f = input_ids.astype(jnp.float32)
    plane0 = jnp.zeros((TDIM, TDIM), jnp.float32)
    plane0 = plane0.at[_COS_ROW:_COS_ROW + t_len, :].set(cos_t)
    plane0 = plane0.at[_SIN_ROW:_SIN_ROW + t_len, :].set(sin_t)
    plane0 = plane0.at[_POSROW_ROW, :t_len].set(pos_f)
    plane0 = plane0.at[_IDSROW_ROW, :t_len].set(ids_f)
    plane0 = plane0.at[_POSCOL_ROW:_POSCOL_ROW + t_len, 0].set(pos_f)
    plane0 = plane0.at[_IDSCOL_ROW:_IDSCOL_ROW + t_len, 0].set(ids_f)
    rope_pack = jnp.stack([plane0, jnp.asarray(_ROT_MAT)], axis=0)        # (2,TDIM,TDIM)

    args = (patches,
            params["patch_w"], params["v_misc"], params["v_ln"], params["v_bias"],
            params["v_wqkv"], params["v_wo"], params["v_wfc1"], params["v_wfc2"],
            params["proj_w1"], params["proj_w2"], params["proj_b"],
            params["embed_tokens"], params["lm_norms"],
            params["lm_wqkv"], params["lm_wo"], params["lm_wgu"], params["lm_wdn"],
            rope_pack)

    # Grid-less single invocation: all inputs are tiny and VMEM-resident.  For
    # batch > 1 / real LLaVA sizes this would become a ('parallel', ...) grid
    # with BlockSpec-streamed weights (v7x 64 MiB VMEM, 2 TensorCores).
    return pl.pallas_call(
        _llava_kernel,
        out_shape=jax.ShapeDtypeStruct((t_len, TDIM), jnp.float32),
        scratch_shapes=[pltpu.VMEM((V_SEQ, VDIM), jnp.float32),
                        pltpu.VMEM((batch * N_PATCHES, TDIM), jnp.float32)],
    )(*args)


# ------------------------------- param init -----------------------------------
def init_params(key):
    keys = iter(jax.random.split(key, 32))

    def w(shape, dtype=jnp.bfloat16, scale=0.02):
        return (scale * jax.random.normal(next(keys), shape, jnp.float32)).astype(dtype)

    def small(shape):
        return 0.01 * jax.random.normal(next(keys), shape, jnp.float32)

    # ---- vision tower (CLIP, pre-norm; 2 layers kept for feature layer -2 of 3) --
    # v_misc rows: [0:V_SEQ]=pos_embedding, [V_SEQ]=class_embedding,
    #              [6]=pre-LN gamma, [7]=pre-LN beta.
    v_misc = jnp.zeros((8, VDIM), jnp.float32)
    v_misc = v_misc.at[0:V_SEQ, :].set(small((V_SEQ, VDIM)))
    v_misc = v_misc.at[V_SEQ, :].set(small((VDIM,)))
    v_misc = v_misc.at[6, :].set(1.0)

    # v_ln[:, 0]=ln1_g, [:,1]=ln1_b, [:,2]=ln2_g, [:,3]=ln2_b
    v_ln = jnp.zeros((V_LAYERS, 4, 1, VDIM), jnp.float32)
    v_ln = v_ln.at[:, 0].set(1.0).at[:, 2].set(1.0)

    # v_bias lane-padded to 3*VDIM, every item starts at lane 0:
    #   [:,0,:, :3*VDIM]=qkv bias, [:,1,:, :VDIM]=o bias,
    #   [:,2,:, :V_FFN]=fc1 bias,  [:,3,:, :VDIM]=fc2 bias.
    v_bias = jnp.zeros((V_LAYERS, 4, 1, 3 * VDIM), jnp.float32)
    v_bias = v_bias.at[:, 0, :, :3 * VDIM].set(small((V_LAYERS, 1, 3 * VDIM)))
    v_bias = v_bias.at[:, 1, :, :VDIM].set(small((V_LAYERS, 1, VDIM)))
    v_bias = v_bias.at[:, 2, :, :V_FFN].set(small((V_LAYERS, 1, V_FFN)))
    v_bias = v_bias.at[:, 3, :, :VDIM].set(small((V_LAYERS, 1, VDIM)))

    params = dict(
        # vision tower
        patch_w=w((3 * PATCH * PATCH, VDIM)),               # patch-embed conv (bias=False)
        v_misc=v_misc,
        v_ln=v_ln,
        v_bias=v_bias,
        v_wqkv=w((V_LAYERS, VDIM, 3 * VDIM)),                # fused Q|K|V
        v_wo=w((V_LAYERS, VDIM, VDIM)),
        v_wfc1=w((V_LAYERS, VDIM, V_FFN)),
        v_wfc2=w((V_LAYERS, V_FFN, VDIM)),
        # multimodal projector
        proj_w1=w((VDIM, TDIM)),
        proj_w2=w((TDIM, TDIM)),
        proj_b=small((2, 1, TDIM)),                          # [0]=b1, [1]=b2
        # language model
        embed_tokens=small((VOCAB, TDIM)),
        lm_norms=jnp.ones((2 * T_LAYERS + 1, 1, TDIM), jnp.float32),  # in/post per layer + final
        lm_wqkv=w((T_LAYERS, TDIM, 3 * TDIM)),               # fused Q|K|V
        lm_wo=w((T_LAYERS, TDIM, TDIM)),
        lm_wgu=w((T_LAYERS, TDIM, 2 * T_FFN)),               # fused gate|up
        lm_wdn=w((T_LAYERS, T_FFN, TDIM)),
    )
    return params


# ----------------------------------- main --------------------------------------
if __name__ == "__main__":
    key = jax.random.PRNGKey(0)
    params_key, px_key = jax.random.split(key)
    params = init_params(params_key)

    # One image (NCHW) and a flattened prompt with exactly N_PATCHES image tokens.
    pixel_values = jax.random.normal(px_key, (1, 3, IMAGE_SIZE, IMAGE_SIZE),
                                     jnp.float32)
    input_ids = jnp.array(
        [1, 5, IMAGE_TOKEN_INDEX, IMAGE_TOKEN_INDEX,
         IMAGE_TOKEN_INDEX, IMAGE_TOKEN_INDEX, 7, 2], dtype=jnp.int32)
    positions = jnp.arange(input_ids.shape[0], dtype=jnp.int32)

    fwd = jax.jit(llava_forward)
    hidden_states = fwd(params, input_ids, positions, pixel_values)
    jax.block_until_ready(hidden_states)
    assert hidden_states.shape == (input_ids.shape[0], TDIM)
    assert bool(jnp.all(jnp.isfinite(hidden_states)))
    print("KERNEL_OK")
</pallas_src>

<mosaic_0001>
module attributes {stable_mosaic.version = 11 : i64} {
  func.func @_llava_kernel(%arg0: memref<1x4x192xf32, #tpu.memory_space<vmem>>, %arg1: memref<192x32xbf16, #tpu.memory_space<vmem>>, %arg2: memref<8x32xf32, #tpu.memory_space<vmem>>, %arg3: memref<2x4x1x32xf32, #tpu.memory_space<vmem>>, %arg4: memref<2x4x1x96xf32, #tpu.memory_space<vmem>>, %arg5: memref<2x32x96xbf16, #tpu.memory_space<vmem>>, %arg6: memref<2x32x32xbf16, #tpu.memory_space<vmem>>, %arg7: memref<2x32x64xbf16, #tpu.memory_space<vmem>>, %arg8: memref<2x64x32xbf16, #tpu.memory_space<vmem>>, %arg9: memref<32x64xbf16, #tpu.memory_space<vmem>>, %arg10: memref<64x64xbf16, #tpu.memory_space<vmem>>, %arg11: memref<2x1x64xf32, #tpu.memory_space<vmem>>, %arg12: memref<128x64xf32, #tpu.memory_space<vmem>>, %arg13: memref<5x1x64xf32, #tpu.memory_space<vmem>>, %arg14: memref<2x64x192xbf16, #tpu.memory_space<vmem>>, %arg15: memref<2x64x64xbf16, #tpu.memory_space<vmem>>, %arg16: memref<2x64x256xbf16, #tpu.memory_space<vmem>>, %arg17: memref<2x128x64xbf16, #tpu.memory_space<vmem>>, %arg18: memref<2x64x64xf32, #tpu.memory_space<vmem>>, %arg19: memref<8x64xf32, #tpu.memory_space<vmem>>, %arg20: memref<5x32xf32, #tpu.memory_space<vmem>>, %arg21: memref<4x64xf32, #tpu.memory_space<vmem>>) attributes {dimension_semantics = [], scalar_prefetch = 0 : i64, scratch_operands = 2 : i64, tpu.core_type = #tpu.core_type<tc>} {
    %c0 = arith.constant 0 : index
    %c0_0 = arith.constant 0 : index
    %0 = vector.load %arg2[%c0, %c0_0] : memref<8x32xf32, #tpu.memory_space<vmem>>, vector<5x32xf32>
    %c5 = arith.constant 5 : index
    %c0_1 = arith.constant 0 : index
    %1 = vector.load %arg2[%c5, %c0_1] : memref<8x32xf32, #tpu.memory_space<vmem>>, vector<1x32xf32>
    %c6 = arith.constant 6 : index
    %c0_2 = arith.constant 0 : index
    %2 = vector.load %arg2[%c6, %c0_2] : memref<8x32xf32, #tpu.memory_space<vmem>>, vector<1x32xf32>
    %c7 = arith.constant 7 : index
    %c0_3 = arith.constant 0 : index
    %3 = vector.load %arg2[%c7, %c0_3] : memref<8x32xf32, #tpu.memory_space<vmem>>, vector<1x32xf32>
    %c0_4 = arith.constant 0 : index
    %c0_5 = arith.constant 0 : index
    %c0_6 = arith.constant 0 : index
    %4 = vector.load %arg0[%c0_4, %c0_5, %c0_6] : memref<1x4x192xf32, #tpu.memory_space<vmem>>, vector<1x4x192xf32>
    %5 = vector.shape_cast %4 : vector<1x4x192xf32> to vector<4x192xf32>
    %6 = arith.truncf %5 : vector<4x192xf32> to vector<4x192xbf16>
    %c0_7 = arith.constant 0 : index
    %c0_8 = arith.constant 0 : index
    %7 = vector.load %arg1[%c0_7, %c0_8] : memref<192x32xbf16, #tpu.memory_space<vmem>>, vector<192x32xbf16>
    %cst = arith.constant dense<0.000000e+00> : vector<4x32xf32>
    %8 = tpu.matmul %6, %7, %cst {dimension_numbers = #tpu.dot_dimension_numbers<[1], [0], [0], [1], [0, 0, 1, 1], [], []>} : vector<4x192xbf16>, vector<192x32xbf16>, vector<4x32xf32> -> vector<4x32xf32>
    %9 = vector.extract_strided_slice %0 {offsets = [0, 0], sizes = [1, 32], strides = [1, 1]} : vector<5x32xf32> to vector<1x32xf32>
    %10 = arith.addf %1, %9 : vector<1x32xf32>
    %c0_9 = arith.constant 0 : index
    %c0_10 = arith.constant 0 : index
    %11 = vector.load %arg20[%c0_9, %c0_10] : memref<5x32xf32, #tpu.memory_space<vmem>>, vector<1x32xf32>
    tpu.vector_store %arg20[%c0_9, %c0_10], %10 {strides = array<i32>} : memref<5x32xf32, #tpu.memory_space<vmem>>, vector<1x32xf32>,
    %12 = vector.extract_strided_slice %0 {offsets = [1, 0], sizes = [4, 32], strides = [1, 1]} : vector<5x32xf32> to vector<4x32xf32>
    %13 = arith.addf %8, %12 : vector<4x32xf32>
    %c1 = arith.constant 1 : index
    %c0_11 = arith.constant 0 : index
    %14 = vector.load %arg20[%c1, %c0_11] : memref<5x32xf32, #tpu.memory_space<vmem>>, vector<4x32xf32>
    tpu.vector_store %arg20[%c1, %c0_11], %13 {strides = array<i32>} : memref<5x32xf32, #tpu.memory_space<vmem>>, vector<4x32xf32>,
    %c0_12 = arith.constant 0 : index
    %c0_13 = arith.constant 0 : index
    %15 = vector.load %arg20[%c0_12, %c0_13] : memref<5x32xf32, #tpu.memory_space<vmem>>, vector<5x32xf32>
    %cst_14 = arith.constant dense<0.000000e+00> : vector<5xf32>
    %16 = vector.multi_reduction <add>, %15, %cst_14 [1] : vector<5x32xf32> to vector<5xf32>
    %17 = vector.shape_cast %16 : vector<5xf32> to vector<5x1xf32>
    %cst_15 = arith.constant 3.200000e+01 : f32
    %18 = vector.broadcast %cst_15 : f32 to vector<5x1xf32>
    %19 = arith.divf %17, %18 : vector<5x1xf32>
    %20 = vector.broadcast %19 : vector<5x1xf32> to vector<5x32xf32>
    %21 = arith.subf %15, %20 : vector<5x32xf32>
    %22 = vector.broadcast %19 : vector<5x1xf32> to vector<5x32xf32>
    %23 = arith.subf %15, %22 : vector<5x32xf32>
    %24 = arith.mulf %21, %23 : vector<5x32xf32>
    %cst_16 = arith.constant dense<0.000000e+00> : vector<5xf32>
    %25 = vector.multi_reduction <add>, %24, %cst_16 [1] : vector<5x32xf32> to vector<5xf32>
    %26 = vector.shape_cast %25 : vector<5xf32> to vector<5x1xf32>
    %cst_17 = arith.constant 3.200000e+01 : f32
    %27 = vector.broadcast %cst_17 : f32 to vector<5x1xf32>
    %28 = arith.divf %26, %27 : vector<5x1xf32>
    %29 = vector.broadcast %19 : vector<5x1xf32> to vector<5x32xf32>
    %30 = arith.subf %15, %29 : vector<5x32xf32>
    %cst_18 = arith.constant 9.99999974E-6 : f32
    %31 = vector.broadcast %cst_18 : f32 to vector<5x1xf32>
    %32 = arith.addf %28, %31 : vector<5x1xf32>
    %33 = math.rsqrt %32 : vector<5x1xf32>
    %34 = vector.broadcast %33 : vector<5x1xf32> to vector<5x32xf32>
    %35 = arith.mulf %30, %34 : vector<5x32xf32>
    %36 = vector.broadcast %2 : vector<1x32xf32> to vector<5x32xf32>
    %37 = arith.mulf %35, %36 : vector<5x32xf32>
    %38 = vector.broadcast %3 : vector<1x32xf32> to vector<5x32xf32>
    %39 = arith.addf %37, %38 : vector<5x32xf32>
    %c0_19 = arith.constant 0 : index
    %c0_20 = arith.constant 0 : index
    %c0_21 = arith.constant 0 : index
    %c0_22 = arith.constant 0 : index
    %40 = vector.load %arg3[%c0_19, %c0_20, %c0_21, %c0_22] : memref<2x4x1x32xf32, #tpu.memory_space<vmem>>, vector<1x1x1x32xf32>
    %41 = vector.shape_cast %40 : vector<1x1x1x32xf32> to vector<1x32xf32>
    %c0_23 = arith.constant 0 : index
    %c1_24 = arith.constant 1 : index
    %c0_25 = arith.constant 0 : index
    %c0_26 = arith.constant 0 : index
    %42 = vector.load %arg3[%c0_23, %c1_24, %c0_25, %c0_26] : memref<2x4x1x32xf32, #tpu.memory_space<vmem>>, vector<1x1x1x32xf32>
    %43 = vector.shape_cast %42 : vector<1x1x1x32xf32> to vector<1x32xf32>
    %cst_27 = arith.constant dense<0.000000e+00> : vector<5xf32>
    %44 = vector.multi_reduction <add>, %39, %cst_27 [1] : vector<5x32xf32> to vector<5xf32>
    %45 = vector.shape_cast %44 : vector<5xf32> to vector<5x1xf32>
    %cst_28 = arith.constant 3.200000e+01 : f32
    %46 = vector.broadcast %cst_28 : f32 to vector<5x1xf32>
    %47 = arith.divf %45, %46 : vector<5x1xf32>
    %48 = vector.broadcast %47 : vector<5x1xf32> to vector<5x32xf32>
    %49 = arith.subf %39, %48 : vector<5x32xf32>
    %50 = vector.broadcast %47 : vector<5x1xf32> to vector<5x32xf32>
    %51 = arith.subf %39, %50 : vector<5x32xf32>
    %52 = arith.mulf %49, %51 : vector<5x32xf32>
    %cst_29 = arith.constant dense<0.000000e+00> : vector<5xf32>
    %53 = vector.multi_reduction <add>, %52, %cst_29 [1] : vector<5x32xf32> to vector<5xf32>
    %54 = vector.shape_cast %53 : vector<5xf32> to vector<5x1xf32>
    %cst_30 = arith.constant 3.200000e+01 : f32
    %55 = vector.broadcast %cst_30 : f32 to vector<5x1xf32>
    %56 = arith.divf %54, %55 : vector<5x1xf32>
    %57 = vector.broadcast %47 : vector<5x1xf32> to vector<5x32xf32>
    %58 = arith.subf %39, %57 : vector<5x32xf32>
    %cst_31 = arith.constant 9.99999974E-6 : f32
    %59 = vector.broadcast %cst_31 : f32 to vector<5x1xf32>
    %60 = arith.addf %56, %59 : vector<5x1xf32>
    %61 = math.rsqrt %60 : vector<5x1xf32>
    %62 = vector.broadcast %61 : vector<5x1xf32> to vector<5x32xf32>
    %63 = arith.mulf %58, %62 : vector<5x32xf32>
    %64 = vector.broadcast %41 : vector<1x32xf32> to vector<5x32xf32>
    %65 = arith.mulf %63, %64 : vector<5x32xf32>
    %66 = vector.broadcast %43 : vector<1x32xf32> to vector<5x32xf32>
    %67 = arith.addf %65, %66 : vector<5x32xf32>
    %68 = arith.truncf %67 : vector<5x32xf32> to vector<5x32xbf16>
    %c0_32 = arith.constant 0 : index
    %c0_33 = arith.constant 0 : index
    %c0_34 = arith.constant 0 : index
    %69 = vector.load %arg5[%c0_32, %c0_33, %c0_34] : memref<2x32x96xbf16, #tpu.memory_space<vmem>>, vector<1x32x96xbf16>
    %70 = vector.shape_cast %69 : vector<1x32x96xbf16> to vector<32x96xbf16>
    %cst_35 = arith.constant dense<0.000000e+00> : vector<5x96xf32>
    %71 = tpu.matmul %68, %70, %cst_35 {dimension_numbers = #tpu.dot_dimension_numbers<[1], [0], [0], [1], [0, 0, 1, 1], [], []>} : vector<5x32xbf16>, vector<32x96xbf16>, vector<5x96xf32> -> vector<5x96xf32>
    %c0_36 = arith.constant 0 : index
    %c0_37 = arith.constant 0 : index
    %c0_38 = arith.constant 0 : index
    %c0_39 = arith.constant 0 : index
    %72 = vector.load %arg4[%c0_36, %c0_37, %c0_38, %c0_39] : memref<2x4x1x96xf32, #tpu.memory_space<vmem>>, vector<1x1x1x96xf32>
    %73 = vector.shape_cast %72 : vector<1x1x1x96xf32> to vector<1x96xf32>
    %74 = vector.broadcast %73 : vector<1x96xf32> to vector<5x96xf32>
    %75 = arith.addf %71, %74 : vector<5x96xf32>
    %76 = vector.extract_strided_slice %75 {offsets = [0, 0], sizes = [5, 8], strides = [1, 1]} : vector<5x96xf32> to vector<5x8xf32>
    %77 = vector.extract_strided_slice %75 {offsets = [0, 32], sizes = [5, 8], strides = [1, 1]} : vector<5x96xf32> to vector<5x8xf32>
    %78 = vector.extract_strided_slice %75 {offsets = [0, 64], sizes = [5, 8], strides = [1, 1]} : vector<5x96xf32> to vector<5x8xf32>
    %79 = arith.truncf %76 : vector<5x8xf32> to vector<5x8xbf16>
    %80 = arith.truncf %77 : vector<5x8xf32> to vector<5x8xbf16>
    %cst_40 = arith.constant dense<0.000000e+00> : vector<5x5xf32>
    %81 = tpu.matmul %79, %80, %cst_40 {dimension_numbers = #tpu.dot_dimension_numbers<[1], [1], [0], [0], [0, 0, 1, 0], [], []>} : vector<5x8xbf16>, vector<5x8xbf16>, vector<5x5xf32> -> vector<5x5xf32>
    %cst_41 = arith.constant 0.353553385 : f32
    %82 = vector.broadcast %cst_41 : f32 to vector<5x5xf32>
    %83 = arith.mulf %81, %82 : vector<5x5xf32>
    %cst_42 = arith.constant dense<0xFF800000> : vector<5xf32>
    %84 = vector.multi_reduction <maximumf>, %83, %cst_42 [1] : vector<5x5xf32> to vector<5xf32>
    %85 = vector.shape_cast %84 : vector<5xf32> to vector<5x1xf32>
    %86 = vector.broadcast %85 : vector<5x1xf32> to vector<5x5xf32>
    %87 = arith.subf %83, %86 : vector<5x5xf32>
    %88 = math.exp %87 : vector<5x5xf32>
    %cst_43 = arith.constant dense<0.000000e+00> : vector<5xf32>
    %89 = vector.multi_reduction <add>, %88, %cst_43 [1] : vector<5x5xf32> to vector<5xf32>
    %90 = vector.shape_cast %89 : vector<5xf32> to vector<5x1xf32>
    %91 = tpu.reciprocal %90 {approx = true} : vector<5x1xf32> -> vector<5x1xf32>
    %92 = vector.broadcast %91 : vector<5x1xf32> to vector<5x5xf32>
    %93 = arith.mulf %88, %92 : vector<5x5xf32>
    %94 = arith.truncf %93 : vector<5x5xf32> to vector<5x5xbf16>
    %95 = arith.truncf %78 : vector<5x8xf32> to vector<5x8xbf16>
    %cst_44 = arith.constant dense<0.000000e+00> : vector<5x8xf32>
    %96 = tpu.matmul %94, %95, %cst_44 {dimension_numbers = #tpu.dot_dimension_numbers<[1], [0], [0], [1], [0, 0, 1, 1], [], []>} : vector<5x5xbf16>, vector<5x8xbf16>, vector<5x8xf32> -> vector<5x8xf32>
    %97 = vector.extract_strided_slice %75 {offsets = [0, 8], sizes = [5, 8], strides = [1, 1]} : vector<5x96xf32> to vector<5x8xf32>
    %98 = vector.extract_strided_slice %75 {offsets = [0, 40], sizes = [5, 8], strides = [1, 1]} : vector<5x96xf32> to vector<5x8xf32>
    %99 = vector.extract_strided_slice %75 {offsets = [0, 72], sizes = [5, 8], strides = [1, 1]} : vector<5x96xf32> to vector<5x8xf32>
    %100 = arith.truncf %97 : vector<5x8xf32> to vector<5x8xbf16>
    %101 = arith.truncf %98 : vector<5x8xf32> to vector<5x8xbf16>
    %cst_45 = arith.constant dense<0.000000e+00> : vector<5x5xf32>
    %102 = tpu.matmul %100, %101, %cst_45 {dimension_numbers = #tpu.dot_dimension_numbers<[1], [1], [0], [0], [0, 0, 1, 0], [], []>} : vector<5x8xbf16>, vector<5x8xbf16>, vector<5x5xf32> -> vector<5x5xf32>
    %cst_46 = arith.constant 0.353553385 : f32
    %103 = vector.broadcast %cst_46 : f32 to vector<5x5xf32>
    %104 = arith.mulf %102, %103 : vector<5x5xf32>
    %cst_47 = arith.constant dense<0xFF800000> : vector<5xf32>
    %105 = vector.multi_reduction <maximumf>, %104, %cst_47 [1] : vector<5x5xf32> to vector<5xf32>
    %106 = vector.shape_cast %105 : vector<5xf32> to vector<5x1xf32>
    %107 = vector.broadcast %106 : vector<5x1xf32> to vector<5x5xf32>
    %108 = arith.subf %104, %107 : vector<5x5xf32>
    %109 = math.exp %108 : vector<5x5xf32>
    %cst_48 = arith.constant dense<0.000000e+00> : vector<5xf32>
    %110 = vector.multi_reduction <add>, %109, %cst_48 [1] : vector<5x5xf32> to vector<5xf32>
    %111 = vector.shape_cast %110 : vector<5xf32> to vector<5x1xf32>
    %112 = tpu.reciprocal %111 {approx = true} : vector<5x1xf32> -> vector<5x1xf32>
    %113 = vector.broadcast %112 : vector<5x1xf32> to vector<5x5xf32>
    %114 = arith.mulf %109, %113 : vector<5x5xf32>
    %115 = arith.truncf %114 : vector<5x5xf32> to vector<5x5xbf16>
    %116 = arith.truncf %99 : vector<5x8xf32> to vector<5x8xbf16>
    %cst_49 = arith.constant dense<0.000000e+00> : vector<5x8xf32>
    %117 = tpu.matmul %115, %116, %cst_49 {dimension_numbers = #tpu.dot_dimension_numbers<[1], [0], [0], [1], [0, 0, 1, 1], [], []>} : vector<5x5xbf16>, vector<5x8xbf16>, vector<5x8xf32> -> vector<5x8xf32>
    %118 = vector.extract_strided_slice %75 {offsets = [0, 16], sizes = [5, 8], strides = [1, 1]} : vector<5x96xf32> to vector<5x8xf32>
    %119 = vector.extract_strided_slice %75 {offsets = [0, 48], sizes = [5, 8], strides = [1, 1]} : vector<5x96xf32> to vector<5x8xf32>
    %120 = vector.extract_strided_slice %75 {offsets = [0, 80], sizes = [5, 8], strides = [1, 1]} : vector<5x96xf32> to vector<5x8xf32>
    %121 = arith.truncf %118 : vector<5x8xf32> to vector<5x8xbf16>
    %122 = arith.truncf %119 : vector<5x8xf32> to vector<5x8xbf16>
    %cst_50 = arith.constant dense<0.000000e+00> : vector<5x5xf32>
    %123 = tpu.matmul %121, %122, %cst_50 {dimension_numbers = #tpu.dot_dimension_numbers<[1], [1], [0], [0], [0, 0, 1, 0], [], []>} : vector<5x8xbf16>, vector<5x8xbf16>, vector<5x5xf32> -> vector<5x5xf32>
    %cst_51 = arith.constant 0.353553385 : f32
    %124 = vector.broadcast %cst_51 : f32 to vector<5x5xf32>
    %125 = arith.mulf %123, %124 : vector<5x5xf32>
    %cst_52 = arith.constant dense<0xFF800000> : vector<5xf32>
    %126 = vector.multi_reduction <maximumf>, %125, %cst_52 [1] : vector<5x5xf32> to vector<5xf32>
    %127 = vector.shape_cast %126 : vector<5xf32> to vector<5x1xf32>
    %128 = vector.broadcast %127 : vector<5x1xf32> to vector<5x5xf32>
    %129 = arith.subf %125, %128 : vector<5x5xf32>
    %130 = math.exp %129 : vector<5x5xf32>
    %cst_53 = arith.constant dense<0.000000e+00> : vector<5xf32>
    %131 = vector.multi_reduction <add>, %130, %cst_53 [1] : vector<5x5xf32> to vector<5xf32>
    %132 = vector.shape_cast %131 : vector<5xf32> to vector<5x1xf32>
    %133 = tpu.reciprocal %132 {approx = true} : vector<5x1xf32> -> vector<5x1xf32>
    %134 = vector.broadcast %133 : vector<5x1xf32> to vector<5x5xf32>
    %135 = arith.mulf %130, %134 : vector<5x5xf32>
    %136 = arith.truncf %135 : vector<5x5xf32> to vector<5x5xbf16>
    %137 = arith.truncf %120 : vector<5x8xf32> to vector<5x8xbf16>
    %cst_54 = arith.constant dense<0.000000e+00> : vector<5x8xf32>
    %138 = tpu.matmul %136, %137, %cst_54 {dimension_numbers = #tpu.dot_dimension_numbers<[1], [0], [0], [1], [0, 0, 1, 1], [], []>} : vector<5x5xbf16>, vector<5x8xbf16>, vector<5x8xf32> -> vector<5x8xf32>
    %139 = vector.extract_strided_slice %75 {offsets = [0, 24], sizes = [5, 8], strides = [1, 1]} : vector<5x96xf32> to vector<5x8xf32>
    %140 = vector.extract_strided_slice %75 {offsets = [0, 56], sizes = [5, 8], strides = [1, 1]} : vector<5x96xf32> to vector<5x8xf32>
    %141 = vector.extract_strided_slice %75 {offsets = [0, 88], sizes = [5, 8], strides = [1, 1]} : vector<5x96xf32> to vector<5x8xf32>
    %142 = arith.truncf %139 : vector<5x8xf32> to vector<5x8xbf16>
    %143 = arith.truncf %140 : vector<5x8xf32> to vector<5x8xbf16>
    %cst_55 = arith.constant dense<0.000000e+00> : vector<5x5xf32>
    %144 = tpu.matmul %142, %143, %cst_55 {dimension_numbers = #tpu.dot_dimension_numbers<[1], [1], [0], [0], [0, 0, 1, 0], [], []>} : vector<5x8xbf16>, vector<5x8xbf16>, vector<5x5xf32> -> vector<5x5xf32>
    %cst_56 = arith.constant 0.353553385 : f32
    %145 = vector.broadcast %cst_56 : f32 to vector<5x5xf32>
    %146 = arith.mulf %144, %145 : vector<5x5xf32>
    %cst_57 = arith.constant dense<0xFF800000> : vector<5xf32>
    %147 = vector.multi_reduction <maximumf>, %146, %cst_57 [1] : vector<5x5xf32> to vector<5xf32>
    %148 = vector.shape_cast %147 : vector<5xf32> to vector<5x1xf32>
    %149 = vector.broadcast %148 : vector<5x1xf32> to vector<5x5xf32>
    %150 = arith.subf %146, %149 : vector<5x5xf32>
    %151 = math.exp %150 : vector<5x5xf32>
    %cst_58 = arith.constant dense<0.000000e+00> : vector<5xf32>
    %152 = vector.multi_reduction <add>, %151, %cst_58 [1] : vector<5x5xf32> to vector<5xf32>
    %153 = vector.shape_cast %152 : vector<5xf32> to vector<5x1xf32>
    %154 = tpu.reciprocal %153 {approx = true} : vector<5x1xf32> -> vector<5x1xf32>
    %155 = vector.broadcast %154 : vector<5x1xf32> to vector<5x5xf32>
    %156 = arith.mulf %151, %155 : vector<5x5xf32>
    %157 = arith.truncf %156 : vector<5x5xf32> to vector<5x5xbf16>
    %158 = arith.truncf %141 : vector<5x8xf32> to vector<5x8xbf16>
    %cst_59 = arith.constant dense<0.000000e+00> : vector<5x8xf32>
    %159 = tpu.matmul %157, %158, %cst_59 {dimension_numbers = #tpu.dot_dimension_numbers<[1], [0], [0], [1], [0, 0, 1, 1], [], []>} : vector<5x5xbf16>, vector<5x8xbf16>, vector<5x8xf32> -> vector<5x8xf32>
    %160 = tpu.concatenate %96, %117, %138, %159 in 1 : vector<5x8xf32>, vector<5x8xf32>, vector<5x8xf32>, vector<5x8xf32> -> vector<5x32xf32>
    %161 = arith.truncf %160 : vector<5x32xf32> to vector<5x32xbf16>
    %c0_60 = arith.constant 0 : index
    %c0_61 = arith.constant 0 : index
    %c0_62 = arith.constant 0 : index
    %162 = vector.load %arg6[%c0_60, %c0_61, %c0_62] : memref<2x32x32xbf16, #tpu.memory_space<vmem>>, vector<1x32x32xbf16>
    %163 = vector.shape_cast %162 : vector<1x32x32xbf16> to vector<32x32xbf16>
    %cst_63 = arith.constant dense<0.000000e+00> : vector<5x32xf32>
    %164 = tpu.matmul %161, %163, %cst_63 {dimension_numbers = #tpu.dot_dimension_numbers<[1], [0], [0], [1], [0, 0, 1, 1], [], []>} : vector<5x32xbf16>, vector<32x32xbf16>, vector<5x32xf32> -> vector<5x32xf32>
    %165 = arith.addf %39, %164 : vector<5x32xf32>
    %c0_64 = arith.constant 0 : index
    %c1_65 = arith.constant 1 : index
    %c0_66 = arith.constant 0 : index
    %c0_67 = arith.constant 0 : index
    %166 = vector.load %arg4[%c0_64, %c1_65, %c0_66, %c0_67] : memref<2x4x1x96xf32, #tpu.memory_space<vmem>>, vector<1x1x1x96xf32>
    %167 = vector.shape_cast %166 : vector<1x1x1x96xf32> to vector<1x96xf32>
    %168 = vector.extract_strided_slice %167 {offsets = [0, 0], sizes = [1, 32], strides = [1, 1]} : vector<1x96xf32> to vector<1x32xf32>
    %169 = vector.broadcast %168 : vector<1x32xf32> to vector<5x32xf32>
    %170 = arith.addf %165, %169 : vector<5x32xf32>
    %c0_68 = arith.constant 0 : index
    %c2 = arith.constant 2 : index
    %c0_69 = arith.constant 0 : index
    %c0_70 = arith.constant 0 : index
    %171 = vector.load %arg3[%c0_68, %c2, %c0_69, %c0_70] : memref<2x4x1x32xf32, #tpu.memory_space<vmem>>, vector<1x1x1x32xf32>
    %172 = vector.shape_cast %171 : vector<1x1x1x32xf32> to vector<1x32xf32>
    %c0_71 = arith.constant 0 : index
    %c3 = arith.constant 3 : index
    %c0_72 = arith.constant 0 : index
    %c0_73 = arith.constant 0 : index
    %173 = vector.load %arg3[%c0_71, %c3, %c0_72, %c0_73] : memref<2x4x1x32xf32, #tpu.memory_space<vmem>>, vector<1x1x1x32xf32>
    %174 = vector.shape_cast %173 : vector<1x1x1x32xf32> to vector<1x32xf32>
    %cst_74 = arith.constant dense<0.000000e+00> : vector<5xf32>
    %175 = vector.multi_reduction <add>, %170, %cst_74 [1] : vector<5x32xf32> to vector<5xf32>
    %176 = vector.shape_cast %175 : vector<5xf32> to vector<5x1xf32>
    %cst_75 = arith.constant 3.200000e+01 : f32
    %177 = vector.broadcast %cst_75 : f32 to vector<5x1xf32>
    %178 = arith.divf %176, %177 : vector<5x1xf32>
    %179 = vector.broadcast %178 : vector<5x1xf32> to vector<5x32xf32>
    %180 = arith.subf %170, %179 : vector<5x32xf32>
    %181 = vector.broadcast %178 : vector<5x1xf32> to vector<5x32xf32>
    %182 = arith.subf %170, %181 : vector<5x32xf32>
    %183 = arith.mulf %180, %182 : vector<5x32xf32>
    %cst_76 = arith.constant dense<0.000000e+00> : vector<5xf32>
    %184 = vector.multi_reduction <add>, %183, %cst_76 [1] : vector<5x32xf32> to vector<5xf32>
    %185 = vector.shape_cast %184 : vector<5xf32> to vector<5x1xf32>
    %cst_77 = arith.constant 3.200000e+01 : f32
    %186 = vector.broadcast %cst_77 : f32 to vector<5x1xf32>
    %187 = arith.divf %185, %186 : vector<5x1xf32>
    %188 = vector.broadcast %178 : vector<5x1xf32> to vector<5x32xf32>
    %189 = arith.subf %170, %188 : vector<5x32xf32>
    %cst_78 = arith.constant 9.99999974E-6 : f32
    %190 = vector.broadcast %cst_78 : f32 to vector<5x1xf32>
    %191 = arith.addf %187, %190 : vector<5x1xf32>
    %192 = math.rsqrt %191 : vector<5x1xf32>
    %193 = vector.broadcast %192 : vector<5x1xf32> to vector<5x32xf32>
    %194 = arith.mulf %189, %193 : vector<5x32xf32>
    %195 = vector.broadcast %172 : vector<1x32xf32> to vector<5x32xf32>
    %196 = arith.mulf %194, %195 : vector<5x32xf32>
    %197 = vector.broadcast %174 : vector<1x32xf32> to vector<5x32xf32>
    %198 = arith.addf %196, %197 : vector<5x32xf32>
    %199 = arith.truncf %198 : vector<5x32xf32> to vector<5x32xbf16>
    %c0_79 = arith.constant 0 : index
    %c0_80 = arith.constant 0 : index
    %c0_81 = arith.constant 0 : index
    %200 = vector.load %arg7[%c0_79, %c0_80, %c0_81] : memref<2x32x64xbf16, #tpu.memory_space<vmem>>, vector<1x32x64xbf16>
    %201 = vector.shape_cast %200 : vector<1x32x64xbf16> to vector<32x64xbf16>
    %cst_82 = arith.constant dense<0.000000e+00> : vector<5x64xf32>
    %202 = tpu.matmul %199, %201, %cst_82 {dimension_numbers = #tpu.dot_dimension_numbers<[1], [0], [0], [1], [0, 0, 1, 1], [], []>} : vector<5x32xbf16>, vector<32x64xbf16>, vector<5x64xf32> -> vector<5x64xf32>
    %c0_83 = arith.constant 0 : index
    %c2_84 = arith.constant 2 : index
    %c0_85 = arith.constant 0 : index
    %c0_86 = arith.constant 0 : index
    %203 = vector.load %arg4[%c0_83, %c2_84, %c0_85, %c0_86] : memref<2x4x1x96xf32, #tpu.memory_space<vmem>>, vector<1x1x1x96xf32>
    %204 = vector.shape_cast %203 : vector<1x1x1x96xf32> to vector<1x96xf32>
    %205 = vector.extract_strided_slice %204 {offsets = [0, 0], sizes = [1, 64], strides = [1, 1]} : vector<1x96xf32> to vector<1x64xf32>
    %206 = vector.broadcast %205 : vector<1x64xf32> to vector<5x64xf32>
    %207 = arith.addf %202, %206 : vector<5x64xf32>
    %cst_87 = arith.constant 1.702000e+00 : f32
    %208 = vector.broadcast %cst_87 : f32 to vector<5x64xf32>
    %209 = arith.mulf %208, %207 : vector<5x64xf32>
    %210 = arith.negf %209 : vector<5x64xf32>
    %211 = math.exp %210 : vector<5x64xf32>
    %cst_88 = arith.constant 1.000000e+00 : f32
    %212 = vector.broadcast %cst_88 : f32 to vector<5x64xf32>
    %213 = arith.addf %212, %211 : vector<5x64xf32>
    %214 = arith.divf %212, %213 : vector<5x64xf32>
    %215 = arith.mulf %207, %214 : vector<5x64xf32>
    %216 = arith.truncf %215 : vector<5x64xf32> to vector<5x64xbf16>
    %c0_89 = arith.constant 0 : index
    %c0_90 = arith.constant 0 : index
    %c0_91 = arith.constant 0 : index
    %217 = vector.load %arg8[%c0_89, %c0_90, %c0_91] : memref<2x64x32xbf16, #tpu.memory_space<vmem>>, vector<1x64x32xbf16>
    %218 = vector.shape_cast %217 : vector<1x64x32xbf16> to vector<64x32xbf16>
    %cst_92 = arith.constant dense<0.000000e+00> : vector<5x32xf32>
    %219 = tpu.matmul %216, %218, %cst_92 {dimension_numbers = #tpu.dot_dimension_numbers<[1], [0], [0], [1], [0, 0, 1, 1], [], []>} : vector<5x64xbf16>, vector<64x32xbf16>, vector<5x32xf32> -> vector<5x32xf32>
    %c0_93 = arith.constant 0 : index
    %c3_94 = arith.constant 3 : index
    %c0_95 = arith.constant 0 : index
    %c0_96 = arith.constant 0 : index
    %220 = vector.load %arg4[%c0_93, %c3_94, %c0_95, %c0_96] : memref<2x4x1x96xf32, #tpu.memory_space<vmem>>, vector<1x1x1x96xf32>
    %221 = vector.shape_cast %220 : vector<1x1x1x96xf32> to vector<1x96xf32>
    %222 = vector.extract_strided_slice %221 {offsets = [0, 0], sizes = [1, 32], strides = [1, 1]} : vector<1x96xf32> to vector<1x32xf32>
    %223 = vector.broadcast %222 : vector<1x32xf32> to vector<5x32xf32>
    %224 = arith.addf %219, %223 : vector<5x32xf32>
    %225 = arith.addf %170, %224 : vector<5x32xf32>
    %c1_97 = arith.constant 1 : index
    %c0_98 = arith.constant 0 : index
    %c0_99 = arith.constant 0 : index
    %c0_100 = arith.constant 0 : index
    %226 = vector.load %arg3[%c1_97, %c0_98, %c0_99, %c0_100] : memref<2x4x1x32xf32, #tpu.memory_space<vmem>>, vector<1x1x1x32xf32>
    %227 = vector.shape_cast %226 : vector<1x1x1x32xf32> to vector<1x32xf32>
    %c1_101 = arith.constant 1 : index
    %c1_102 = arith.constant 1 : index
    %c0_103 = arith.constant 0 : index
    %c0_104 = arith.constant 0 : index
    %228 = vector.load %arg3[%c1_101, %c1_102, %c0_103, %c0_104] : memref<2x4x1x32xf32, #tpu.memory_space<vmem>>, vector<1x1x1x32xf32>
    %229 = vector.shape_cast %228 : vector<1x1x1x32xf32> to vector<1x32xf32>
    %cst_105 = arith.constant dense<0.000000e+00> : vector<5xf32>
    %230 = vector.multi_reduction <add>, %225, %cst_105 [1] : vector<5x32xf32> to vector<5xf32>
    %231 = vector.shape_cast %230 : vector<5xf32> to vector<5x1xf32>
    %cst_106 = arith.constant 3.200000e+01 : f32
    %232 = vector.broadcast %cst_106 : f32 to vector<5x1xf32>
    %233 = arith.divf %231, %232 : vector<5x1xf32>
    %234 = vector.broadcast %233 : vector<5x1xf32> to vector<5x32xf32>
    %235 = arith.subf %225, %234 : vector<5x32xf32>
    %236 = vector.broadcast %233 : vector<5x1xf32> to vector<5x32xf32>
    %237 = arith.subf %225, %236 : vector<5x32xf32>
    %238 = arith.mulf %235, %237 : vector<5x32xf32>
    %cst_107 = arith.constant dense<0.000000e+00> : vector<5xf32>
    %239 = vector.multi_reduction <add>, %238, %cst_107 [1] : vector<5x32xf32> to vector<5xf32>
    %240 = vector.shape_cast %239 : vector<5xf32> to vector<5x1xf32>
    %cst_108 = arith.constant 3.200000e+01 : f32
    %241 = vector.broadcast %cst_108 : f32 to vector<5x1xf32>
    %242 = arith.divf %240, %241 : vector<5x1xf32>
    %243 = vector.broadcast %233 : vector<5x1xf32> to vector<5x32xf32>
    %244 = arith.subf %225, %243 : vector<5x32xf32>
    %cst_109 = arith.constant 9.99999974E-6 : f32
    %245 = vector.broadcast %cst_109 : f32 to vector<5x1xf32>
    %246 = arith.addf %242, %245 : vector<5x1xf32>
    %247 = math.rsqrt %246 : vector<5x1xf32>
    %248 = vector.broadcast %247 : vector<5x1xf32> to vector<5x32xf32>
    %249 = arith.mulf %244, %248 : vector<5x32xf32>
    %250 = vector.broadcast %227 : vector<1x32xf32> to vector<5x32xf32>
    %251 = arith.mulf %249, %250 : vector<5x32xf32>
    %252 = vector.broadcast %229 : vector<1x32xf32> to vector<5x32xf32>
    %253 = arith.addf %251, %252 : vector<5x32xf32>
    %254 = arith.truncf %253 : vector<5x32xf32> to vector<5x32xbf16>
    %c1_110 = arith.constant 1 : index
    %c0_111 = arith.constant 0 : index
    %c0_112 = arith.constant 0 : index
    %255 = vector.load %arg5[%c1_110, %c0_111, %c0_112] : memref<2x32x96xbf16, #tpu.memory_space<vmem>>, vector<1x32x96xbf16>
    %256 = vector.shape_cast %255 : vector<1x32x96xbf16> to vector<32x96xbf16>
    %cst_113 = arith.constant dense<0.000000e+00> : vector<5x96xf32>
    %257 = tpu.matmul %254, %256, %cst_113 {dimension_numbers = #tpu.dot_dimension_numbers<[1], [0], [0], [1], [0, 0, 1, 1], [], []>} : vector<5x32xbf16>, vector<32x96xbf16>, vector<5x96xf32> -> vector<5x96xf32>
    %c1_114 = arith.constant 1 : index
    %c0_115 = arith.constant 0 : index
    %c0_116 = arith.constant 0 : index
    %c0_117 = arith.constant 0 : index
    %258 = vector.load %arg4[%c1_114, %c0_115, %c0_116, %c0_117] : memref<2x4x1x96xf32, #tpu.memory_space<vmem>>, vector<1x1x1x96xf32>
    %259 = vector.shape_cast %258 : vector<1x1x1x96xf32> to vector<1x96xf32>
    %260 = vector.broadcast %259 : vector<1x96xf32> to vector<5x96xf32>
    %261 = arith.addf %257, %260 : vector<5x96xf32>
    %262 = vector.extract_strided_slice %261 {offsets = [0, 0], sizes = [5, 8], strides = [1, 1]} : vector<5x96xf32> to vector<5x8xf32>
    %263 = vector.extract_strided_slice %261 {offsets = [0, 32], sizes = [5, 8], strides = [1, 1]} : vector<5x96xf32> to vector<5x8xf32>
    %264 = vector.extract_strided_slice %261 {offsets = [0, 64], sizes = [5, 8], strides = [1, 1]} : vector<5x96xf32> to vector<5x8xf32>
    %265 = arith.truncf %262 : vector<5x8xf32> to vector<5x8xbf16>
    %266 = arith.truncf %263 : vector<5x8xf32> to vector<5x8xbf16>
    %cst_118 = arith.constant dense<0.000000e+00> : vector<5x5xf32>
    %267 = tpu.matmul %265, %266, %cst_118 {dimension_numbers = #tpu.dot_dimension_numbers<[1], [1], [0], [0], [0, 0, 1, 0], [], []>} : vector<5x8xbf16>, vector<5x8xbf16>, vector<5x5xf32> -> vector<5x5xf32>
    %cst_119 = arith.constant 0.353553385 : f32
    %268 = vector.broadcast %cst_119 : f32 to vector<5x5xf32>
    %269 = arith.mulf %267, %268 : vector<5x5xf32>
    %cst_120 = arith.constant dense<0xFF800000> : vector<5xf32>
    %270 = vector.multi_reduction <maximumf>, %269, %cst_120 [1] : vector<5x5xf32> to vector<5xf32>
    %271 = vector.shape_cast %270 : vector<5xf32> to vector<5x1xf32>
    %272 = vector.broadcast %271 : vector<5x1xf32> to vector<5x5xf32>
    %273 = arith.subf %269, %272 : vector<5x5xf32>
    %274 = math.exp %273 : vector<5x5xf32>
    %cst_121 = arith.constant dense<0.000000e+00> : vector<5xf32>
    %275 = vector.multi_reduction <add>, %274, %cst_121 [1] : vector<5x5xf32> to vector<5xf32>
    %276 = vector.shape_cast %275 : vector<5xf32> to vector<5x1xf32>
    %277 = tpu.reciprocal %276 {approx = true} : vector<5x1xf32> -> vector<5x1xf32>
    %278 = vector.broadcast %277 : vector<5x1xf32> to vector<5x5xf32>
    %279 = arith.mulf %274, %278 : vector<5x5xf32>
    %280 = arith.truncf %279 : vector<5x5xf32> to vector<5x5xbf16>
    %281 = arith.truncf %264 : vector<5x8xf32> to vector<5x8xbf16>
    %cst_122 = arith.constant dense<0.000000e+00> : vector<5x8xf32>
    %282 = tpu.matmul %280, %281, %cst_122 {dimension_numbers = #tpu.dot_dimension_numbers<[1], [0], [0], [1], [0, 0, 1, 1], [], []>} : vector<5x5xbf16>, vector<5x8xbf16>, vector<5x8xf32> -> vector<5x8xf32>
    %283 = vector.extract_strided_slice %261 {offsets = [0, 8], sizes = [5, 8], strides = [1, 1]} : vector<5x96xf32> to vector<5x8xf32>
    %284 = vector.extract_strided_slice %261 {offsets = [0, 40], sizes = [5, 8], strides = [1, 1]} : vector<5x96xf32> to vector<5x8xf32>
    %285 = vector.extract_strided_slice %261 {offsets = [0, 72], sizes = [5, 8], strides = [1, 1]} : vector<5x96xf32> to vector<5x8xf32>
    %286 = arith.truncf %283 : vector<5x8xf32> to vector<5x8xbf16>
    %287 = arith.truncf %284 : vector<5x8xf32> to vector<5x8xbf16>
    %cst_123 = arith.constant dense<0.000000e+00> : vector<5x5xf32>
    %288 = tpu.matmul %286, %287, %cst_123 {dimension_numbers = #tpu.dot_dimension_numbers<[1], [1], [0], [0], [0, 0, 1, 0], [], []>} : vector<5x8xbf16>, vector<5x8xbf16>, vector<5x5xf32> -> vector<5x5xf32>
    %cst_124 = arith.constant 0.353553385 : f32
    %289 = vector.broadcast %cst_124 : f32 to vector<5x5xf32>
    %290 = arith.mulf %288, %289 : vector<5x5xf32>
    %cst_125 = arith.constant dense<0xFF800000> : vector<5xf32>
    %291 = vector.multi_reduction <maximumf>, %290, %cst_125 [1] : vector<5x5xf32> to vector<5xf32>
    %292 = vector.shape_cast %291 : vector<5xf32> to vector<5x1xf32>
    %293 = vector.broadcast %292 : vector<5x1xf32> to vector<5x5xf32>
    %294 = arith.subf %290, %293 : vector<5x5xf32>
    %295 = math.exp %294 : vector<5x5xf32>
    %cst_126 = arith.constant dense<0.000000e+00> : vector<5xf32>
    %296 = vector.multi_reduction <add>, %295, %cst_126 [1] : vector<5x5xf32> to vector<5xf32>
    %297 = vector.shape_cast %296 : vector<5xf32> to vector<5x1xf32>
    %298 = tpu.reciprocal %297 {approx = true} : vector<5x1xf32> -> vector<5x1xf32>
    %299 = vector.broadcast %298 : vector<5x1xf32> to vector<5x5xf32>
    %300 = arith.mulf %295, %299 : vector<5x5xf32>
    %301 = arith.truncf %300 : vector<5x5xf32> to vector<5x5xbf16>
    %302 = arith.truncf %285 : vector<5x8xf32> to vector<5x8xbf16>
    %cst_127 = arith.constant dense<0.000000e+00> : vector<5x8xf32>
    %303 = tpu.matmul %301, %302, %cst_127 {dimension_numbers = #tpu.dot_dimension_numbers<[1], [0], [0], [1], [0, 0, 1, 1], [], []>} : vector<5x5xbf16>, vector<5x8xbf16>, vector<5x8xf32> -> vector<5x8xf32>
    %304 = vector.extract_strided_slice %261 {offsets = [0, 16], sizes = [5, 8], strides = [1, 1]} : vector<5x96xf32> to vector<5x8xf32>
    %305 = vector.extract_strided_slice %261 {offsets = [0, 48], sizes = [5, 8], strides = [1, 1]} : vector<5x96xf32> to vector<5x8xf32>
    %306 = vector.extract_strided_slice %261 {offsets = [0, 80], sizes = [5, 8], strides = [1, 1]} : vector<5x96xf32> to vector<5x8xf32>
    %307 = arith.truncf %304 : vector<5x8xf32> to vector<5x8xbf16>
    %308 = arith.truncf %305 : vector<5x8xf32> to vector<5x8xbf16>
    %cst_128 = arith.constant dense<0.000000e+00> : vector<5x5xf32>
    %309 = tpu.matmul %307, %308, %cst_128 {dimension_numbers = #tpu.dot_dimension_numbers<[1], [1], [0], [0], [0, 0, 1, 0], [], []>} : vector<5x8xbf16>, vector<5x8xbf16>, vector<5x5xf32> -> vector<5x5xf32>
    %cst_129 = arith.constant 0.353553385 : f32
    %310 = vector.broadcast %cst_129 : f32 to vector<5x5xf32>
    %311 = arith.mulf %309, %310 : vector<5x5xf32>
    %cst_130 = arith.constant dense<0xFF800000> : vector<5xf32>
    %312 = vector.multi_reduction <maximumf>, %311, %cst_130 [1] : vector<5x5xf32> to vector<5xf32>
    %313 = vector.shape_cast %312 : vector<5xf32> to vector<5x1xf32>
    %314 = vector.broadcast %313 : vector<5x1xf32> to vector<5x5xf32>
    %315 = arith.subf %311, %314 : vector<5x5xf32>
    %316 = math.exp %315 : vector<5x5xf32>
    %cst_131 = arith.constant dense<0.000000e+00> : vector<5xf32>
    %317 = vector.multi_reduction <add>, %316, %cst_131 [1] : vector<5x5xf32> to vector<5xf32>
    %318 = vector.shape_cast %317 : vector<5xf32> to vector<5x1xf32>
    %319 = tpu.reciprocal %318 {approx = true} : vector<5x1xf32> -> vector<5x1xf32>
    %320 = vector.broadcast %319 : vector<5x1xf32> to vector<5x5xf32>
    %321 = arith.mulf %316, %320 : vector<5x5xf32>
    %322 = arith.truncf %321 : vector<5x5xf32> to vector<5x5xbf16>
    %323 = arith.truncf %306 : vector<5x8xf32> to vector<5x8xbf16>
    %cst_132 = arith.constant dense<0.000000e+00> : vector<5x8xf32>
    %324 = tpu.matmul %322, %323, %cst_132 {dimension_numbers = #tpu.dot_dimension_numbers<[1], [0], [0], [1], [0, 0, 1, 1], [], []>} : vector<5x5xbf16>, vector<5x8xbf16>, vector<5x8xf32> -> vector<5x8xf32>
    %325 = vector.extract_strided_slice %261 {offsets = [0, 24], sizes = [5, 8], strides = [1, 1]} : vector<5x96xf32> to vector<5x8xf32>
    %326 = vector.extract_strided_slice %261 {offsets = [0, 56], sizes = [5, 8], strides = [1, 1]} : vector<5x96xf32> to vector<5x8xf32>
    %327 = vector.extract_strided_slice %261 {offsets = [0, 88], sizes = [5, 8], strides = [1, 1]} : vector<5x96xf32> to vector<5x8xf32>
    %328 = arith.truncf %325 : vector<5x8xf32> to vector<5x8xbf16>
    %329 = arith.truncf %326 : vector<5x8xf32> to vector<5x8xbf16>
    %cst_133 = arith.constant dense<0.000000e+00> : vector<5x5xf32>
    %330 = tpu.matmul %328, %329, %cst_133 {dimension_numbers = #tpu.dot_dimension_numbers<[1], [1], [0], [0], [0, 0, 1, 0], [], []>} : vector<5x8xbf16>, vector<5x8xbf16>, vector<5x5xf32> -> vector<5x5xf32>
    %cst_134 = arith.constant 0.353553385 : f32
    %331 = vector.broadcast %cst_134 : f32 to vector<5x5xf32>
    %332 = arith.mulf %330, %331 : vector<5x5xf32>
    %cst_135 = arith.constant dense<0xFF800000> : vector<5xf32>
    %333 = vector.multi_reduction <maximumf>, %332, %cst_135 [1] : vector<5x5xf32> to vector<5xf32>
    %334 = vector.shape_cast %333 : vector<5xf32> to vector<5x1xf32>
    %335 = vector.broadcast %334 : vector<5x1xf32> to vector<5x5xf32>
    %336 = arith.subf %332, %335 : vector<5x5xf32>
    %337 = math.exp %336 : vector<5x5xf32>
    %cst_136 = arith.constant dense<0.000000e+00> : vector<5xf32>
    %338 = vector.multi_reduction <add>, %337, %cst_136 [1] : vector<5x5xf32> to vector<5xf32>
    %339 = vector.shape_cast %338 : vector<5xf32> to vector<5x1xf32>
    %340 = tpu.reciprocal %339 {approx = true} : vector<5x1xf32> -> vector<5x1xf32>
    %341 = vector.broadcast %340 : vector<5x1xf32> to vector<5x5xf32>
    %342 = arith.mulf %337, %341 : vector<5x5xf32>
    %343 = arith.truncf %342 : vector<5x5xf32> to vector<5x5xbf16>
    %344 = arith.truncf %327 : vector<5x8xf32> to vector<5x8xbf16>
    %cst_137 = arith.constant dense<0.000000e+00> : vector<5x8xf32>
    %345 = tpu.matmul %343, %344, %cst_137 {dimension_numbers = #tpu.dot_dimension_numbers<[1], [0], [0], [1], [0, 0, 1, 1], [], []>} : vector<5x5xbf16>, vector<5x8xbf16>, vector<5x8xf32> -> vector<5x8xf32>
    %346 = tpu.concatenate %282, %303, %324, %345 in 1 : vector<5x8xf32>, vector<5x8xf32>, vector<5x8xf32>, vector<5x8xf32> -> vector<5x32xf32>
    %347 = arith.truncf %346 : vector<5x32xf32> to vector<5x32xbf16>
    %c1_138 = arith.constant 1 : index
    %c0_139 = arith.constant 0 : index
    %c0_140 = arith.constant 0 : index
    %348 = vector.load %arg6[%c1_138, %c0_139, %c0_140] : memref<2x32x32xbf16, #tpu.memory_space<vmem>>, vector<1x32x32xbf16>
    %349 = vector.shape_cast %348 : vector<1x32x32xbf16> to vector<32x32xbf16>
    %cst_141 = arith.constant dense<0.000000e+00> : vector<5x32xf32>
    %350 = tpu.matmul %347, %349, %cst_141 {dimension_numbers = #tpu.dot_dimension_numbers<[1], [0], [0], [1], [0, 0, 1, 1], [], []>} : vector<5x32xbf16>, vector<32x32xbf16>, vector<5x32xf32> -> vector<5x32xf32>
    %351 = arith.addf %225, %350 : vector<5x32xf32>
    %c1_142 = arith.constant 1 : index
    %c1_143 = arith.constant 1 : index
    %c0_144 = arith.constant 0 : index
    %c0_145 = arith.constant 0 : index
    %352 = vector.load %arg4[%c1_142, %c1_143, %c0_144, %c0_145] : memref<2x4x1x96xf32, #tpu.memory_space<vmem>>, vector<1x1x1x96xf32>
    %353 = vector.shape_cast %352 : vector<1x1x1x96xf32> to vector<1x96xf32>
    %354 = vector.extract_strided_slice %353 {offsets = [0, 0], sizes = [1, 32], strides = [1, 1]} : vector<1x96xf32> to vector<1x32xf32>
    %355 = vector.broadcast %354 : vector<1x32xf32> to vector<5x32xf32>
    %356 = arith.addf %351, %355 : vector<5x32xf32>
    %c1_146 = arith.constant 1 : index
    %c2_147 = arith.constant 2 : index
    %c0_148 = arith.constant 0 : index
    %c0_149 = arith.constant 0 : index
    %357 = vector.load %arg3[%c1_146, %c2_147, %c0_148, %c0_149] : memref<2x4x1x32xf32, #tpu.memory_space<vmem>>, vector<1x1x1x32xf32>
    %358 = vector.shape_cast %357 : vector<1x1x1x32xf32> to vector<1x32xf32>
    %c1_150 = arith.constant 1 : index
    %c3_151 = arith.constant 3 : index
    %c0_152 = arith.constant 0 : index
    %c0_153 = arith.constant 0 : index
    %359 = vector.load %arg3[%c1_150, %c3_151, %c0_152, %c0_153] : memref<2x4x1x32xf32, #tpu.memory_space<vmem>>, vector<1x1x1x32xf32>
    %360 = vector.shape_cast %359 : vector<1x1x1x32xf32> to vector<1x32xf32>
    %cst_154 = arith.constant dense<0.000000e+00> : vector<5xf32>
    %361 = vector.multi_reduction <add>, %356, %cst_154 [1] : vector<5x32xf32> to vector<5xf32>
    %362 = vector.shape_cast %361 : vector<5xf32> to vector<5x1xf32>
    %cst_155 = arith.constant 3.200000e+01 : f32
    %363 = vector.broadcast %cst_155 : f32 to vector<5x1xf32>
    %364 = arith.divf %362, %363 : vector<5x1xf32>
    %365 = vector.broadcast %364 : vector<5x1xf32> to vector<5x32xf32>
    %366 = arith.subf %356, %365 : vector<5x32xf32>
    %367 = vector.broadcast %364 : vector<5x1xf32> to vector<5x32xf32>
    %368 = arith.subf %356, %367 : vector<5x32xf32>
    %369 = arith.mulf %366, %368 : vector<5x32xf32>
    %cst_156 = arith.constant dense<0.000000e+00> : vector<5xf32>
    %370 = vector.multi_reduction <add>, %369, %cst_156 [1] : vector<5x32xf32> to vector<5xf32>
    %371 = vector.shape_cast %370 : vector<5xf32> to vector<5x1xf32>
    %cst_157 = arith.constant 3.200000e+01 : f32
    %372 = vector.broadcast %cst_157 : f32 to vector<5x1xf32>
    %373 = arith.divf %371, %372 : vector<5x1xf32>
    %374 = vector.broadcast %364 : vector<5x1xf32> to vector<5x32xf32>
    %375 = arith.subf %356, %374 : vector<5x32xf32>
    %cst_158 = arith.constant 9.99999974E-6 : f32
    %376 = vector.broadcast %cst_158 : f32 to vector<5x1xf32>
    %377 = arith.addf %373, %376 : vector<5x1xf32>
    %378 = math.rsqrt %377 : vector<5x1xf32>
    %379 = vector.broadcast %378 : vector<5x1xf32> to vector<5x32xf32>
    %380 = arith.mulf %375, %379 : vector<5x32xf32>
    %381 = vector.broadcast %358 : vector<1x32xf32> to vector<5x32xf32>
    %382 = arith.mulf %380, %381 : vector<5x32xf32>
    %383 = vector.broadcast %360 : vector<1x32xf32> to vector<5x32xf32>
    %384 = arith.addf %382, %383 : vector<5x32xf32>
    %385 = arith.truncf %384 : vector<5x32xf32> to vector<5x32xbf16>
    %c1_159 = arith.constant 1 : index
    %c0_160 = arith.constant 0 : index
    %c0_161 = arith.constant 0 : index
    %386 = vector.load %arg7[%c1_159, %c0_160, %c0_161] : memref<2x32x64xbf16, #tpu.memory_space<vmem>>, vector<1x32x64xbf16>
    %387 = vector.shape_cast %386 : vector<1x32x64xbf16> to vector<32x64xbf16>
    %cst_162 = arith.constant dense<0.000000e+00> : vector<5x64xf32>
    %388 = tpu.matmul %385, %387, %cst_162 {dimension_numbers = #tpu.dot_dimension_numbers<[1], [0], [0], [1], [0, 0, 1, 1], [], []>} : vector<5x32xbf16>, vector<32x64xbf16>, vector<5x64xf32> -> vector<5x64xf32>
    %c1_163 = arith.constant 1 : index
    %c2_164 = arith.constant 2 : index
    %c0_165 = arith.constant 0 : index
    %c0_166 = arith.constant 0 : index
    %389 = vector.load %arg4[%c1_163, %c2_164, %c0_165, %c0_166] : memref<2x4x1x96xf32, #tpu.memory_space<vmem>>, vector<1x1x1x96xf32>
    %390 = vector.shape_cast %389 : vector<1x1x1x96xf32> to vector<1x96xf32>
    %391 = vector.extract_strided_slice %390 {offsets = [0, 0], sizes = [1, 64], strides = [1, 1]} : vector<1x96xf32> to vector<1x64xf32>
    %392 = vector.broadcast %391 : vector<1x64xf32> to vector<5x64xf32>
    %393 = arith.addf %388, %392 : vector<5x64xf32>
    %cst_167 = arith.constant 1.702000e+00 : f32
    %394 = vector.broadcast %cst_167 : f32 to vector<5x64xf32>
    %395 = arith.mulf %394, %393 : vector<5x64xf32>
    %396 = arith.negf %395 : vector<5x64xf32>
    %397 = math.exp %396 : vector<5x64xf32>
    %cst_168 = arith.constant 1.000000e+00 : f32
    %398 = vector.broadcast %cst_168 : f32 to vector<5x64xf32>
    %399 = arith.addf %398, %397 : vector<5x64xf32>
    %400 = arith.divf %398, %399 : vector<5x64xf32>
    %401 = arith.mulf %393, %400 : vector<5x64xf32>
    %402 = arith.truncf %401 : vector<5x64xf32> to vector<5x64xbf16>
    %c1_169 = arith.constant 1 : index
    %c0_170 = arith.constant 0 : index
    %c0_171 = arith.constant 0 : index
    %403 = vector.load %arg8[%c1_169, %c0_170, %c0_171] : memref<2x64x32xbf16, #tpu.memory_space<vmem>>, vector<1x64x32xbf16>
    %404 = vector.shape_cast %403 : vector<1x64x32xbf16> to vector<64x32xbf16>
    %cst_172 = arith.constant dense<0.000000e+00> : vector<5x32xf32>
    %405 = tpu.matmul %402, %404, %cst_172 {dimension_numbers = #tpu.dot_dimension_numbers<[1], [0], [0], [1], [0, 0, 1, 1], [], []>} : vector<5x64xbf16>, vector<64x32xbf16>, vector<5x32xf32> -> vector<5x32xf32>
    %c1_173 = arith.constant 1 : index
    %c3_174 = arith.constant 3 : index
    %c0_175 = arith.constant 0 : index
    %c0_176 = arith.constant 0 : index
    %406 = vector.load %arg4[%c1_173, %c3_174, %c0_175, %c0_176] : memref<2x4x1x96xf32, #tpu.memory_space<vmem>>, vector<1x1x1x96xf32>
    %407 = vector.shape_cast %406 : vector<1x1x1x96xf32> to vector<1x96xf32>
    %408 = vector.extract_strided_slice %407 {offsets = [0, 0], sizes = [1, 32], strides = [1, 1]} : vector<1x96xf32> to vector<1x32xf32>
    %409 = vector.broadcast %408 : vector<1x32xf32> to vector<5x32xf32>
    %410 = arith.addf %405, %409 : vector<5x32xf32>
    %411 = arith.addf %356, %410 : vector<5x32xf32>
    %412 = vector.extract_strided_slice %411 {offsets = [1, 0], sizes = [4, 32], strides = [1, 1]} : vector<5x32xf32> to vector<4x32xf32>
    %413 = arith.truncf %412 : vector<4x32xf32> to vector<4x32xbf16>
    %c0_177 = arith.constant 0 : index
    %c0_178 = arith.constant 0 : index
    %414 = vector.load %arg9[%c0_177, %c0_178] : memref<32x64xbf16, #tpu.memory_space<vmem>>, vector<32x64xbf16>
    %cst_179 = arith.constant dense<0.000000e+00> : vector<4x64xf32>
    %415 = tpu.matmul %413, %414, %cst_179 {dimension_numbers = #tpu.dot_dimension_numbers<[1], [0], [0], [1], [0, 0, 1, 1], [], []>} : vector<4x32xbf16>, vector<32x64xbf16>, vector<4x64xf32> -> vector<4x64xf32>
    %c0_180 = arith.constant 0 : index
    %c0_181 = arith.constant 0 : index
    %c0_182 = arith.constant 0 : index
    %416 = vector.load %arg11[%c0_180, %c0_181, %c0_182] : memref<2x1x64xf32, #tpu.memory_space<vmem>>, vector<1x1x64xf32>
    %417 = vector.shape_cast %416 : vector<1x1x64xf32> to vector<1x64xf32>
    %418 = vector.broadcast %417 : vector<1x64xf32> to vector<4x64xf32>
    %419 = arith.addf %415, %418 : vector<4x64xf32>
    %420 = arith.mulf %419, %419 : vector<4x64xf32>
    %421 = arith.mulf %419, %420 : vector<4x64xf32>
    %cst_183 = arith.constant 4.471500e-02 : f32
    %422 = vector.broadcast %cst_183 : f32 to vector<4x64xf32>
    %423 = arith.mulf %422, %421 : vector<4x64xf32>
    %424 = arith.addf %419, %423 : vector<4x64xf32>
    %cst_184 = arith.constant 0.797884583 : f32
    %425 = vector.broadcast %cst_184 : f32 to vector<4x64xf32>
    %426 = arith.mulf %425, %424 : vector<4x64xf32>
    %427 = math.tanh %426 : vector<4x64xf32>
    %cst_185 = arith.constant 1.000000e+00 : f32
    %428 = vector.broadcast %cst_185 : f32 to vector<4x64xf32>
    %429 = arith.addf %428, %427 : vector<4x64xf32>
    %cst_186 = arith.constant 5.000000e-01 : f32
    %430 = vector.broadcast %cst_186 : f32 to vector<4x64xf32>
    %431 = arith.mulf %430, %429 : vector<4x64xf32>
    %432 = arith.mulf %419, %431 : vector<4x64xf32>
    %433 = arith.truncf %432 : vector<4x64xf32> to vector<4x64xbf16>
    %c0_187 = arith.constant 0 : index
    %c0_188 = arith.constant 0 : index
    %434 = vector.load %arg10[%c0_187, %c0_188] : memref<64x64xbf16, #tpu.memory_space<vmem>>, vector<64x64xbf16>
    %cst_189 = arith.constant dense<0.000000e+00> : vector<4x64xf32>
    %435 = tpu.matmul %433, %434, %cst_189 {dimension_numbers = #tpu.dot_dimension_numbers<[1], [0], [0], [1], [0, 0, 1, 1], [], []>} : vector<4x64xbf16>, vector<64x64xbf16>, vector<4x64xf32> -> vector<4x64xf32>
    %c1_190 = arith.constant 1 : index
    %c0_191 = arith.constant 0 : index
    %c0_192 = arith.constant 0 : index
    %436 = vector.load %arg11[%c1_190, %c0_191, %c0_192] : memref<2x1x64xf32, #tpu.memory_space<vmem>>, vector<1x1x64xf32>
    %437 = vector.shape_cast %436 : vector<1x1x64xf32> to vector<1x64xf32>
    %438 = vector.broadcast %437 : vector<1x64xf32> to vector<4x64xf32>
    %439 = arith.addf %435, %438 : vector<4x64xf32>
    %c0_193 = arith.constant 0 : index
    %c0_194 = arith.constant 0 : index
    %440 = vector.load %arg21[%c0_193, %c0_194] : memref<4x64xf32, #tpu.memory_space<vmem>>, vector<4x64xf32>
    tpu.vector_store %arg21[%c0_193, %c0_194], %439 {strides = array<i32>} : memref<4x64xf32, #tpu.memory_space<vmem>>, vector<4x64xf32>,
    %c0_195 = arith.constant 0 : index
    %c16 = arith.constant 16 : index
    %c0_196 = arith.constant 0 : index
    %441 = vector.load %arg18[%c0_195, %c16, %c0_196] : memref<2x64x64xf32, #tpu.memory_space<vmem>>, vector<1x1x8xf32>
    %442 = vector.shape_cast %441 : vector<1x1x8xf32> to vector<1x8xf32>
    %c0_197 = arith.constant 0 : index
    %c17 = arith.constant 17 : index
    %c0_198 = arith.constant 0 : index
    %443 = vector.load %arg18[%c0_197, %c17, %c0_198] : memref<2x64x64xf32, #tpu.memory_space<vmem>>, vector<1x1x8xf32>
    %444 = vector.shape_cast %443 : vector<1x1x8xf32> to vector<1x8xf32>
    %c0_199 = arith.constant 0 : index
    %c24 = arith.constant 24 : index
    %c0_200 = arith.constant 0 : index
    %445 = vector.load %arg18[%c0_199, %c24, %c0_200] : memref<2x64x64xf32, #tpu.memory_space<vmem>>, vector<1x8x1xf32>
    %446 = vector.shape_cast %445 : vector<1x8x1xf32> to vector<8x1xf32>
    %c0_201 = arith.constant 0 : index
    %c32 = arith.constant 32 : index
    %c0_202 = arith.constant 0 : index
    %447 = vector.load %arg18[%c0_201, %c32, %c0_202] : memref<2x64x64xf32, #tpu.memory_space<vmem>>, vector<1x8x1xf32>
    %448 = vector.shape_cast %447 : vector<1x8x1xf32> to vector<8x1xf32>
    %c0_203 = arith.constant 0 : index
    %c0_204 = arith.constant 0 : index
    %c0_205 = arith.constant 0 : index
    %449 = vector.load %arg18[%c0_203, %c0_204, %c0_205] : memref<2x64x64xf32, #tpu.memory_space<vmem>>, vector<1x8x64xf32>
    %450 = vector.shape_cast %449 : vector<1x8x64xf32> to vector<8x64xf32>
    %c0_206 = arith.constant 0 : index
    %c8 = arith.constant 8 : index
    %c0_207 = arith.constant 0 : index
    %451 = vector.load %arg18[%c0_206, %c8, %c0_207] : memref<2x64x64xf32, #tpu.memory_space<vmem>>, vector<1x8x64xf32>
    %452 = vector.shape_cast %451 : vector<1x8x64xf32> to vector<8x64xf32>
    %c1_208 = arith.constant 1 : index
    %c0_209 = arith.constant 0 : index
    %c0_210 = arith.constant 0 : index
    %453 = vector.load %arg18[%c1_208, %c0_209, %c0_210] : memref<2x64x64xf32, #tpu.memory_space<vmem>>, vector<1x64x64xf32>
    %454 = vector.shape_cast %453 : vector<1x64x64xf32> to vector<64x64xf32>
    %455 = arith.fptosi %448 : vector<8x1xf32> to vector<8x1xi32>
    %456 = tpu.iota {dimensions = array<i32: 1>} : vector<8x128xi32>
    %457 = vector.broadcast %455 : vector<8x1xi32> to vector<8x128xi32>
    %458 = arith.cmpi eq, %457, %456 : vector<8x128xi32>
    %459 = arith.extui %458 : vector<8x128xi1> to vector<8x128xi32>
    %460 = arith.sitofp %459 : vector<8x128xi32> to vector<8x128xf32>
    %c0_211 = arith.constant 0 : index
    %c0_212 = arith.constant 0 : index
    %461 = vector.load %arg12[%c0_211, %c0_212] : memref<128x64xf32, #tpu.memory_space<vmem>>, vector<128x64xf32>
    %cst_213 = arith.constant dense<0.000000e+00> : vector<8x64xf32>
    %462 = tpu.matmul %460, %461, %cst_213 {dimension_numbers = #tpu.dot_dimension_numbers<[1], [0], [0], [1], [0, 0, 1, 1], [], []>} : vector<8x128xf32>, vector<128x64xf32>, vector<8x64xf32> -> vector<8x64xf32>
    %c32_i32 = arith.constant 32 : i32
    %463 = vector.broadcast %c32_i32 : i32 to vector<8x1xi32>
    %464 = arith.cmpi eq, %455, %463 : vector<8x1xi32>
    %465 = arith.extui %464 : vector<8x1xi1> to vector<8x1xi32>
    %466 = arith.sitofp %465 : vector<8x1xi32> to vector<8x1xf32>
    %467 = tpu.iota {dimensions = array<i32: 0>} : vector<8x8xi32>
    %468 = tpu.iota {dimensions = array<i32: 1>} : vector<8x8xi32>
    %469 = arith.cmpi sle, %468, %467 : vector<8x8xi32>
    %470 = arith.extui %469 : vector<8x8xi1> to vector<8x8xi32>
    %471 = arith.sitofp %470 : vector<8x8xi32> to vector<8x8xf32>
    %472 = arith.fptosi %444 : vector<1x8xf32> to vector<1x8xi32>
    %c32_i32_214 = arith.constant 32 : i32
    %473 = vector.broadcast %c32_i32_214 : i32 to vector<1x8xi32>
    %474 = arith.cmpi eq, %472, %473 : vector<1x8xi32>
    %475 = arith.extui %474 : vector<1x8xi1> to vector<1x8xi32>
    %476 = arith.sitofp %475 : vector<1x8xi32> to vector<1x8xf32>
    %477 = vector.broadcast %476 : vector<1x8xf32> to vector<8x8xf32>
    %478 = arith.mulf %471, %477 : vector<8x8xf32>
    %cst_215 = arith.constant dense<0.000000e+00> : vector<8xf32>
    %479 = vector.multi_reduction <add>, %478, %cst_215 [1] : vector<8x8xf32> to vector<8xf32>
    %480 = vector.shape_cast %479 : vector<8xf32> to vector<8x1xf32>
    %cst_216 = arith.constant 1.000000e+00 : f32
    %481 = vector.broadcast %cst_216 : f32 to vector<8x1xf32>
    %482 = arith.subf %480, %481 : vector<8x1xf32>
    %483 = tpu.iota {dimensions = array<i32: 1>} : vector<8x4xi32>
    %484 = arith.fptosi %482 : vector<8x1xf32> to vector<8x1xi32>
    %485 = vector.broadcast %484 : vector<8x1xi32> to vector<8x4xi32>
    %486 = arith.cmpi eq, %485, %483 : vector<8x4xi32>
    %487 = vector.broadcast %464 : vector<8x1xi1> to vector<8x4xi1>
    %488 = arith.andi %487, %486 : vector<8x4xi1>
    %489 = arith.extui %488 : vector<8x4xi1> to vector<8x4xi32>
    %490 = arith.sitofp %489 : vector<8x4xi32> to vector<8x4xf32>
    %c0_217 = arith.constant 0 : index
    %c0_218 = arith.constant 0 : index
    %491 = vector.load %arg21[%c0_217, %c0_218] : memref<4x64xf32, #tpu.memory_space<vmem>>, vector<4x64xf32>
    %cst_219 = arith.constant dense<0.000000e+00> : vector<8x64xf32>
    %492 = tpu.matmul %490, %491, %cst_219 {dimension_numbers = #tpu.dot_dimension_numbers<[1], [0], [0], [1], [0, 0, 1, 1], [], []>} : vector<8x4xf32>, vector<4x64xf32>, vector<8x64xf32> -> vector<8x64xf32>
    %cst_220 = arith.constant 1.000000e+00 : f32
    %493 = vector.broadcast %cst_220 : f32 to vector<8x1xf32>
    %494 = arith.subf %493, %466 : vector<8x1xf32>
    %495 = vector.broadcast %494 : vector<8x1xf32> to vector<8x64xf32>
    %496 = arith.mulf %462, %495 : vector<8x64xf32>
    %497 = arith.addf %496, %492 : vector<8x64xf32>
    %498 = vector.broadcast %446 : vector<8x1xf32> to vector<8x8xf32>
    %499 = vector.broadcast %442 : vector<1x8xf32> to vector<8x8xf32>
    %500 = arith.cmpf oge, %498, %499 : vector<8x8xf32>
    %c0_221 = arith.constant 0 : index
    %c0_222 = arith.constant 0 : index
    %c0_223 = arith.constant 0 : index
    %501 = vector.load %arg13[%c0_221, %c0_222, %c0_223] : memref<5x1x64xf32, #tpu.memory_space<vmem>>, vector<1x1x64xf32>
    %502 = vector.shape_cast %501 : vector<1x1x64xf32> to vector<1x64xf32>
    %503 = arith.mulf %497, %497 : vector<8x64xf32>
    %cst_224 = arith.constant dense<0.000000e+00> : vector<8xf32>
    %504 = vector.multi_reduction <add>, %503, %cst_224 [1] : vector<8x64xf32> to vector<8xf32>
    %505 = vector.shape_cast %504 : vector<8xf32> to vector<8x1xf32>
    %cst_225 = arith.constant 6.400000e+01 : f32
    %506 = vector.broadcast %cst_225 : f32 to vector<8x1xf32>
    %507 = arith.divf %505, %506 : vector<8x1xf32>
    %cst_226 = arith.constant 9.99999997E-7 : f32
    %508 = vector.broadcast %cst_226 : f32 to vector<8x1xf32>
    %509 = arith.addf %507, %508 : vector<8x1xf32>
    %510 = math.rsqrt %509 : vector<8x1xf32>
    %511 = vector.broadcast %510 : vector<8x1xf32> to vector<8x64xf32>
    %512 = arith.mulf %497, %511 : vector<8x64xf32>
    %513 = vector.broadcast %502 : vector<1x64xf32> to vector<8x64xf32>
    %514 = arith.mulf %512, %513 : vector<8x64xf32>
    %515 = arith.truncf %514 : vector<8x64xf32> to vector<8x64xbf16>
    %c0_227 = arith.constant 0 : index
    %c0_228 = arith.constant 0 : index
    %c0_229 = arith.constant 0 : index
    %516 = vector.load %arg14[%c0_227, %c0_228, %c0_229] : memref<2x64x192xbf16, #tpu.memory_space<vmem>>, vector<1x64x192xbf16>
    %517 = vector.shape_cast %516 : vector<1x64x192xbf16> to vector<64x192xbf16>
    %cst_230 = arith.constant dense<0.000000e+00> : vector<8x192xf32>
    %518 = tpu.matmul %515, %517, %cst_230 {dimension_numbers = #tpu.dot_dimension_numbers<[1], [0], [0], [1], [0, 0, 1, 1], [], []>} : vector<8x64xbf16>, vector<64x192xbf16>, vector<8x192xf32> -> vector<8x192xf32>
    %519 = vector.extract_strided_slice %518 {offsets = [0, 0], sizes = [8, 64], strides = [1, 1]} : vector<8x192xf32> to vector<8x64xf32>
    %520 = vector.extract_strided_slice %518 {offsets = [0, 64], sizes = [8, 64], strides = [1, 1]} : vector<8x192xf32> to vector<8x64xf32>
    %521 = vector.extract_strided_slice %518 {offsets = [0, 128], sizes = [8, 64], strides = [1, 1]} : vector<8x192xf32> to vector<8x64xf32>
    %522 = arith.mulf %519, %450 : vector<8x64xf32>
    %cst_231 = arith.constant dense<0.000000e+00> : vector<8x64xf32>
    %523 = tpu.matmul %519, %454, %cst_231 {dimension_numbers = #tpu.dot_dimension_numbers<[1], [0], [0], [1], [0, 0, 1, 1], [], []>} : vector<8x64xf32>, vector<64x64xf32>, vector<8x64xf32> -> vector<8x64xf32>
    %524 = arith.mulf %523, %452 : vector<8x64xf32>
    %525 = arith.addf %522, %524 : vector<8x64xf32>
    %526 = arith.mulf %520, %450 : vector<8x64xf32>
    %cst_232 = arith.constant dense<0.000000e+00> : vector<8x64xf32>
    %527 = tpu.matmul %520, %454, %cst_232 {dimension_numbers = #tpu.dot_dimension_numbers<[1], [0], [0], [1], [0, 0, 1, 1], [], []>} : vector<8x64xf32>, vector<64x64xf32>, vector<8x64xf32> -> vector<8x64xf32>
    %528 = arith.mulf %527, %452 : vector<8x64xf32>
    %529 = arith.addf %526, %528 : vector<8x64xf32>
    %530 = vector.extract_strided_slice %525 {offsets = [0, 0], sizes = [8, 16], strides = [1, 1]} : vector<8x64xf32> to vector<8x16xf32>
    %531 = vector.extract_strided_slice %529 {offsets = [0, 0], sizes = [8, 16], strides = [1, 1]} : vector<8x64xf32> to vector<8x16xf32>
    %532 = vector.extract_strided_slice %521 {offsets = [0, 0], sizes = [8, 16], strides = [1, 1]} : vector<8x64xf32> to vector<8x16xf32>
    %533 = arith.truncf %530 : vector<8x16xf32> to vector<8x16xbf16>
    %534 = arith.truncf %531 : vector<8x16xf32> to vector<8x16xbf16>
    %cst_233 = arith.constant dense<0.000000e+00> : vector<8x8xf32>
    %535 = tpu.matmul %533, %534, %cst_233 {dimension_numbers = #tpu.dot_dimension_numbers<[1], [1], [0], [0], [0, 0, 1, 0], [], []>} : vector<8x16xbf16>, vector<8x16xbf16>, vector<8x8xf32> -> vector<8x8xf32>
    %cst_234 = arith.constant 2.500000e-01 : f32
    %536 = vector.broadcast %cst_234 : f32 to vector<8x8xf32>
    %537 = arith.mulf %535, %536 : vector<8x8xf32>
    %cst_235 = arith.constant -1.000000e+30 : f32
    %538 = vector.broadcast %cst_235 : f32 to vector<8x8xf32>
    %539 = arith.select %500, %537, %538 : vector<8x8xi1>, vector<8x8xf32>
    %cst_236 = arith.constant dense<0xFF800000> : vector<8xf32>
    %540 = vector.multi_reduction <maximumf>, %539, %cst_236 [1] : vector<8x8xf32> to vector<8xf32>
    %541 = vector.shape_cast %540 : vector<8xf32> to vector<8x1xf32>
    %542 = vector.broadcast %541 : vector<8x1xf32> to vector<8x8xf32>
    %543 = arith.subf %539, %542 : vector<8x8xf32>
    %544 = math.exp %543 : vector<8x8xf32>
    %cst_237 = arith.constant dense<0.000000e+00> : vector<8xf32>
    %545 = vector.multi_reduction <add>, %544, %cst_237 [1] : vector<8x8xf32> to vector<8xf32>
    %546 = vector.shape_cast %545 : vector<8xf32> to vector<8x1xf32>
    %547 = tpu.reciprocal %546 {approx = true} : vector<8x1xf32> -> vector<8x1xf32>
    %548 = vector.broadcast %547 : vector<8x1xf32> to vector<8x8xf32>
    %549 = arith.mulf %544, %548 : vector<8x8xf32>
    %550 = arith.truncf %549 : vector<8x8xf32> to vector<8x8xbf16>
    %551 = arith.truncf %532 : vector<8x16xf32> to vector<8x16xbf16>
    %cst_238 = arith.constant dense<0.000000e+00> : vector<8x16xf32>
    %552 = tpu.matmul %550, %551, %cst_238 {dimension_numbers = #tpu.dot_dimension_numbers<[1], [0], [0], [1], [0, 0, 1, 1], [], []>} : vector<8x8xbf16>, vector<8x16xbf16>, vector<8x16xf32> -> vector<8x16xf32>
    %553 = vector.extract_strided_slice %525 {offsets = [0, 16], sizes = [8, 16], strides = [1, 1]} : vector<8x64xf32> to vector<8x16xf32>
    %554 = vector.extract_strided_slice %529 {offsets = [0, 16], sizes = [8, 16], strides = [1, 1]} : vector<8x64xf32> to vector<8x16xf32>
    %555 = vector.extract_strided_slice %521 {offsets = [0, 16], sizes = [8, 16], strides = [1, 1]} : vector<8x64xf32> to vector<8x16xf32>
    %556 = arith.truncf %553 : vector<8x16xf32> to vector<8x16xbf16>
    %557 = arith.truncf %554 : vector<8x16xf32> to vector<8x16xbf16>
    %cst_239 = arith.constant dense<0.000000e+00> : vector<8x8xf32>
    %558 = tpu.matmul %556, %557, %cst_239 {dimension_numbers = #tpu.dot_dimension_numbers<[1], [1], [0], [0], [0, 0, 1, 0], [], []>} : vector<8x16xbf16>, vector<8x16xbf16>, vector<8x8xf32> -> vector<8x8xf32>
    %cst_240 = arith.constant 2.500000e-01 : f32
    %559 = vector.broadcast %cst_240 : f32 to vector<8x8xf32>
    %560 = arith.mulf %558, %559 : vector<8x8xf32>
    %cst_241 = arith.constant -1.000000e+30 : f32
    %561 = vector.broadcast %cst_241 : f32 to vector<8x8xf32>
    %562 = arith.select %500, %560, %561 : vector<8x8xi1>, vector<8x8xf32>
    %cst_242 = arith.constant dense<0xFF800000> : vector<8xf32>
    %563 = vector.multi_reduction <maximumf>, %562, %cst_242 [1] : vector<8x8xf32> to vector<8xf32>
    %564 = vector.shape_cast %563 : vector<8xf32> to vector<8x1xf32>
    %565 = vector.broadcast %564 : vector<8x1xf32> to vector<8x8xf32>
    %566 = arith.subf %562, %565 : vector<8x8xf32>
    %567 = math.exp %566 : vector<8x8xf32>
    %cst_243 = arith.constant dense<0.000000e+00> : vector<8xf32>
    %568 = vector.multi_reduction <add>, %567, %cst_243 [1] : vector<8x8xf32> to vector<8xf32>
    %569 = vector.shape_cast %568 : vector<8xf32> to vector<8x1xf32>
    %570 = tpu.reciprocal %569 {approx = true} : vector<8x1xf32> -> vector<8x1xf32>
    %571 = vector.broadcast %570 : vector<8x1xf32> to vector<8x8xf32>
    %572 = arith.mulf %567, %571 : vector<8x8xf32>
    %573 = arith.truncf %572 : vector<8x8xf32> to vector<8x8xbf16>
    %574 = arith.truncf %555 : vector<8x16xf32> to vector<8x16xbf16>
    %cst_244 = arith.constant dense<0.000000e+00> : vector<8x16xf32>
    %575 = tpu.matmul %573, %574, %cst_244 {dimension_numbers = #tpu.dot_dimension_numbers<[1], [0], [0], [1], [0, 0, 1, 1], [], []>} : vector<8x8xbf16>, vector<8x16xbf16>, vector<8x16xf32> -> vector<8x16xf32>
    %576 = vector.extract_strided_slice %525 {offsets = [0, 32], sizes = [8, 16], strides = [1, 1]} : vector<8x64xf32> to vector<8x16xf32>
    %577 = vector.extract_strided_slice %529 {offsets = [0, 32], sizes = [8, 16], strides = [1, 1]} : vector<8x64xf32> to vector<8x16xf32>
    %578 = vector.extract_strided_slice %521 {offsets = [0, 32], sizes = [8, 16], strides = [1, 1]} : vector<8x64xf32> to vector<8x16xf32>
    %579 = arith.truncf %576 : vector<8x16xf32> to vector<8x16xbf16>
    %580 = arith.truncf %577 : vector<8x16xf32> to vector<8x16xbf16>
    %cst_245 = arith.constant dense<0.000000e+00> : vector<8x8xf32>
    %581 = tpu.matmul %579, %580, %cst_245 {dimension_numbers = #tpu.dot_dimension_numbers<[1], [1], [0], [0], [0, 0, 1, 0], [], []>} : vector<8x16xbf16>, vector<8x16xbf16>, vector<8x8xf32> -> vector<8x8xf32>
    %cst_246 = arith.constant 2.500000e-01 : f32
    %582 = vector.broadcast %cst_246 : f32 to vector<8x8xf32>
    %583 = arith.mulf %581, %582 : vector<8x8xf32>
    %cst_247 = arith.constant -1.000000e+30 : f32
    %584 = vector.broadcast %cst_247 : f32 to vector<8x8xf32>
    %585 = arith.select %500, %583, %584 : vector<8x8xi1>, vector<8x8xf32>
    %cst_248 = arith.constant dense<0xFF800000> : vector<8xf32>
    %586 = vector.multi_reduction <maximumf>, %585, %cst_248 [1] : vector<8x8xf32> to vector<8xf32>
    %587 = vector.shape_cast %586 : vector<8xf32> to vector<8x1xf32>
    %588 = vector.broadcast %587 : vector<8x1xf32> to vector<8x8xf32>
    %589 = arith.subf %585, %588 : vector<8x8xf32>
    %590 = math.exp %589 : vector<8x8xf32>
    %cst_249 = arith.constant dense<0.000000e+00> : vector<8xf32>
    %591 = vector.multi_reduction <add>, %590, %cst_249 [1] : vector<8x8xf32> to vector<8xf32>
    %592 = vector.shape_cast %591 : vector<8xf32> to vector<8x1xf32>
    %593 = tpu.reciprocal %592 {approx = true} : vector<8x1xf32> -> vector<8x1xf32>
    %594 = vector.broadcast %593 : vector<8x1xf32> to vector<8x8xf32>
    %595 = arith.mulf %590, %594 : vector<8x8xf32>
    %596 = arith.truncf %595 : vector<8x8xf32> to vector<8x8xbf16>
    %597 = arith.truncf %578 : vector<8x16xf32> to vector<8x16xbf16>
    %cst_250 = arith.constant dense<0.000000e+00> : vector<8x16xf32>
    %598 = tpu.matmul %596, %597, %cst_250 {dimension_numbers = #tpu.dot_dimension_numbers<[1], [0], [0], [1], [0, 0, 1, 1], [], []>} : vector<8x8xbf16>, vector<8x16xbf16>, vector<8x16xf32> -> vector<8x16xf32>
    %599 = vector.extract_strided_slice %525 {offsets = [0, 48], sizes = [8, 16], strides = [1, 1]} : vector<8x64xf32> to vector<8x16xf32>
    %600 = vector.extract_strided_slice %529 {offsets = [0, 48], sizes = [8, 16], strides = [1, 1]} : vector<8x64xf32> to vector<8x16xf32>
    %601 = vector.extract_strided_slice %521 {offsets = [0, 48], sizes = [8, 16], strides = [1, 1]} : vector<8x64xf32> to vector<8x16xf32>
    %602 = arith.truncf %599 : vector<8x16xf32> to vector<8x16xbf16>
    %603 = arith.truncf %600 : vector<8x16xf32> to vector<8x16xbf16>
    %cst_251 = arith.constant dense<0.000000e+00> : vector<8x8xf32>
    %604 = tpu.matmul %602, %603, %cst_251 {dimension_numbers = #tpu.dot_dimension_numbers<[1], [1], [0], [0], [0, 0, 1, 0], [], []>} : vector<8x16xbf16>, vector<8x16xbf16>, vector<8x8xf32> -> vector<8x8xf32>
    %cst_252 = arith.constant 2.500000e-01 : f32
    %605 = vector.broadcast %cst_252 : f32 to vector<8x8xf32>
    %606 = arith.mulf %604, %605 : vector<8x8xf32>
    %cst_253 = arith.constant -1.000000e+30 : f32
    %607 = vector.broadcast %cst_253 : f32 to vector<8x8xf32>
    %608 = arith.select %500, %606, %607 : vector<8x8xi1>, vector<8x8xf32>
    %cst_254 = arith.constant dense<0xFF800000> : vector<8xf32>
    %609 = vector.multi_reduction <maximumf>, %608, %cst_254 [1] : vector<8x8xf32> to vector<8xf32>
    %610 = vector.shape_cast %609 : vector<8xf32> to vector<8x1xf32>
    %611 = vector.broadcast %610 : vector<8x1xf32> to vector<8x8xf32>
    %612 = arith.subf %608, %611 : vector<8x8xf32>
    %613 = math.exp %612 : vector<8x8xf32>
    %cst_255 = arith.constant dense<0.000000e+00> : vector<8xf32>
    %614 = vector.multi_reduction <add>, %613, %cst_255 [1] : vector<8x8xf32> to vector<8xf32>
    %615 = vector.shape_cast %614 : vector<8xf32> to vector<8x1xf32>
    %616 = tpu.reciprocal %615 {approx = true} : vector<8x1xf32> -> vector<8x1xf32>
    %617 = vector.broadcast %616 : vector<8x1xf32> to vector<8x8xf32>
    %618 = arith.mulf %613, %617 : vector<8x8xf32>
    %619 = arith.truncf %618 : vector<8x8xf32> to vector<8x8xbf16>
    %620 = arith.truncf %601 : vector<8x16xf32> to vector<8x16xbf16>
    %cst_256 = arith.constant dense<0.000000e+00> : vector<8x16xf32>
    %621 = tpu.matmul %619, %620, %cst_256 {dimension_numbers = #tpu.dot_dimension_numbers<[1], [0], [0], [1], [0, 0, 1, 1], [], []>} : vector<8x8xbf16>, vector<8x16xbf16>, vector<8x16xf32> -> vector<8x16xf32>
    %622 = tpu.concatenate %552, %575, %598, %621 in 1 : vector<8x16xf32>, vector<8x16xf32>, vector<8x16xf32>, vector<8x16xf32> -> vector<8x64xf32>
    %623 = arith.truncf %622 : vector<8x64xf32> to vector<8x64xbf16>
    %c0_257 = arith.constant 0 : index
    %c0_258 = arith.constant 0 : index
    %c0_259 = arith.constant 0 : index
    %624 = vector.load %arg15[%c0_257, %c0_258, %c0_259] : memref<2x64x64xbf16, #tpu.memory_space<vmem>>, vector<1x64x64xbf16>
    %625 = vector.shape_cast %624 : vector<1x64x64xbf16> to vector<64x64xbf16>
    %cst_260 = arith.constant dense<0.000000e+00> : vector<8x64xf32>
    %626 = tpu.matmul %623, %625, %cst_260 {dimension_numbers = #tpu.dot_dimension_numbers<[1], [0], [0], [1], [0, 0, 1, 1], [], []>} : vector<8x64xbf16>, vector<64x64xbf16>, vector<8x64xf32> -> vector<8x64xf32>
    %627 = arith.addf %497, %626 : vector<8x64xf32>
    %c1_261 = arith.constant 1 : index
    %c0_262 = arith.constant 0 : index
    %c0_263 = arith.constant 0 : index
    %628 = vector.load %arg13[%c1_261, %c0_262, %c0_263] : memref<5x1x64xf32, #tpu.memory_space<vmem>>, vector<1x1x64xf32>
    %629 = vector.shape_cast %628 : vector<1x1x64xf32> to vector<1x64xf32>
    %630 = arith.mulf %627, %627 : vector<8x64xf32>
    %cst_264 = arith.constant dense<0.000000e+00> : vector<8xf32>
    %631 = vector.multi_reduction <add>, %630, %cst_264 [1] : vector<8x64xf32> to vector<8xf32>
    %632 = vector.shape_cast %631 : vector<8xf32> to vector<8x1xf32>
    %cst_265 = arith.constant 6.400000e+01 : f32
    %633 = vector.broadcast %cst_265 : f32 to vector<8x1xf32>
    %634 = arith.divf %632, %633 : vector<8x1xf32>
    %cst_266 = arith.constant 9.99999997E-7 : f32
    %635 = vector.broadcast %cst_266 : f32 to vector<8x1xf32>
    %636 = arith.addf %634, %635 : vector<8x1xf32>
    %637 = math.rsqrt %636 : vector<8x1xf32>
    %638 = vector.broadcast %637 : vector<8x1xf32> to vector<8x64xf32>
    %639 = arith.mulf %627, %638 : vector<8x64xf32>
    %640 = vector.broadcast %629 : vector<1x64xf32> to vector<8x64xf32>
    %641 = arith.mulf %639, %640 : vector<8x64xf32>
    %642 = arith.truncf %641 : vector<8x64xf32> to vector<8x64xbf16>
    %c0_267 = arith.constant 0 : index
    %c0_268 = arith.constant 0 : index
    %c0_269 = arith.constant 0 : index
    %643 = vector.load %arg16[%c0_267, %c0_268, %c0_269] : memref<2x64x256xbf16, #tpu.memory_space<vmem>>, vector<1x64x256xbf16>
    %644 = vector.shape_cast %643 : vector<1x64x256xbf16> to vector<64x256xbf16>
    %cst_270 = arith.constant dense<0.000000e+00> : vector<8x256xf32>
    %645 = tpu.matmul %642, %644, %cst_270 {dimension_numbers = #tpu.dot_dimension_numbers<[1], [0], [0], [1], [0, 0, 1, 1], [], []>} : vector<8x64xbf16>, vector<64x256xbf16>, vector<8x256xf32> -> vector<8x256xf32>
    %646 = vector.extract_strided_slice %645 {offsets = [0, 0], sizes = [8, 128], strides = [1, 1]} : vector<8x256xf32> to vector<8x128xf32>
    %647 = vector.extract_strided_slice %645 {offsets = [0, 128], sizes = [8, 128], strides = [1, 1]} : vector<8x256xf32> to vector<8x128xf32>
    %648 = arith.negf %646 : vector<8x128xf32>
    %649 = math.exp %648 : vector<8x128xf32>
    %cst_271 = arith.constant 1.000000e+00 : f32
    %650 = vector.broadcast %cst_271 : f32 to vector<8x128xf32>
    %651 = arith.addf %650, %649 : vector<8x128xf32>
    %652 = arith.divf %650, %651 : vector<8x128xf32>
    %653 = arith.mulf %646, %652 : vector<8x128xf32>
    %654 = arith.mulf %653, %647 : vector<8x128xf32>
    %655 = arith.truncf %654 : vector<8x128xf32> to vector<8x128xbf16>
    %c0_272 = arith.constant 0 : index
    %c0_273 = arith.constant 0 : index
    %c0_274 = arith.constant 0 : index
    %656 = vector.load %arg17[%c0_272, %c0_273, %c0_274] : memref<2x128x64xbf16, #tpu.memory_space<vmem>>, vector<1x128x64xbf16>
    %657 = vector.shape_cast %656 : vector<1x128x64xbf16> to vector<128x64xbf16>
    %cst_275 = arith.constant dense<0.000000e+00> : vector<8x64xf32>
    %658 = tpu.matmul %655, %657, %cst_275 {dimension_numbers = #tpu.dot_dimension_numbers<[1], [0], [0], [1], [0, 0, 1, 1], [], []>} : vector<8x128xbf16>, vector<128x64xbf16>, vector<8x64xf32> -> vector<8x64xf32>
    %659 = arith.addf %627, %658 : vector<8x64xf32>
    %c2_276 = arith.constant 2 : index
    %c0_277 = arith.constant 0 : index
    %c0_278 = arith.constant 0 : index
    %660 = vector.load %arg13[%c2_276, %c0_277, %c0_278] : memref<5x1x64xf32, #tpu.memory_space<vmem>>, vector<1x1x64xf32>
    %661 = vector.shape_cast %660 : vector<1x1x64xf32> to vector<1x64xf32>
    %662 = arith.mulf %659, %659 : vector<8x64xf32>
    %cst_279 = arith.constant dense<0.000000e+00> : vector<8xf32>
    %663 = vector.multi_reduction <add>, %662, %cst_279 [1] : vector<8x64xf32> to vector<8xf32>
    %664 = vector.shape_cast %663 : vector<8xf32> to vector<8x1xf32>
    %cst_280 = arith.constant 6.400000e+01 : f32
    %665 = vector.broadcast %cst_280 : f32 to vector<8x1xf32>
    %666 = arith.divf %664, %665 : vector<8x1xf32>
    %cst_281 = arith.constant 9.99999997E-7 : f32
    %667 = vector.broadcast %cst_281 : f32 to vector<8x1xf32>
    %668 = arith.addf %666, %667 : vector<8x1xf32>
    %669 = math.rsqrt %668 : vector<8x1xf32>
    %670 = vector.broadcast %669 : vector<8x1xf32> to vector<8x64xf32>
    %671 = arith.mulf %659, %670 : vector<8x64xf32>
    %672 = vector.broadcast %661 : vector<1x64xf32> to vector<8x64xf32>
    %673 = arith.mulf %671, %672 : vector<8x64xf32>
    %674 = arith.truncf %673 : vector<8x64xf32> to vector<8x64xbf16>
    %c1_282 = arith.constant 1 : index
    %c0_283 = arith.constant 0 : index
    %c0_284 = arith.constant 0 : index
    %675 = vector.load %arg14[%c1_282, %c0_283, %c0_284] : memref<2x64x192xbf16, #tpu.memory_space<vmem>>, vector<1x64x192xbf16>
    %676 = vector.shape_cast %675 : vector<1x64x192xbf16> to vector<64x192xbf16>
    %cst_285 = arith.constant dense<0.000000e+00> : vector<8x192xf32>
    %677 = tpu.matmul %674, %676, %cst_285 {dimension_numbers = #tpu.dot_dimension_numbers<[1], [0], [0], [1], [0, 0, 1, 1], [], []>} : vector<8x64xbf16>, vector<64x192xbf16>, vector<8x192xf32> -> vector<8x192xf32>
    %678 = vector.extract_strided_slice %677 {offsets = [0, 0], sizes = [8, 64], strides = [1, 1]} : vector<8x192xf32> to vector<8x64xf32>
    %679 = vector.extract_strided_slice %677 {offsets = [0, 64], sizes = [8, 64], strides = [1, 1]} : vector<8x192xf32> to vector<8x64xf32>
    %680 = vector.extract_strided_slice %677 {offsets = [0, 128], sizes = [8, 64], strides = [1, 1]} : vector<8x192xf32> to vector<8x64xf32>
    %681 = arith.mulf %678, %450 : vector<8x64xf32>
    %cst_286 = arith.constant dense<0.000000e+00> : vector<8x64xf32>
    %682 = tpu.matmul %678, %454, %cst_286 {dimension_numbers = #tpu.dot_dimension_numbers<[1], [0], [0], [1], [0, 0, 1, 1], [], []>} : vector<8x64xf32>, vector<64x64xf32>, vector<8x64xf32> -> vector<8x64xf32>
    %683 = arith.mulf %682, %452 : vector<8x64xf32>
    %684 = arith.addf %681, %683 : vector<8x64xf32>
    %685 = arith.mulf %679, %450 : vector<8x64xf32>
    %cst_287 = arith.constant dense<0.000000e+00> : vector<8x64xf32>
    %686 = tpu.matmul %679, %454, %cst_287 {dimension_numbers = #tpu.dot_dimension_numbers<[1], [0], [0], [1], [0, 0, 1, 1], [], []>} : vector<8x64xf32>, vector<64x64xf32>, vector<8x64xf32> -> vector<8x64xf32>
    %687 = arith.mulf %686, %452 : vector<8x64xf32>
    %688 = arith.addf %685, %687 : vector<8x64xf32>
    %689 = vector.extract_strided_slice %684 {offsets = [0, 0], sizes = [8, 16], strides = [1, 1]} : vector<8x64xf32> to vector<8x16xf32>
    %690 = vector.extract_strided_slice %688 {offsets = [0, 0], sizes = [8, 16], strides = [1, 1]} : vector<8x64xf32> to vector<8x16xf32>
    %691 = vector.extract_strided_slice %680 {offsets = [0, 0], sizes = [8, 16], strides = [1, 1]} : vector<8x64xf32> to vector<8x16xf32>
    %692 = arith.truncf %689 : vector<8x16xf32> to vector<8x16xbf16>
    %693 = arith.truncf %690 : vector<8x16xf32> to vector<8x16xbf16>
    %cst_288 = arith.constant dense<0.000000e+00> : vector<8x8xf32>
    %694 = tpu.matmul %692, %693, %cst_288 {dimension_numbers = #tpu.dot_dimension_numbers<[1], [1], [0], [0], [0, 0, 1, 0], [], []>} : vector<8x16xbf16>, vector<8x16xbf16>, vector<8x8xf32> -> vector<8x8xf32>
    %cst_289 = arith.constant 2.500000e-01 : f32
    %695 = vector.broadcast %cst_289 : f32 to vector<8x8xf32>
    %696 = arith.mulf %694, %695 : vector<8x8xf32>
    %cst_290 = arith.constant -1.000000e+30 : f32
    %697 = vector.broadcast %cst_290 : f32 to vector<8x8xf32>
    %698 = arith.select %500, %696, %697 : vector<8x8xi1>, vector<8x8xf32>
    %cst_291 = arith.constant dense<0xFF800000> : vector<8xf32>
    %699 = vector.multi_reduction <maximumf>, %698, %cst_291 [1] : vector<8x8xf32> to vector<8xf32>
    %700 = vector.shape_cast %699 : vector<8xf32> to vector<8x1xf32>
    %701 = vector.broadcast %700 : vector<8x1xf32> to vector<8x8xf32>
    %702 = arith.subf %698, %701 : vector<8x8xf32>
    %703 = math.exp %702 : vector<8x8xf32>
    %cst_292 = arith.constant dense<0.000000e+00> : vector<8xf32>
    %704 = vector.multi_reduction <add>, %703, %cst_292 [1] : vector<8x8xf32> to vector<8xf32>
    %705 = vector.shape_cast %704 : vector<8xf32> to vector<8x1xf32>
    %706 = tpu.reciprocal %705 {approx = true} : vector<8x1xf32> -> vector<8x1xf32>
    %707 = vector.broadcast %706 : vector<8x1xf32> to vector<8x8xf32>
    %708 = arith.mulf %703, %707 : vector<8x8xf32>
    %709 = arith.truncf %708 : vector<8x8xf32> to vector<8x8xbf16>
    %710 = arith.truncf %691 : vector<8x16xf32> to vector<8x16xbf16>
    %cst_293 = arith.constant dense<0.000000e+00> : vector<8x16xf32>
    %711 = tpu.matmul %709, %710, %cst_293 {dimension_numbers = #tpu.dot_dimension_numbers<[1], [0], [0], [1], [0, 0, 1, 1], [], []>} : vector<8x8xbf16>, vector<8x16xbf16>, vector<8x16xf32> -> vector<8x16xf32>
    %712 = vector.extract_strided_slice %684 {offsets = [0, 16], sizes = [8, 16], strides = [1, 1]} : vector<8x64xf32> to vector<8x16xf32>
    %713 = vector.extract_strided_slice %688 {offsets = [0, 16], sizes = [8, 16], strides = [1, 1]} : vector<8x64xf32> to vector<8x16xf32>
    %714 = vector.extract_strided_slice %680 {offsets = [0, 16], sizes = [8, 16], strides = [1, 1]} : vector<8x64xf32> to vector<8x16xf32>
    %715 = arith.truncf %712 : vector<8x16xf32> to vector<8x16xbf16>
    %716 = arith.truncf %713 : vector<8x16xf32> to vector<8x16xbf16>
    %cst_294 = arith.constant dense<0.000000e+00> : vector<8x8xf32>
    %717 = tpu.matmul %715, %716, %cst_294 {dimension_numbers = #tpu.dot_dimension_numbers<[1], [1], [0], [0], [0, 0, 1, 0], [], []>} : vector<8x16xbf16>, vector<8x16xbf16>, vector<8x8xf32> -> vector<8x8xf32>
    %cst_295 = arith.constant 2.500000e-01 : f32
    %718 = vector.broadcast %cst_295 : f32 to vector<8x8xf32>
    %719 = arith.mulf %717, %718 : vector<8x8xf32>
    %cst_296 = arith.constant -1.000000e+30 : f32
    %720 = vector.broadcast %cst_296 : f32 to vector<8x8xf32>
    %721 = arith.select %500, %719, %720 : vector<8x8xi1>, vector<8x8xf32>
    %cst_297 = arith.constant dense<0xFF800000> : vector<8xf32>
    %722 = vector.multi_reduction <maximumf>, %721, %cst_297 [1] : vector<8x8xf32> to vector<8xf32>
    %723 = vector.shape_cast %722 : vector<8xf32> to vector<8x1xf32>
    %724 = vector.broadcast %723 : vector<8x1xf32> to vector<8x8xf32>
    %725 = arith.subf %721, %724 : vector<8x8xf32>
    %726 = math.exp %725 : vector<8x8xf32>
    %cst_298 = arith.constant dense<0.000000e+00> : vector<8xf32>
    %727 = vector.multi_reduction <add>, %726, %cst_298 [1] : vector<8x8xf32> to vector<8xf32>
    %728 = vector.shape_cast %727 : vector<8xf32> to vector<8x1xf32>
    %729 = tpu.reciprocal %728 {approx = true} : vector<8x1xf32> -> vector<8x1xf32>
    %730 = vector.broadcast %729 : vector<8x1xf32> to vector<8x8xf32>
    %731 = arith.mulf %726, %730 : vector<8x8xf32>
    %732 = arith.truncf %731 : vector<8x8xf32> to vector<8x8xbf16>
    %733 = arith.truncf %714 : vector<8x16xf32> to vector<8x16xbf16>
    %cst_299 = arith.constant dense<0.000000e+00> : vector<8x16xf32>
    %734 = tpu.matmul %732, %733, %cst_299 {dimension_numbers = #tpu.dot_dimension_numbers<[1], [0], [0], [1], [0, 0, 1, 1], [], []>} : vector<8x8xbf16>, vector<8x16xbf16>, vector<8x16xf32> -> vector<8x16xf32>
    %735 = vector.extract_strided_slice %684 {offsets = [0, 32], sizes = [8, 16], strides = [1, 1]} : vector<8x64xf32> to vector<8x16xf32>
    %736 = vector.extract_strided_slice %688 {offsets = [0, 32], sizes = [8, 16], strides = [1, 1]} : vector<8x64xf32> to vector<8x16xf32>
    %737 = vector.extract_strided_slice %680 {offsets = [0, 32], sizes = [8, 16], strides = [1, 1]} : vector<8x64xf32> to vector<8x16xf32>
    %738 = arith.truncf %735 : vector<8x16xf32> to vector<8x16xbf16>
    %739 = arith.truncf %736 : vector<8x16xf32> to vector<8x16xbf16>
    %cst_300 = arith.constant dense<0.000000e+00> : vector<8x8xf32>
    %740 = tpu.matmul %738, %739, %cst_300 {dimension_numbers = #tpu.dot_dimension_numbers<[1], [1], [0], [0], [0, 0, 1, 0], [], []>} : vector<8x16xbf16>, vector<8x16xbf16>, vector<8x8xf32> -> vector<8x8xf32>
    %cst_301 = arith.constant 2.500000e-01 : f32
    %741 = vector.broadcast %cst_301 : f32 to vector<8x8xf32>
    %742 = arith.mulf %740, %741 : vector<8x8xf32>
    %cst_302 = arith.constant -1.000000e+30 : f32
    %743 = vector.broadcast %cst_302 : f32 to vector<8x8xf32>
    %744 = arith.select %500, %742, %743 : vector<8x8xi1>, vector<8x8xf32>
    %cst_303 = arith.constant dense<0xFF800000> : vector<8xf32>
    %745 = vector.multi_reduction <maximumf>, %744, %cst_303 [1] : vector<8x8xf32> to vector<8xf32>
    %746 = vector.shape_cast %745 : vector<8xf32> to vector<8x1xf32>
    %747 = vector.broadcast %746 : vector<8x1xf32> to vector<8x8xf32>
    %748 = arith.subf %744, %747 : vector<8x8xf32>
    %749 = math.exp %748 : vector<8x8xf32>
    %cst_304 = arith.constant dense<0.000000e+00> : vector<8xf32>
    %750 = vector.multi_reduction <add>, %749, %cst_304 [1] : vector<8x8xf32> to vector<8xf32>
    %751 = vector.shape_cast %750 : vector<8xf32> to vector<8x1xf32>
    %752 = tpu.reciprocal %751 {approx = true} : vector<8x1xf32> -> vector<8x1xf32>
    %753 = vector.broadcast %752 : vector<8x1xf32> to vector<8x8xf32>
    %754 = arith.mulf %749, %753 : vector<8x8xf32>
    %755 = arith.truncf %754 : vector<8x8xf32> to vector<8x8xbf16>
    %756 = arith.truncf %737 : vector<8x16xf32> to vector<8x16xbf16>
    %cst_305 = arith.constant dense<0.000000e+00> : vector<8x16xf32>
    %757 = tpu.matmul %755, %756, %cst_305 {dimension_numbers = #tpu.dot_dimension_numbers<[1], [0], [0], [1], [0, 0, 1, 1], [], []>} : vector<8x8xbf16>, vector<8x16xbf16>, vector<8x16xf32> -> vector<8x16xf32>
    %758 = vector.extract_strided_slice %684 {offsets = [0, 48], sizes = [8, 16], strides = [1, 1]} : vector<8x64xf32> to vector<8x16xf32>
    %759 = vector.extract_strided_slice %688 {offsets = [0, 48], sizes = [8, 16], strides = [1, 1]} : vector<8x64xf32> to vector<8x16xf32>
    %760 = vector.extract_strided_slice %680 {offsets = [0, 48], sizes = [8, 16], strides = [1, 1]} : vector<8x64xf32> to vector<8x16xf32>
    %761 = arith.truncf %758 : vector<8x16xf32> to vector<8x16xbf16>
    %762 = arith.truncf %759 : vector<8x16xf32> to vector<8x16xbf16>
    %cst_306 = arith.constant dense<0.000000e+00> : vector<8x8xf32>
    %763 = tpu.matmul %761, %762, %cst_306 {dimension_numbers = #tpu.dot_dimension_numbers<[1], [1], [0], [0], [0, 0, 1, 0], [], []>} : vector<8x16xbf16>, vector<8x16xbf16>, vector<8x8xf32> -> vector<8x8xf32>
    %cst_307 = arith.constant 2.500000e-01 : f32
    %764 = vector.broadcast %cst_307 : f32 to vector<8x8xf32>
    %765 = arith.mulf %763, %764 : vector<8x8xf32>
    %cst_308 = arith.constant -1.000000e+30 : f32
    %766 = vector.broadcast %cst_308 : f32 to vector<8x8xf32>
    %767 = arith.select %500, %765, %766 : vector<8x8xi1>, vector<8x8xf32>
    %cst_309 = arith.constant dense<0xFF800000> : vector<8xf32>
    %768 = vector.multi_reduction <maximumf>, %767, %cst_309 [1] : vector<8x8xf32> to vector<8xf32>
    %769 = vector.shape_cast %768 : vector<8xf32> to vector<8x1xf32>
    %770 = vector.broadcast %769 : vector<8x1xf32> to vector<8x8xf32>
    %771 = arith.subf %767, %770 : vector<8x8xf32>
    %772 = math.exp %771 : vector<8x8xf32>
    %cst_310 = arith.constant dense<0.000000e+00> : vector<8xf32>
    %773 = vector.multi_reduction <add>, %772, %cst_310 [1] : vector<8x8xf32> to vector<8xf32>
    %774 = vector.shape_cast %773 : vector<8xf32> to vector<8x1xf32>
    %775 = tpu.reciprocal %774 {approx = true} : vector<8x1xf32> -> vector<8x1xf32>
    %776 = vector.broadcast %775 : vector<8x1xf32> to vector<8x8xf32>
    %777 = arith.mulf %772, %776 : vector<8x8xf32>
    %778 = arith.truncf %777 : vector<8x8xf32> to vector<8x8xbf16>
    %779 = arith.truncf %760 : vector<8x16xf32> to vector<8x16xbf16>
    %cst_311 = arith.constant dense<0.000000e+00> : vector<8x16xf32>
    %780 = tpu.matmul %778, %779, %cst_311 {dimension_numbers = #tpu.dot_dimension_numbers<[1], [0], [0], [1], [0, 0, 1, 1], [], []>} : vector<8x8xbf16>, vector<8x16xbf16>, vector<8x16xf32> -> vector<8x16xf32>
    %781 = tpu.concatenate %711, %734, %757, %780 in 1 : vector<8x16xf32>, vector<8x16xf32>, vector<8x16xf32>, vector<8x16xf32> -> vector<8x64xf32>
    %782 = arith.truncf %781 : vector<8x64xf32> to vector<8x64xbf16>
    %c1_312 = arith.constant 1 : index
    %c0_313 = arith.constant 0 : index
    %c0_314 = arith.constant 0 : index
    %783 = vector.load %arg15[%c1_312, %c0_313, %c0_314] : memref<2x64x64xbf16, #tpu.memory_space<vmem>>, vector<1x64x64xbf16>
    %784 = vector.shape_cast %783 : vector<1x64x64xbf16> to vector<64x64xbf16>
    %cst_315 = arith.constant dense<0.000000e+00> : vector<8x64xf32>
    %785 = tpu.matmul %782, %784, %cst_315 {dimension_numbers = #tpu.dot_dimension_numbers<[1], [0], [0], [1], [0, 0, 1, 1], [], []>} : vector<8x64xbf16>, vector<64x64xbf16>, vector<8x64xf32> -> vector<8x64xf32>
    %786 = arith.addf %659, %785 : vector<8x64xf32>
    %c3_316 = arith.constant 3 : index
    %c0_317 = arith.constant 0 : index
    %c0_318 = arith.constant 0 : index
    %787 = vector.load %arg13[%c3_316, %c0_317, %c0_318] : memref<5x1x64xf32, #tpu.memory_space<vmem>>, vector<1x1x64xf32>
    %788 = vector.shape_cast %787 : vector<1x1x64xf32> to vector<1x64xf32>
    %789 = arith.mulf %786, %786 : vector<8x64xf32>
    %cst_319 = arith.constant dense<0.000000e+00> : vector<8xf32>
    %790 = vector.multi_reduction <add>, %789, %cst_319 [1] : vector<8x64xf32> to vector<8xf32>
    %791 = vector.shape_cast %790 : vector<8xf32> to vector<8x1xf32>
    %cst_320 = arith.constant 6.400000e+01 : f32
    %792 = vector.broadcast %cst_320 : f32 to vector<8x1xf32>
    %793 = arith.divf %791, %792 : vector<8x1xf32>
    %cst_321 = arith.constant 9.99999997E-7 : f32
    %794 = vector.broadcast %cst_321 : f32 to vector<8x1xf32>
    %795 = arith.addf %793, %794 : vector<8x1xf32>
    %796 = math.rsqrt %795 : vector<8x1xf32>
    %797 = vector.broadcast %796 : vector<8x1xf32> to vector<8x64xf32>
    %798 = arith.mulf %786, %797 : vector<8x64xf32>
    %799 = vector.broadcast %788 : vector<1x64xf32> to vector<8x64xf32>
    %800 = arith.mulf %798, %799 : vector<8x64xf32>
    %801 = arith.truncf %800 : vector<8x64xf32> to vector<8x64xbf16>
    %c1_322 = arith.constant 1 : index
    %c0_323 = arith.constant 0 : index
    %c0_324 = arith.constant 0 : index
    %802 = vector.load %arg16[%c1_322, %c0_323, %c0_324] : memref<2x64x256xbf16, #tpu.memory_space<vmem>>, vector<1x64x256xbf16>
    %803 = vector.shape_cast %802 : vector<1x64x256xbf16> to vector<64x256xbf16>
    %cst_325 = arith.constant dense<0.000000e+00> : vector<8x256xf32>
    %804 = tpu.matmul %801, %803, %cst_325 {dimension_numbers = #tpu.dot_dimension_numbers<[1], [0], [0], [1], [0, 0, 1, 1], [], []>} : vector<8x64xbf16>, vector<64x256xbf16>, vector<8x256xf32> -> vector<8x256xf32>
    %805 = vector.extract_strided_slice %804 {offsets = [0, 0], sizes = [8, 128], strides = [1, 1]} : vector<8x256xf32> to vector<8x128xf32>
    %806 = vector.extract_strided_slice %804 {offsets = [0, 128], sizes = [8, 128], strides = [1, 1]} : vector<8x256xf32> to vector<8x128xf32>
    %807 = arith.negf %805 : vector<8x128xf32>
    %808 = math.exp %807 : vector<8x128xf32>
    %cst_326 = arith.constant 1.000000e+00 : f32
    %809 = vector.broadcast %cst_326 : f32 to vector<8x128xf32>
    %810 = arith.addf %809, %808 : vector<8x128xf32>
    %811 = arith.divf %809, %810 : vector<8x128xf32>
    %812 = arith.mulf %805, %811 : vector<8x128xf32>
    %813 = arith.mulf %812, %806 : vector<8x128xf32>
    %814 = arith.truncf %813 : vector<8x128xf32> to vector<8x128xbf16>
    %c1_327 = arith.constant 1 : index
    %c0_328 = arith.constant 0 : index
    %c0_329 = arith.constant 0 : index
    %815 = vector.load %arg17[%c1_327, %c0_328, %c0_329] : memref<2x128x64xbf16, #tpu.memory_space<vmem>>, vector<1x128x64xbf16>
    %816 = vector.shape_cast %815 : vector<1x128x64xbf16> to vector<128x64xbf16>
    %cst_330 = arith.constant dense<0.000000e+00> : vector<8x64xf32>
    %817 = tpu.matmul %814, %816, %cst_330 {dimension_numbers = #tpu.dot_dimension_numbers<[1], [0], [0], [1], [0, 0, 1, 1], [], []>} : vector<8x128xbf16>, vector<128x64xbf16>, vector<8x64xf32> -> vector<8x64xf32>
    %818 = arith.addf %786, %817 : vector<8x64xf32>
    %c4 = arith.constant 4 : index
    %c0_331 = arith.constant 0 : index
    %c0_332 = arith.constant 0 : index
    %819 = vector.load %arg13[%c4, %c0_331, %c0_332] : memref<5x1x64xf32, #tpu.memory_space<vmem>>, vector<1x1x64xf32>
    %820 = vector.shape_cast %819 : vector<1x1x64xf32> to vector<1x64xf32>
    %821 = arith.mulf %818, %818 : vector<8x64xf32>
    %cst_333 = arith.constant dense<0.000000e+00> : vector<8xf32>
    %822 = vector.multi_reduction <add>, %821, %cst_333 [1] : vector<8x64xf32> to vector<8xf32>
    %823 = vector.shape_cast %822 : vector<8xf32> to vector<8x1xf32>
    %cst_334 = arith.constant 6.400000e+01 : f32
    %824 = vector.broadcast %cst_334 : f32 to vector<8x1xf32>
    %825 = arith.divf %823, %824 : vector<8x1xf32>
    %cst_335 = arith.constant 9.99999997E-7 : f32
    %826 = vector.broadcast %cst_335 : f32 to vector<8x1xf32>
    %827 = arith.addf %825, %826 : vector<8x1xf32>
    %828 = math.rsqrt %827 : vector<8x1xf32>
    %829 = vector.broadcast %828 : vector<8x1xf32> to vector<8x64xf32>
    %830 = arith.mulf %818, %829 : vector<8x64xf32>
    %831 = vector.broadcast %820 : vector<1x64xf32> to vector<8x64xf32>
    %832 = arith.mulf %830, %831 : vector<8x64xf32>
    %c0_336 = arith.constant 0 : index
    %c0_337 = arith.constant 0 : index
    %833 = vector.load %arg19[%c0_336, %c0_337] : memref<8x64xf32, #tpu.memory_space<vmem>>, vector<8x64xf32>
    tpu.vector_store %arg19[%c0_336, %c0_337], %832 {strides = array<i32>} : memref<8x64xf32, #tpu.memory_space<vmem>>, vector<8x64xf32>,
    return
  }
}

</mosaic_0001>

<bundles_post_ra>
// kernel: llava_forward.1
= control target key start
LH: loop header
LB: loop body
LE: loop exit
PB: predicated region body
PF: predicated region fallthrough
CT: control target
= control target key end

     0   :  { %s6862_s0 = inlined_call_operand.vmem [shape: f32[1,4,192], index: 0, kind: input, shape index: {}]   ;;  %s6863_s1 = inlined_call_operand.vmem [shape: bf16[192,32], index: 1, kind: input, shape index: {}]   ;;  %s6864_s2 = inlined_call_operand.vmem [shape: f32[8,32], index: 2, kind: input, shape index: {}]   ;;  %s6865_s3 = inlined_call_operand.vmem [shape: f32[2,4,1,32], index: 3, kind: input, shape index: {}]   ;;  %s6866_s4 = inlined_call_operand.vmem [shape: f32[2,4,1,96], index: 4, kind: input, shape index: {}]   ;;  %s6867_s5 = inlined_call_operand.vmem [shape: bf16[2,32,96], index: 5, kind: input, shape index: {}]   ;;  %s6868_s6 = inlined_call_operand.vmem [shape: bf16[2,32,32], index: 6, kind: input, shape index: {}]   ;;  %s6869_s7 = inlined_call_operand.vmem [shape: bf16[2,32,64], index: 7, kind: input, shape index: {}]   ;;  %s6870_s8 = inlined_call_operand.vmem [shape: bf16[2,64,32], index: 8, kind: input, shape index: {}]   ;;  %s6871_s9 = inlined_call_operand.vmem [shape: bf16[32,64], index: 9, kind: input, shape index: {}]   ;;  %s6872_s10 = inlined_call_operand.vmem [shape: bf16[64,64], index: 10, kind: input, shape index: {}]   ;;  %s6873_s11 = inlined_call_operand.vmem [shape: f32[2,1,64], index: 11, kind: input, shape index: {}]   ;;  %s6874_s12 = inlined_call_operand.vmem [shape: f32[128,64], index: 12, kind: input, shape index: {}]   ;;  %s6875_s13 = inlined_call_operand.vmem [shape: f32[5,1,64], index: 13, kind: input, shape index: {}]   ;;  %s6876_s14 = inlined_call_operand.vmem [shape: bf16[2,64,192], index: 14, kind: input, shape index: {}]   ;;  %s6877_s15 = inlined_call_operand.vmem [shape: bf16[2,64,64], index: 15, kind: input, shape index: {}]   ;;  %s6878_s16 = inlined_call_operand.vmem [shape: bf16[2,64,256], index: 16, kind: input, shape index: {}]   ;;  %s6879_s17 = inlined_call_operand.vmem [shape: bf16[2,128,64], index: 17, kind: input, shape index: {}]   ;;  %s6880_s18 = inlined_call_operand.vmem [shape: f32[2,64,64], index: 18, kind: input, shape index: {}]   ;;  %s6881_s19 = inlined_call_operand.hbm [shape: f32[8,64], index: 19, kind: output, shape index: {}]  }
   0x1   :  { %6895 = sst [smem:[#allocation7_spill]] %s6862_s0 }
   0x2   :  { %6896 = sst [smem:[#allocation8_spill]] %s6863_s1 }
   0x3   :  { %6897 = sst [smem:[#allocation9_spill]] %s6864_s2 }
   0x4   :  { %6898 = sst [smem:[#allocation10_spill]] %s6865_s3 }
   0x5   :  { %s6899_s20 = sld [smem:[#allocation8_spill]]  ;;  %v5672_v1 = vmov 0   ;;  %s6900_s28 = sld [smem:[#allocation7_spill]]  ;;  %vm99_vm0 = vcmask 253952   ;;  %vm176_vm1 = vcmask 523264  }
   0x6   :  { %180 = vmatprep.subr.bf16.mxu0 %v5672_v1  ;;  %5433 = vset.pattern.permute.xlu0 %v5672_v1  ;;  %s6901_s30 = sld [smem:[#allocation9_spill]] }
   0x7   :  { %5434 = vset.pattern.permute.xlu1 %v5672_v1 }
   0xb   :  { %v5435_v0 = vld [vmem:[%s6899_s20] sm:$0xff]   ;;  %v5436_v2 = vld [vmem:[%s6899_s20 + $0x8] sm:$0xff]   ;;  %v5437_v3 = vld [vmem:[%s6899_s20 + $0x10] sm:$0xff]  }
   0xc   :  { %181 = vmatpush1.bf16.msra.mxu0 %v5435_v0  ;;  %v5438_v4 = vld [vmem:[%s6899_s20 + $0x18] sm:$0xff]   ;;  %v5439_v5 = vld [vmem:[%s6899_s20 + $0x20] sm:$0xff]   ;;  %v5440_v12 = vld [vmem:[%s6899_s20 + $0x28] sm:$0xff]  }
   0xd   :  { %182 = vmatprep.subr.bf16.mxu0 %v5672_v1  ;;  %v68_v6 = vld [vmem:[%s6900_s28] sm:$0xff]  ;;  %v5441_v13 = vld [vmem:[%s6899_s20 + $0x30] sm:$0xff]   ;;  %v5442_v14 = vld [vmem:[%s6899_s20 + $0x38] sm:$0xff]  }
   0xe   :  { %v64_v7 = vld [vmem:[%s6901_s30] sm:$0x1f]  ;;  %v65_v8 = vld [vmem:[%s6901_s30 + $0x5] sm:$0x1]  ;;  %v70_v9 = vcombine.high %v68_v6, %v68_v6  ;;  %v5444_v16 = vld [vmem:[%s6899_s20 + $0x48] sm:$0xff]   ;;  %v72_v19 = vpack.c.bf16 %v68_v6, %v68_v6 }
   0xf   :  { %v98_v10 = vadd.f32 %v65_v8, %v64_v7  ;;  %v5443_v15 = vld [vmem:[%s6899_s20 + $0x40] sm:$0xff]   ;;  %v5445_v17 = vld [vmem:[%s6899_s20 + $0x50] sm:$0xff]   ;;  %v5446_v18 = vld [vmem:[%s6899_s20 + $0x58] sm:$0xff]  }
  0x10   :  { %183 = vmatpush1.bf16.msra.mxu0 %v5436_v2  ;;  %v73_v11 = vpack.c.bf16 %v70_v9, %v70_v9 }
  0x11   :  { %184 = vmatprep.subr.bf16.mxu0 %v5672_v1  ;;  %100 = vst.msk [vmem:[#allocation2] sm:$0x1] %vm99_vm0, %v98_v10 }
  0x12   :  { %4425 = vmatprep.mubr.msk.bf16.mxu0 %vm176_vm1, %v73_v11 }
  0x14   :  { %185 = vmatpush1.bf16.msra.mxu0 %v5437_v3 }
  0x15   :  { %186 = vmatprep.subr.bf16.mxu0 %v5672_v1 }
  0x18   :  { %187 = vmatpush1.bf16.msra.mxu0 %v5438_v4 }
  0x19   :  { %188 = vmatprep.subr.bf16.mxu0 %v5672_v1 }
  0x1c   :  { %189 = vmatpush1.bf16.msra.mxu0 %v5439_v5 }
  0x1d   :  { %190 = vmatprep.subr.bf16.mxu0 %v5672_v1 }
  0x20   :  { %191 = vmatpush1.bf16.msra.mxu0 %v5440_v12 }
  0x21   :  { %192 = vmatprep.subr.bf16.mxu0 %v5672_v1 }
  0x24   :  { %193 = vmatpush1.bf16.msra.mxu0 %v5441_v13 }
  0x25   :  { %194 = vmatprep.subr.bf16.mxu0 %v5672_v1 }
  0x28   :  { %195 = vmatpush1.bf16.msra.mxu0 %v5442_v14 }
  0x29   :  { %196 = vmatprep.subr.bf16.mxu0 %v5672_v1 }
  0x2c   :  { %197 = vmatpush1.bf16.msra.mxu0 %v5443_v15 }
  0x2d   :  { %198 = vmatprep.subr.bf16.mxu0 %v5672_v1 }
  0x30   :  { %199 = vmatpush1.bf16.msra.mxu0 %v5444_v16 }
  0x31   :  { %200 = vmatprep.subr.bf16.mxu0 %v5672_v1 }
  0x34   :  { %201 = vmatpush1.bf16.msra.mxu0 %v5445_v17 }
  0x35   :  { %202 = vmatprep.subr.bf16.mxu0 %v5672_v1 }
  0x38   :  { %203 = vmatpush1.bf16.msra.mxu0 %v5446_v18 }
  0x3b   :  { %213 = vmatmul.mubr.bf16.vlgmr.msra.gmra.mrb[0].mxu0 %v72_v19 }
  0x3c   :  { %24 = vsyncpa [#allocation5], 0  ;;  %v174_v20 = vrot.slane %v64_v7, 1  ;;  %vm220_vm2 = vcmask 257024   ;;  %vm223_vm3 = vcmask 258048   ;;  %v5448_v48 = vld [vmem:[%s6867_s5] sm:$0xff]  }
  0x3d   :  { %v4426_v37 = vld [vmem:[%s6901_s30 + $0x6] ss:$0 sm:$0xff]  ;;  %v4427_v39 = vld [vmem:[%s6901_s30 + $0x7] ss:$0 sm:$0xff]  ;;  %v5673_v49 = vmov 0.0   ;;  %vm5674_vm4 = vmmov 0  }
  0x3e   :  { %4869 = vmatprep.subr.bf16.mxu1 %v5673_v49  ;;  %4873 = vmatprep.mubr.msk.bf16.mxu1 %vm5674_vm4, %v5673_v49  ;;  %v5449_v50 = vld [vmem:[%s6867_s5 + $0x8] sm:$0xff]   ;;  %s6902_s29 = sld [smem:[#allocation10_spill]]  ;;  %vm302_vm5 = vcmask 261120   ;;  %v4431_v61 = vld [vmem:[%s6866_s4] ss:$0 sm:$0xff]  ;;  %s5675_s20 = smov 96  }
  0x3f   :  { %4870 = vmatpush3.bf16.msra.mxu1 %v5448_v48  ;;  %4907 = vmatprep.subr.bf16.mxu0 %v5673_v49  ;;  %s5676_s2 = smov 88   ;;  %vm350_vm6 = vcmask 64512   ;;  %vm398_vm7 = vcmask 36864   ;;  %s6892_s23 = smov 64   ;;  %vm417_vm8 = vcmask 1041408   ;;  %vm418_vm9 = vcmask 1042432  }
  0x40   :  { %4871 = vmatprep.subr.bf16.mxu1 %v5673_v49  ;;  %4909 = vmatprep.mubr.msk.bf16.mxu0 %vm5674_vm4, %v5673_v49  ;;  %s5678_s24 = smov 120   ;;  %v5679_v18 = vmov 65535   ;;  %vm413_vm10 = vcmask 39936   ;;  %s6894_s25 = smov 56   ;;  %vm810_vm11 = vcmask 130048   ;;  %vm812_vm12 = vcmask 195584  }
  0x41   :  { %v419_v19 = vsel %vm417_vm8, 4294967295, %v5679_v18  ;;  %s5681_s3 = smov 112   ;;  %s5682_s30 = smov 104  }
  0x42   :  { %s5683_s26 = smov 80   ;;  %s5684_s27 = smov 72  }
  0x43   :  { %4872 = vmatpush3.bf16.msra.mxu1 %v5449_v50  ;;  %s6886_s28 = smov 48   ;;  %s6885_s0 = smov 8  }
  0x44   :  { %4877 = vmatprep.subr.bf16.mxu1 %v5673_v49  ;;  %v4429_v55 = vld [vmem:[%s6902_s29] ss:$0 sm:$0xff]  ;;  %v4430_v57 = vld [vmem:[%s6902_s29 + $0x1] ss:$0 sm:$0xff]  ;;  %s6888_s21 = smov 40   ;;  %s6889_s1 = smov 24  }
  0x45   :  { %s6908_s22 = smov 16  }
 0x10e   :  { %v214_v21 = vpop.f32.mrb[0].mxu0 }
 0x10f   :  { %v215_v22 = vadd.f32 %v214_v21, %v174_v20  ;;  %v216_v23 = vpop.f32.mrb[1].mxu0  ;;  %v5912_v21 = vsel %vm418_vm9, %v419_v19, 0  ;;  %vm2214_vm9 = vcmask 1043456  }
 0x110   :  { %v217_v24 = vpop.f32.mrb[2].mxu0 }
 0x111   :  { %221 = vst.msk [vmem:[#allocation2 + $0x1] sm:$0xf] %vm220_vm2, %v215_v22  ;;  %v218_v25 = vpop.f32.mrb[3].mxu0  ;;  %vm2067_vm2 = vcmask 519168  }
 0x118   :  { %v222_v26 = vld [vmem:[#allocation2] sm:$0x1f] }
 0x119   :  { %v224_v27 = vsel %vm223_vm3, %v222_v26, 0.0 }
 0x11a   :  { %225 = vadd.xlane.f32.xlu0 %v224_v27 }
 0x1a7   :  { %v226_v28 = vpop.xlane.xlu0 %225 }
 0x1a8   :  { %v228_v29 = vmul.f32 0.03125, %v226_v28 }
 0x1aa   :  { %v229_v30 = vsub.f32 %v222_v26, %v228_v29 }
 0x1ac   :  { %v230_v31 = vmul.f32 %v229_v30, %v229_v30 }
 0x1ae   :  { %v231_v32 = vsel %vm223_vm3, %v230_v31, 0.0 }
 0x1af   :  { %232 = vadd.xlane.f32.xlu0 %v231_v32 }
 0x23c   :  { %v233_v33 = vpop.xlane.xlu0 %232 }
 0x23d   :  { %v234_v34 = vmul.f32 0.03125, %v233_v33 }
 0x23f   :  { %v235_v35 = vadd.f32 1e-05, %v234_v34 }
 0x241   :  { %5546 = vrsqrt.f32 %v235_v35 }
 0x24b   :  { %v5547_v36 = vpop.eup %5546 }
 0x24c   :  { %v237_v38 = vmul.f32 %v5547_v36, %v229_v30 }
 0x24e   :  { %v242_v40 = vmul.f32 %v4426_v37, %v237_v38 }
 0x250   :  { %v5862_v41 = vadd.f32 %v4427_v39, %v242_v40 }
 0x252   :  { %v251_v42 = vsel %vm223_vm3, %v5862_v41, 0.0 }
 0x253   :  { %252 = vadd.xlane.f32.xlu1 %v251_v42 }
 0x2e0   :  { %v253_v43 = vpop.xlane.xlu1 %252 }
 0x2e1   :  { %v254_v44 = vmul.f32 0.03125, %v253_v43 }
 0x2e3   :  { %v255_v45 = vsub.f32 %v5862_v41, %v254_v44 }
 0x2e5   :  { %v256_v46 = vmul.f32 %v255_v45, %v255_v45 }
 0x2e7   :  { %v257_v47 = vsel %vm223_vm3, %v256_v46, 0.0 }
 0x2e8   :  { %258 = vadd.xlane.f32.xlu1 %v257_v47 }
 0x375   :  { %v259_v51 = vpop.xlane.xlu1 %258 }
 0x376   :  { %v260_v52 = vmul.f32 0.03125, %v259_v51 }
 0x378   :  { %v261_v53 = vadd.f32 1e-05, %v260_v52 }
 0x37a   :  { %5548 = vrsqrt.f32 %v261_v53 }
 0x384   :  { %v5549_v54 = vpop.eup %5548 }
 0x385   :  { %v263_v56 = vmul.f32 %v5549_v54, %v255_v45 }
 0x387   :  { %v270_v58 = vmul.f32 %v4429_v55, %v263_v56 }
 0x389   :  { %v277_v59 = vadd.f32 %v4430_v57, %v270_v58 }
 0x38b   :  { %v278_v60 = vpack.c.bf16 %v277_v59, %v277_v59 }
 0x38d   :  { %4874 = vmatmul.mubr.msk.bf16.vlgmr.msra.gmra.mrb[0].mxu1 %vm302_vm5, %v278_v60 }
 0x38e   :  { %4879 = vmatprep.mubr.msk.bf16.mxu1 %vm5674_vm4, %v5673_v49 }
 0x460   :  { %v340_v62 = vpop.f32.mrb[0].mxu1 }
 0x461   :  { %v341_v63 = vadd.f32 %v4431_v61, %v340_v62  ;;  %v4875_v0 = vpop.f32.mrb[1].mxu1 }
 0x462   :  { %v343_v2 = vpop.f32.mrb[2].mxu1 }
 0x463   :  { %v5894_v3 = vpack.c.bf16 %v341_v63, %v341_v63  ;;  %v4876_v4 = vpop.f32.mrb[3].mxu1 }
 0x465   :  { %348 = vrot.lane.b32.xlu0 %v5894_v3, %s5675_s20 }
 0x469   :  { %466 = vrot.lane.b32.xlu0 %v5894_v3, %s5676_s2 }
 0x4d7   :  { %v349_v5 = vpop.permute.xlu0 %348 }
 0x4d8   :  { %v355_v6 = vsel %vm350_vm6, %v349_v5, 0 }
 0x4d9   :  { %4878 = vmatpush3.bf16.xpose.msra.mxu1 %v355_v6 }
 0x4da   :  { %4883 = vmatprep.subr.bf16.mxu1 %v5673_v49 }
 0x4db   :  { %v467_v26 = vpop.permute.xlu0 %466 }
 0x4dc   :  { %v472_v28 = vsel %vm350_vm6, %v467_v26, 0 }
 0x4e0   :  { %4880 = vmatmul.mubr.msk.bf16.vlgmr.msra.gmra.mrb[4].mxu1 %vm350_vm6, %v5894_v3 }
 0x4e1   :  { %4885 = vmatprep.mubr.msk.bf16.mxu1 %vm5674_vm4, %v5673_v49 }
 0x5b3   :  { %v391_v7 = vpop.f32.mrb[4].mxu1 }
 0x5b4   :  { %v397_v8 = vmul.f32 0.35355338, %v391_v7  ;;  %v4881_v9 = vpop.f32.mrb[5].mxu1 }
 0x5b5   :  { %v394_v10 = vpop.f32.mrb[6].mxu1 }
 0x5b6   :  { %v4882_v11 = vpop.f32.mrb[7].mxu1  ;;  %v399_v12 = vsel %vm398_vm7, %v397_v8, -inf }
 0x5b7   :  { %400 = vmax.xlane.f32.xlu1 %v399_v12 }
 0x644   :  { %v401_v13 = vpop.xlane.xlu1 %400 }
 0x645   :  { %v402_v14 = vsub.f32 %v397_v8, %v401_v13 }
 0x647   :  { %v403_v15 = vmul.f32 1.442695, %v402_v14 }
 0x649   :  { %5550 = vpow2.f32 %v403_v15 }
 0x653   :  { %v5551_v16 = vpop.eup %5550 }
 0x654   :  { %v405_v17 = vsel %vm398_vm7, %v5551_v16, 0.0 }
 0x655   :  { %406 = vadd.xlane.f32.xlu1 %v405_v17 }
 0x666   :  { %411 = vrot.lane.b32.xlu1 %v5894_v3, %s6892_s23 }
 0x66a   :  { %464 = vrot.lane.b32.xlu1 %v5894_v3, %s5678_s24 }
 0x6e2   :  { %v407_v20 = vpop.xlane.xlu1 %406 }
 0x6e3   :  { %5552 = vrcp.f32 %v407_v20 }
 0x6e6   :  { %v412_v22 = vpop.permute.xlu1 %411 }
 0x6e7   :  { %v422_v23 = vand.u32 %v5912_v21, %v412_v22 }
 0x6e9   :  { %4884 = vmatpush3.bf16.msra.mxu1 %v422_v23 }
 0x6ea   :  { %4889 = vmatprep.subr.bf16.mxu1 %v5673_v49  ;;  %v465_v29 = vpop.permute.xlu1 %464 }
 0x6ed   :  { %v5553_v24 = vpop.eup %5552 }
 0x6ee   :  { %v409_v25 = vmul.f32 %v5553_v24, %v5551_v16 }
 0x6f0   :  { %v410_v27 = vpack.c.bf16 %v409_v25, %v409_v25 }
 0x6f2   :  { %4886 = vmatmul.mubr.msk.bf16.vlgmr.msra.gmra.mrb[8].mxu1 %vm413_vm10, %v410_v27 }
 0x6f3   :  { %4890 = vmatpush3.bf16.xpose.msra.mxu1 %v472_v28  ;;  %4891 = vmatprep.mubr.msk.bf16.mxu1 %vm5674_vm4, %v5673_v49 }
 0x6f4   :  { %4895 = vmatprep.subr.bf16.mxu1 %v5673_v49 }
 0x6fa   :  { %4892 = vmatmul.mubr.msk.bf16.vlgmr.msra.gmra.mrb[12].mxu1 %vm350_vm6, %v465_v29 }
 0x6fb   :  { %4897 = vmatprep.mubr.msk.bf16.mxu1 %vm5674_vm4, %v5673_v49 }
 0x7c5   :  { %v5924_v30 = vpop.f32.mrb[8].mxu1 }
 0x7c6   :  { %v4887_v31 = vpop.f32.mrb[9].mxu1 }
 0x7c7   :  { %v461_v32 = vpop.f32.mrb[10].mxu1 }
 0x7c8   :  { %v4888_v33 = vpop.f32.mrb[11].mxu1 }
 0x7cd   :  { %v508_v34 = vpop.f32.mrb[12].mxu1 }
 0x7ce   :  { %v514_v35 = vmul.f32 0.35355338, %v508_v34  ;;  %v4893_v36 = vpop.f32.mrb[13].mxu1 }
 0x7cf   :  { %v511_v37 = vpop.f32.mrb[14].mxu1  ;;  %v5450_v36 = vld [vmem:[%s6868_s6] sm:$0xff]  }
 0x7d0   :  { %v4894_v38 = vpop.f32.mrb[15].mxu1  ;;  %v515_v39 = vsel %vm398_vm7, %v514_v35, -inf  ;;  %v5451_v37 = vld [vmem:[%s6868_s6 + $0x8] sm:$0xff]  }
 0x7d1   :  { %516 = vmax.xlane.f32.xlu0 %v515_v39 }
 0x7e7   :  { %527 = vrot.lane.b32.xlu0 %v5894_v3, %s6894_s25 }
 0x7eb   :  { %575 = vrot.lane.b32.xlu0 %v5894_v3, %s5681_s3 }
 0x7ef   :  { %686 = vrot.lane.b32.xlu0 %v5894_v3, %s5682_s30 }
 0x85e   :  { %v517_v40 = vpop.xlane.xlu0 %516 }
 0x85f   :  { %v518_v42 = vsub.f32 %v514_v35, %v517_v40 }
 0x861   :  { %v519_v43 = vmul.f32 1.442695, %v518_v42 }
 0x862   :  { %v528_v44 = vpop.permute.xlu0 %527 }
 0x863   :  { %5554 = vpow2.f32 %v519_v43  ;;  %v533_v45 = vand.u32 %v528_v44, %v5912_v21 }
 0x865   :  { %4896 = vmatpush3.bf16.msra.mxu1 %v533_v45 }
 0x866   :  { %4901 = vmatprep.subr.bf16.mxu1 %v5673_v49  ;;  %v576_v56 = vpop.permute.xlu0 %575 }
 0x86a   :  { %v687_v58 = vpop.permute.xlu0 %686 }
 0x86d   :  { %v5555_v46 = vpop.eup %5554 }
 0x86e   :  { %v521_v47 = vsel %vm398_vm7, %v5555_v46, 0.0 }
 0x86f   :  { %522 = vadd.xlane.f32.xlu1 %v521_v47 }
 0x880   :  { %577 = vrot.lane.b32.xlu1 %v5894_v3, %s5683_s26 }
 0x884   :  { %688 = vrot.lane.b32.xlu1 %v5894_v3, %s5684_s27 }
 0x8fc   :  { %v523_v48 = vpop.xlane.xlu1 %522 }
 0x8fd   :  { %5556 = vrcp.f32 %v523_v48 }
 0x900   :  { %v578_v52 = vpop.permute.xlu1 %577 }
 0x901   :  { %v583_v54 = vsel %vm350_vm6, %v578_v52, 0 }
 0x904   :  { %v689_v55 = vpop.permute.xlu1 %688 }
 0x905   :  { %v694_v57 = vsel %vm350_vm6, %v689_v55, 0 }
 0x907   :  { %v5557_v50 = vpop.eup %5556 }
 0x908   :  { %v525_v51 = vmul.f32 %v5557_v50, %v5555_v46 }
 0x90a   :  { %v526_v53 = vpack.c.bf16 %v525_v51, %v525_v51 }
 0x90c   :  { %4898 = vmatmul.mubr.msk.bf16.vlgmr.msra.gmra.mrb[16].mxu1 %vm413_vm10, %v526_v53 }
 0x90d   :  { %4902 = vmatpush3.bf16.xpose.msra.mxu1 %v583_v54  ;;  %4903 = vmatprep.mubr.msk.bf16.mxu1 %vm5674_vm4, %v5673_v49 }
 0x90e   :  { %4913 = vmatprep.subr.bf16.mxu1 %v5673_v49 }
 0x914   :  { %4904 = vmatmul.mubr.msk.bf16.vlgmr.msra.gmra.mrb[20].mxu1 %vm350_vm6, %v576_v56  ;;  %v4447_v56 = vld [vmem:[%s6866_s4 + $0x1] ss:$0 sm:$0xff] }
 0x915   :  { %4914 = vmatpush3.bf16.xpose.msra.mxu1 %v694_v57  ;;  %4915 = vmatprep.mubr.msk.bf16.mxu1 %vm5674_vm4, %v5673_v49 }
 0x916   :  { %4925 = vmatprep.subr.bf16.mxu1 %v5673_v49 }
 0x91c   :  { %4916 = vmatmul.mubr.msk.bf16.vlgmr.msra.gmra.mrb[24].mxu1 %vm350_vm6, %v687_v58 }
 0x91d   :  { %4929 = vmatprep.mubr.msk.bf16.mxu1 %vm5674_vm4, %v5673_v49  ;;  %4926 = vmatpush3.bf16.msra.mxu1 %v5450_v36 }
 0x91e   :  { %4927 = vmatprep.subr.bf16.mxu1 %v5673_v49 }
 0x921   :  { %4928 = vmatpush3.bf16.msra.mxu1 %v5451_v37 }
 0x922   :  { %4967 = vmatprep.subr.bf16.mxu1 %v5673_v49 }
 0x9df   :  { %v569_v59 = vpop.f32.mrb[16].mxu1 }
 0x9e0   :  { %v4899_v60 = vpop.f32.mrb[17].mxu1 }
 0x9e1   :  { %v572_v61 = vpop.f32.mrb[18].mxu1 }
 0x9e2   :  { %v4900_v62 = vpop.f32.mrb[19].mxu1 }
 0x9e7   :  { %v619_v63 = vpop.f32.mrb[20].mxu1 }
 0x9e8   :  { %v625_v0 = vmul.f32 0.35355338, %v619_v63  ;;  %v4905_v2 = vpop.f32.mrb[21].mxu1 }
 0x9e9   :  { %v622_v4 = vpop.f32.mrb[22].mxu1 }
 0x9ea   :  { %v4906_v5 = vpop.f32.mrb[23].mxu1  ;;  %v626_v6 = vsel %vm398_vm7, %v625_v0, -inf }
 0x9eb   :  { %627 = vmax.xlane.f32.xlu1 %v626_v6  ;;  %v5453_v5 = vld [vmem:[%s6869_s7 + $0x8] sm:$0xff]  }
 0x9ef   :  { %v730_v7 = vpop.f32.mrb[24].mxu1 }
 0x9f0   :  { %v736_v8 = vmul.f32 0.35355338, %v730_v7  ;;  %v4917_v9 = vpop.f32.mrb[25].mxu1 }
 0x9f1   :  { %v733_v10 = vpop.f32.mrb[26].mxu1 }
 0x9f2   :  { %v4918_v11 = vpop.f32.mrb[27].mxu1  ;;  %v737_v12 = vsel %vm398_vm7, %v736_v8, -inf  ;;  %v4450_v10 = vld [vmem:[%s6902_s29 + $0x2] ss:$0 sm:$0xff] }
 0x9f3   :  { %738 = vmax.xlane.f32.xlu0 %v737_v12  ;;  %v4451_v12 = vld [vmem:[%s6902_s29 + $0x3] ss:$0 sm:$0xff] }
 0x9fc   :  { %638 = vrot.lane.b32.xlu1 %v5894_v3, %s6886_s28 }
 0xa00   :  { %798 = vrot.lane.b32.xlu1 %v569_v59, %s6885_s0 }
 0xa78   :  { %v628_v13 = vpop.xlane.xlu1 %627 }
 0xa79   :  { %v629_v14 = vsub.f32 %v625_v0, %v628_v13 }
 0xa7b   :  { %v630_v15 = vmul.f32 1.442695, %v629_v14 }
 0xa7c   :  { %v639_v16 = vpop.permute.xlu1 %638 }
 0xa7d   :  { %5558 = vpow2.f32 %v630_v15  ;;  %v644_v17 = vand.u32 %v639_v16, %v5912_v21  ;;  %v5454_v16 = vld [vmem:[%s6870_s8] sm:$0xff]  }
 0xa7f   :  { %4908 = vmatpush3.bf16.msra.mxu0 %v644_v17  ;;  %v5455_v17 = vld [vmem:[%s6870_s8 + $0x8] sm:$0xff]  }
 0xa80   :  { %v739_v18 = vpop.xlane.xlu0 %738  ;;  %4919 = vmatprep.subr.bf16.mxu0 %v5673_v49  ;;  %v799_v47 = vpop.permute.xlu1 %798 }
 0xa81   :  { %v740_v19 = vsub.f32 %v736_v8, %v739_v18  ;;  %v809_v50 = vsel %vm350_vm6, %v5924_v30, %v799_v47  ;;  %v5456_v18 = vld [vmem:[%s6870_s8 + $0x10] sm:$0xff]  }
 0xa83   :  { %v741_v20 = vmul.f32 1.442695, %v740_v19  ;;  %v5457_v19 = vld [vmem:[%s6870_s8 + $0x18] sm:$0xff]  }
 0xa85   :  { %5560 = vpow2.f32 %v741_v20  ;;  %v4453_v20 = vld [vmem:[%s6866_s4 + $0x2] ss:$0 sm:$0xff] }
 0xa87   :  { %v5559_v22 = vpop.eup %5558 }
 0xa88   :  { %v632_v23 = vsel %vm398_vm7, %v5559_v22, 0.0 }
 0xa89   :  { %633 = vadd.xlane.f32.xlu0 %v632_v23 }
 0xa8f   :  { %v5561_v24 = vpop.eup %5560 }
 0xa90   :  { %v743_v25 = vsel %vm398_vm7, %v5561_v24, 0.0 }
 0xa91   :  { %744 = vadd.xlane.f32.xlu0 %v743_v25 }
 0xaa7   :  { %749 = vrot.lane.b32.xlu0 %v5894_v3, %s6888_s21  ;;  %s6890_s21 = smov 16  }
 0xb16   :  { %v634_v26 = vpop.xlane.xlu0 %633 }
 0xb17   :  { %5562 = vrcp.f32 %v634_v26 }
 0xb1e   :  { %v745_v27 = vpop.xlane.xlu0 %744 }
 0xb1f   :  { %5564 = vrcp.f32 %v745_v27 }
 0xb21   :  { %v5563_v28 = vpop.eup %5562 }
 0xb22   :  { %v636_v29 = vmul.f32 %v5563_v28, %v5559_v22  ;;  %v750_v31 = vpop.permute.xlu0 %749 }
 0xb23   :  { %v755_v32 = vand.u32 %v750_v31, %v5912_v21 }
 0xb24   :  { %v637_v33 = vpack.c.bf16 %v636_v29, %v636_v29 }
 0xb26   :  { %4910 = vmatmul.mubr.msk.bf16.vlgmr.msra.gmra.mrb[4].mxu0 %vm413_vm10, %v637_v33 }
 0xb27   :  { %4920 = vmatpush3.bf16.msra.mxu0 %v755_v32  ;;  %4921 = vmatprep.mubr.msk.bf16.mxu0 %vm5674_vm4, %v5673_v49 }
 0xb28   :  { %4933 = vmatprep.subr.bf16.mxu0 %v5673_v49 }
 0xb29   :  { %v5565_v34 = vpop.eup %5564 }
 0xb2a   :  { %v747_v3 = vmul.f32 %v5565_v34, %v5561_v24 }
 0xb2c   :  { %v748_v35 = vpack.c.bf16 %v747_v3, %v747_v3  ;;  %v4459_v3 = vld [vmem:[%s6866_s4 + $0x3] ss:$0 sm:$0xff] }
 0xb2e   :  { %4922 = vmatmul.mubr.msk.bf16.vlgmr.msra.gmra.mrb[8].mxu0 %vm413_vm10, %v748_v35 }
 0xb2f   :  { %4937 = vmatprep.mubr.msk.bf16.mxu0 %vm5674_vm4, %v5673_v49 }
 0xbf9   :  { %v680_v38 = vpop.f32.mrb[4].mxu0 }
 0xbfa   :  { %802 = vrot.lane.b32.xlu1 %v680_v38, %s6890_s21  ;;  %v4911_v39 = vpop.f32.mrb[5].mxu0 }
 0xbfb   :  { %v683_v40 = vpop.f32.mrb[6].mxu0 }
 0xbfc   :  { %v4912_v42 = vpop.f32.mrb[7].mxu0 }
 0xc01   :  { %v791_v43 = vpop.f32.mrb[8].mxu0 }
 0xc02   :  { %806 = vrot.lane.b32.xlu1 %v791_v43, %s6889_s1  ;;  %v4923_v44 = vpop.f32.mrb[9].mxu0  ;;  %s6907_s1 = smov 8  }
 0xc03   :  { %v794_v45 = vpop.f32.mrb[10].mxu0 }
 0xc04   :  { %v4924_v46 = vpop.f32.mrb[11].mxu0 }
 0xc6c   :  { %v803_v48 = vpop.permute.xlu1 %802 }
 0xc6d   :  { %v811_v51 = vsel %vm810_vm11, %v809_v50, %v803_v48  ;;  %v5458_v48 = vld [vmem:[%s6867_s5 + $0x10] sm:$0xff]   ;;  %v5459_v50 = vld [vmem:[%s6867_s5 + $0x18] sm:$0xff]   ;;  %s6909_s5 = smov 24  }
 0xc74   :  { %v807_v52 = vpop.permute.xlu1 %806 }
 0xc75   :  { %v813_v53 = vsel %vm812_vm12, %v811_v51, %v807_v52 }
 0xc76   :  { %v814_v54 = vpack.c.bf16 %v813_v53, %v813_v53 }
 0xc78   :  { %4930 = vmatmul.mubr.msk.bf16.vlgmr.msra.gmra.mrb[28].mxu1 %vm302_vm5, %v814_v54 }
 0xc79   :  { %4969 = vmatprep.mubr.msk.bf16.mxu1 %vm5674_vm4, %v5673_v49 }
 0xd4b   :  { %v868_v55 = vpop.f32.mrb[28].mxu1 }
 0xd4c   :  { %v874_v57 = vadd.f32 %v868_v55, %v5862_v41  ;;  %v4931_v58 = vpop.f32.mrb[29].mxu1  ;;  %v5452_v41 = vld [vmem:[%s6869_s7] sm:$0xff]  }
 0xd4d   :  { %v871_v30 = vpop.f32.mrb[30].mxu1  ;;  %4934 = vmatpush3.bf16.msra.mxu0 %v5452_v41  ;;  %v4467_v55 = vld [vmem:[%s6902_s29 + $0x4] ss:$0 sm:$0xff] }
 0xd4e   :  { %v5993_v59 = vadd.f32 %v4447_v56, %v874_v57  ;;  %v4932_v60 = vpop.f32.mrb[31].mxu1  ;;  %4935 = vmatprep.subr.bf16.mxu0 %v5673_v49  ;;  %v4468_v57 = vld [vmem:[%s6902_s29 + $0x5] ss:$0 sm:$0xff] }
 0xd4f   :  { %v4474_v60 = vld [vmem:[%s6866_s4 + $0x4] ss:$0 sm:$0xff] }
 0xd50   :  { %v888_v61 = vsel %vm223_vm3, %v5993_v59, 0.0 }
 0xd51   :  { %889 = vadd.xlane.f32.xlu0 %v888_v61  ;;  %4936 = vmatpush3.bf16.msra.mxu0 %v5453_v5 }
 0xd52   :  { %4941 = vmatprep.subr.bf16.mxu0 %v5673_v49 }
 0xdde   :  { %v890_v62 = vpop.xlane.xlu0 %889 }
 0xddf   :  { %v891_v63 = vmul.f32 0.03125, %v890_v62 }
 0xde1   :  { %v892_v0 = vsub.f32 %v5993_v59, %v891_v63 }
 0xde3   :  { %v893_v2 = vmul.f32 %v892_v0, %v892_v0 }
 0xde5   :  { %v894_v4 = vsel %vm223_vm3, %v893_v2, 0.0 }
 0xde6   :  { %895 = vadd.xlane.f32.xlu1 %v894_v4 }
 0xe73   :  { %v896_v6 = vpop.xlane.xlu1 %895 }
 0xe74   :  { %v897_v7 = vmul.f32 0.03125, %v896_v6 }
 0xe76   :  { %v898_v8 = vadd.f32 1e-05, %v897_v7 }
 0xe78   :  { %5566 = vrsqrt.f32 %v898_v8 }
 0xe82   :  { %v5567_v9 = vpop.eup %5566 }
 0xe83   :  { %v900_v11 = vmul.f32 %v5567_v9, %v892_v0 }
 0xe85   :  { %v907_v13 = vmul.f32 %v4450_v10, %v900_v11 }
 0xe87   :  { %v914_v14 = vadd.f32 %v4451_v12, %v907_v13 }
 0xe89   :  { %v915_v15 = vpack.c.bf16 %v914_v14, %v914_v14 }
 0xe8b   :  { %4938 = vmatmul.mubr.msk.bf16.vlgmr.msra.gmra.mrb[12].mxu0 %vm302_vm5, %v915_v15 }
 0xe8c   :  { %4949 = vmatprep.mubr.msk.bf16.mxu0 %vm5674_vm4, %v5673_v49  ;;  %4942 = vmatpush3.bf16.msra.mxu0 %v5454_v16 }
 0xe8d   :  { %4943 = vmatprep.subr.bf16.mxu0 %v5673_v49 }
 0xe90   :  { %4944 = vmatpush3.bf16.msra.mxu0 %v5455_v17 }
 0xe91   :  { %4945 = vmatprep.subr.bf16.mxu0 %v5673_v49 }
 0xe94   :  { %4946 = vmatpush3.bf16.msra.mxu0 %v5456_v18 }
 0xe95   :  { %4947 = vmatprep.subr.bf16.mxu0 %v5673_v49 }
 0xe98   :  { %4948 = vmatpush3.bf16.msra.mxu0 %v5457_v19 }
 0xe99   :  { %4953 = vmatprep.subr.bf16.mxu0 %v5673_v49 }
 0xf5e   :  { %v977_v22 = vpop.f32.mrb[12].mxu0 }
 0xf5f   :  { %v978_v23 = vadd.f32 %v4453_v20, %v977_v22  ;;  %v4939_v24 = vpop.f32.mrb[13].mxu0 }
 0xf60   :  { %v980_v25 = vpop.f32.mrb[14].mxu0 }
 0xf61   :  { %v4457_v26 = vmul.f32 -1.702, %v978_v23  ;;  %v4940_v27 = vpop.f32.mrb[15].mxu0 }
 0xf63   :  { %v985_v28 = vmul.f32 1.442695, %v4457_v26 }
 0xf65   :  { %5568 = vpow2.f32 %v985_v28 }
 0xf6f   :  { %v5569_v29 = vpop.eup %5568 }
 0xf70   :  { %v987_v31 = vadd.f32 1.0, %v5569_v29 }
 0xf72   :  { %5570 = vrcp.f32 %v987_v31 }
 0xf7c   :  { %v5571_v32 = vpop.eup %5570 }
 0xf7d   :  { %v990_v33 = vmul.f32 %v5571_v32, %v978_v23 }
 0xf7f   :  { %v991_v34 = vpack.c.bf16 %v990_v33, %v990_v33 }
 0xf81   :  { %4950 = vmatmul.mubr.msk.bf16.vlgmr.msra.gmra.mrb[16].mxu0 %vm176_vm1, %v991_v34 }
 0xf82   :  { %4957 = vmatprep.mubr.msk.bf16.mxu0 %vm5674_vm4, %v5673_v49  ;;  %4954 = vmatpush3.bf16.msra.mxu0 %v5458_v48 }
 0xf83   :  { %4955 = vmatprep.subr.bf16.mxu0 %v5673_v49 }
 0xf86   :  { %4956 = vmatpush3.bf16.msra.mxu0 %v5459_v50 }
 0xf87   :  { %4961 = vmatprep.subr.bf16.mxu0 %v5673_v49 }
0x1054   :  { %v1069_v35 = vpop.f32.mrb[16].mxu0 }
0x1055   :  { %v1070_v36 = vadd.f32 %v4459_v3, %v1069_v35  ;;  %v4951_v37 = vpop.f32.mrb[17].mxu0 }
0x1056   :  { %v1072_v38 = vpop.f32.mrb[18].mxu0 }
0x1057   :  { %v6042_v39 = vadd.f32 %v1070_v36, %v5993_v59  ;;  %v4952_v40 = vpop.f32.mrb[19].mxu0 }
0x1059   :  { %v1080_v42 = vsel %vm223_vm3, %v6042_v39, 0.0 }
0x105a   :  { %1081 = vadd.xlane.f32.xlu0 %v1080_v42 }
0x10e7   :  { %v1082_v43 = vpop.xlane.xlu0 %1081 }
0x10e8   :  { %v1083_v44 = vmul.f32 0.03125, %v1082_v43 }
0x10ea   :  { %v1084_v45 = vsub.f32 %v6042_v39, %v1083_v44 }
0x10ec   :  { %v1085_v46 = vmul.f32 %v1084_v45, %v1084_v45 }
0x10ee   :  { %v1086_v47 = vsel %vm223_vm3, %v1085_v46, 0.0 }
0x10ef   :  { %1087 = vadd.xlane.f32.xlu0 %v1086_v47 }
0x117c   :  { %v1088_v51 = vpop.xlane.xlu0 %1087 }
0x117d   :  { %v1089_v52 = vmul.f32 0.03125, %v1088_v51 }
0x117f   :  { %v1090_v53 = vadd.f32 1e-05, %v1089_v52 }
0x1181   :  { %5572 = vrsqrt.f32 %v1090_v53 }
0x118b   :  { %v5573_v54 = vpop.eup %5572 }
0x118c   :  { %v1092_v56 = vmul.f32 %v5573_v54, %v1084_v45 }
0x118e   :  { %v1099_v58 = vmul.f32 %v4467_v55, %v1092_v56 }
0x1190   :  { %v1106_v30 = vadd.f32 %v4468_v57, %v1099_v58 }
0x1192   :  { %v1107_v59 = vpack.c.bf16 %v1106_v30, %v1106_v30 }
0x1194   :  { %4958 = vmatmul.mubr.msk.bf16.vlgmr.msra.gmra.mrb[20].mxu0 %vm302_vm5, %v1107_v59 }
0x1195   :  { %4963 = vmatprep.mubr.msk.bf16.mxu0 %vm5674_vm4, %v5673_v49 }
0x1267   :  { %v1170_v61 = vpop.f32.mrb[20].mxu0 }
0x1268   :  { %v1171_v62 = vadd.f32 %v4474_v60, %v1170_v61  ;;  %v4959_v63 = vpop.f32.mrb[21].mxu0 }
0x1269   :  { %v1173_v0 = vpop.f32.mrb[22].mxu0 }
0x126a   :  { %v6068_v2 = vpack.c.bf16 %v1171_v62, %v1171_v62  ;;  %v4960_v4 = vpop.f32.mrb[23].mxu0 }
0x126c   :  { %1289 = vrot.lane.b32.xlu1 %v6068_v2, %s5676_s2  ;;  %1178 = vrot.lane.b32.xlu0 %v6068_v2, %s5675_s20  ;;  %s6903_s2 = smov 56  }
0x1270   :  { %1287 = vrot.lane.b32.xlu1 %v6068_v2, %s5678_s24  ;;  %1398 = vrot.lane.b32.xlu0 %v6068_v2, %s5681_s3  ;;  %s6904_s24 = smov 64  }
0x1274   :  { %1400 = vrot.lane.b32.xlu1 %v6068_v2, %s5683_s26  ;;  %1509 = vrot.lane.b32.xlu0 %v6068_v2, %s5682_s30  ;;  %s6905_s30 = smov 40  }
0x1278   :  { %1511 = vrot.lane.b32.xlu1 %v6068_v2, %s5684_s27  ;;  %s6906_s27 = smov 48  }
0x12de   :  { %v1179_v41 = vpop.permute.xlu0 %1178  ;;  %v1290_v6 = vpop.permute.xlu1 %1289 }
0x12df   :  { %v1184_v5 = vsel %vm350_vm6, %v1179_v41, 0  ;;  %v1295_v8 = vsel %vm350_vm6, %v1290_v6, 0 }
0x12e0   :  { %4962 = vmatpush3.bf16.xpose.msra.mxu0 %v1184_v5 }
0x12e1   :  { %4973 = vmatprep.subr.bf16.mxu0 %v5673_v49 }
0x12e2   :  { %v1288_v7 = vpop.permute.xlu1 %1287  ;;  %v1399_v12 = vpop.permute.xlu0 %1398 }
0x12e6   :  { %v1401_v9 = vpop.permute.xlu1 %1400  ;;  %v1510_v14 = vpop.permute.xlu0 %1509 }
0x12e7   :  { %4964 = vmatmul.mubr.msk.bf16.vlgmr.msra.gmra.mrb[24].mxu0 %vm350_vm6, %v6068_v2  ;;  %v1406_v10 = vsel %vm350_vm6, %v1401_v9, 0 }
0x12e8   :  { %4974 = vmatpush3.bf16.xpose.msra.mxu0 %v1295_v8  ;;  %4975 = vmatprep.mubr.msk.bf16.mxu0 %vm5674_vm4, %v5673_v49 }
0x12e9   :  { %4985 = vmatprep.subr.bf16.mxu0 %v5673_v49 }
0x12ea   :  { %v1512_v11 = vpop.permute.xlu1 %1511 }
0x12eb   :  { %v1517_v13 = vsel %vm350_vm6, %v1512_v11, 0 }
0x12ef   :  { %4976 = vmatmul.mubr.msk.bf16.vlgmr.msra.gmra.mrb[28].mxu0 %vm350_vm6, %v1288_v7 }
0x12f0   :  { %4986 = vmatpush3.bf16.xpose.msra.mxu0 %v1406_v10  ;;  %4987 = vmatprep.mubr.msk.bf16.mxu0 %vm5674_vm4, %v5673_v49 }
0x12f1   :  { %4997 = vmatprep.subr.bf16.mxu0 %v5673_v49 }
0x12f7   :  { %4988 = vmatmul.mubr.msk.bf16.vlgmr.msra.gmra.mrb[32].mxu0 %vm350_vm6, %v1399_v12 }
0x12f8   :  { %4998 = vmatpush3.bf16.xpose.msra.mxu0 %v1517_v13  ;;  %4999 = vmatprep.mubr.msk.bf16.mxu0 %vm5674_vm4, %v5673_v49 }
0x12f9   :  { %5009 = vmatprep.subr.bf16.mxu0 %v5673_v49 }
0x12ff   :  { %5000 = vmatmul.mubr.msk.bf16.vlgmr.msra.gmra.mrb[36].mxu0 %vm350_vm6, %v1510_v14 }
0x1300   :  { %5013 = vmatprep.mubr.msk.bf16.mxu0 %vm5674_vm4, %v5673_v49 }
0x13ba   :  { %v1220_v15 = vpop.f32.mrb[24].mxu0 }
0x13bb   :  { %v1226_v16 = vmul.f32 0.35355338, %v1220_v15  ;;  %v4965_v17 = vpop.f32.mrb[25].mxu0 }
0x13bc   :  { %v1223_v18 = vpop.f32.mrb[26].mxu0 }
0x13bd   :  { %v4966_v19 = vpop.f32.mrb[27].mxu0  ;;  %v1227_v20 = vsel %vm398_vm7, %v1226_v16, -inf }
0x13be   :  { %1228 = vmax.xlane.f32.xlu1 %v1227_v20 }
0x13c2   :  { %v1331_v22 = vpop.f32.mrb[28].mxu0 }
0x13c3   :  { %v1337_v23 = vmul.f32 0.35355338, %v1331_v22  ;;  %v4977_v24 = vpop.f32.mrb[29].mxu0 }
0x13c4   :  { %v1334_v25 = vpop.f32.mrb[30].mxu0 }
0x13c5   :  { %v4978_v26 = vpop.f32.mrb[31].mxu0  ;;  %v1338_v27 = vsel %vm398_vm7, %v1337_v23, -inf }
0x13c6   :  { %1339 = vmax.xlane.f32.xlu0 %v1338_v27 }
0x13ca   :  { %v1442_v28 = vpop.f32.mrb[32].mxu0 }
0x13cb   :  { %v1448_v29 = vmul.f32 0.35355338, %v1442_v28  ;;  %v4989_v31 = vpop.f32.mrb[33].mxu0 }
0x13cc   :  { %v1445_v32 = vpop.f32.mrb[34].mxu0 }
0x13cd   :  { %v4990_v33 = vpop.f32.mrb[35].mxu0  ;;  %v1449_v34 = vsel %vm398_vm7, %v1448_v29, -inf  ;;  %v5460_v32 = vld [vmem:[%s6868_s6 + $0x10] sm:$0xff]  }
0x13ce   :  { %1450 = vmax.xlane.f32.xlu0 %v1449_v34  ;;  %5010 = vmatpush3.bf16.msra.mxu0 %v5460_v32  ;;  %v5461_v33 = vld [vmem:[%s6868_s6 + $0x18] sm:$0xff]   ;;  %v2085_v32 = vlaneseq }
0x13cf   :  { %5011 = vmatprep.subr.bf16.mxu0 %v5673_v49 }
0x13d2   :  { %v1553_v3 = vpop.f32.mrb[36].mxu0  ;;  %5012 = vmatpush3.bf16.msra.mxu0 %v5461_v33 }
0x13d3   :  { %v1559_v35 = vmul.f32 0.35355338, %v1553_v3  ;;  %v5001_v36 = vpop.f32.mrb[37].mxu0  ;;  %5025 = vmatprep.subr.bf16.mxu0 %v5673_v49 }
0x13d4   :  { %v1556_v37 = vpop.f32.mrb[38].mxu0 }
0x13d5   :  { %v5002_v38 = vpop.f32.mrb[39].mxu0  ;;  %v1560_v40 = vsel %vm398_vm7, %v1559_v35, -inf }
0x13d6   :  { %1561 = vmax.xlane.f32.xlu0 %v1560_v40 }
0x144b   :  { %v1229_v42 = vpop.xlane.xlu1 %1228 }
0x144c   :  { %v1230_v43 = vsub.f32 %v1226_v16, %v1229_v42 }
0x144e   :  { %v1231_v44 = vmul.f32 1.442695, %v1230_v43 }
0x1450   :  { %5574 = vpow2.f32 %v1231_v44 }
0x1453   :  { %v1340_v45 = vpop.xlane.xlu0 %1339 }
0x1454   :  { %v1341_v46 = vsub.f32 %v1337_v23, %v1340_v45 }
0x1456   :  { %v1342_v47 = vmul.f32 1.442695, %v1341_v46 }
0x1458   :  { %5576 = vpow2.f32 %v1342_v47 }
0x145a   :  { %v5575_v48 = vpop.eup %5574 }
0x145b   :  { %v1233_v50 = vsel %vm398_vm7, %v5575_v48, 0.0  ;;  %v1451_v53 = vpop.xlane.xlu0 %1450 }
0x145c   :  { %1234 = vadd.xlane.f32.xlu1 %v1233_v50  ;;  %v1452_v54 = vsub.f32 %v1448_v29, %v1451_v53 }
0x145e   :  { %v1453_v56 = vmul.f32 1.442695, %v1452_v54 }
0x1460   :  { %5578 = vpow2.f32 %v1453_v56 }
0x1462   :  { %v5577_v51 = vpop.eup %5576 }
0x1463   :  { %v1344_v52 = vsel %vm398_vm7, %v5577_v51, 0.0  ;;  %v1562_v55 = vpop.xlane.xlu0 %1561 }
0x1464   :  { %1345 = vadd.xlane.f32.xlu0 %v1344_v52  ;;  %v1563_v57 = vsub.f32 %v1559_v35, %v1562_v55  ;;  %v4494_v52 = vld [vmem:[%s6866_s4 + $0x5] ss:$0 sm:$0xff] }
0x1466   :  { %v1564_v58 = vmul.f32 1.442695, %v1563_v57 }
0x1468   :  { %5580 = vpow2.f32 %v1564_v58 }
0x146a   :  { %v5579_v30 = vpop.eup %5578 }
0x146b   :  { %v1455_v59 = vsel %vm398_vm7, %v5579_v30, 0.0 }
0x146d   :  { %1350 = vrot.lane.b32.xlu1 %v6068_v2, %s6903_s2 }
0x1472   :  { %v5581_v60 = vpop.eup %5580 }
0x1473   :  { %v1566_v61 = vsel %vm398_vm7, %v5581_v60, 0.0 }
0x147a   :  { %1239 = vrot.lane.b32.xlu0 %v6068_v2, %s6904_s24 }
0x147e   :  { %1572 = vrot.lane.b32.xlu0 %v6068_v2, %s6905_s30 }
0x1491   :  { %1456 = vadd.xlane.f32.xlu1 %v1455_v59 }
0x1495   :  { %1567 = vadd.xlane.f32.xlu1 %v1566_v61 }
0x14a6   :  { %1461 = vrot.lane.b32.xlu1 %v6068_v2, %s6906_s27 }
0x14e9   :  { %v1235_v62 = vpop.xlane.xlu1 %1234 }
0x14ea   :  { %5582 = vrcp.f32 %v1235_v62 }
0x14ed   :  { %v1351_v6 = vpop.permute.xlu1 %1350 }
0x14ee   :  { %v1356_v8 = vand.u32 %v1351_v6, %v5912_v21  ;;  %v4497_v6 = vld [vmem:[%s6902_s29 + $0x6] ss:$0 sm:$0xff] }
0x14f1   :  { %v1346_v63 = vpop.xlane.xlu0 %1345 }
0x14f2   :  { %5584 = vrcp.f32 %v1346_v63  ;;  %v5463_v63 = vld [vmem:[%s6869_s7 + $0x18] sm:$0xff]  }
0x14f4   :  { %v5583_v0 = vpop.eup %5582 }
0x14f5   :  { %v1237_v4 = vmul.f32 %v5583_v0, %v5575_v48  ;;  %v1240_v41 = vpop.permute.xlu0 %1239 }
0x14f6   :  { %v1245_v5 = vand.u32 %v1240_v41, %v5912_v21 }
0x14f7   :  { %v1238_v7 = vpack.c.bf16 %v1237_v4, %v1237_v4 }
0x14f8   :  { %4968 = vmatpush3.bf16.msra.mxu1 %v1245_v5 }
0x14f9   :  { %4979 = vmatprep.subr.bf16.mxu1 %v5673_v49  ;;  %v1573_v16 = vpop.permute.xlu0 %1572 }
0x14fa   :  { %v1578_v20 = vand.u32 %v1573_v16, %v5912_v21 }
0x14fb   :  { %4970 = vmatmul.mubr.msk.bf16.vlgmr.msra.gmra.mrb[32].mxu1 %vm413_vm10, %v1238_v7 }
0x14fc   :  { %v5585_v9 = vpop.eup %5584  ;;  %4980 = vmatpush3.bf16.msra.mxu1 %v1356_v8  ;;  %4981 = vmatprep.mubr.msk.bf16.mxu1 %vm5674_vm4, %v5673_v49  ;;  %v4498_v8 = vld [vmem:[%s6902_s29 + $0x7] ss:$0 sm:$0xff] }
0x14fd   :  { %v1348_v2 = vmul.f32 %v5585_v9, %v5577_v51  ;;  %4991 = vmatprep.subr.bf16.mxu1 %v5673_v49 }
0x14ff   :  { %v1349_v10 = vpack.c.bf16 %v1348_v2, %v1348_v2 }
0x1503   :  { %4982 = vmatmul.mubr.msk.bf16.vlgmr.msra.gmra.mrb[36].mxu1 %vm413_vm10, %v1349_v10 }
0x1504   :  { %4993 = vmatprep.mubr.msk.bf16.mxu1 %vm5674_vm4, %v5673_v49 }
0x151e   :  { %v1457_v11 = vpop.xlane.xlu1 %1456 }
0x151f   :  { %5586 = vrcp.f32 %v1457_v11  ;;  %v5464_v11 = vld [vmem:[%s6870_s8 + $0x20] sm:$0xff]  }
0x1522   :  { %v1568_v12 = vpop.xlane.xlu1 %1567 }
0x1523   :  { %5588 = vrcp.f32 %v1568_v12  ;;  %v5465_v12 = vld [vmem:[%s6870_s8 + $0x28] sm:$0xff]  }
0x1526   :  { %v1462_v13 = vpop.permute.xlu1 %1461 }
0x1527   :  { %v1467_v14 = vand.u32 %v1462_v13, %v5912_v21  ;;  %v5466_v13 = vld [vmem:[%s6870_s8 + $0x30] sm:$0xff]  }
0x1529   :  { %v5587_v15 = vpop.eup %5586  ;;  %4992 = vmatpush3.bf16.msra.mxu1 %v1467_v14  ;;  %v5467_v14 = vld [vmem:[%s6870_s8 + $0x38] sm:$0xff]  }
0x152a   :  { %v1459_v17 = vmul.f32 %v5587_v15, %v5579_v30  ;;  %5003 = vmatprep.subr.bf16.mxu1 %v5673_v49  ;;  %v4504_v15 = vld [vmem:[%s6866_s4 + $0x6] ss:$0 sm:$0xff] }
0x152c   :  { %v1460_v18 = vpack.c.bf16 %v1459_v17, %v1459_v17 }
0x152d   :  { %v5589_v19 = vpop.eup %5588 }
0x152e   :  { %4994 = vmatmul.mubr.msk.bf16.vlgmr.msra.gmra.mrb[40].mxu1 %vm413_vm10, %v1460_v18  ;;  %v1570_v22 = vmul.f32 %v5589_v19, %v5581_v60 }
0x152f   :  { %5004 = vmatpush3.bf16.msra.mxu1 %v1578_v20  ;;  %5005 = vmatprep.mubr.msk.bf16.mxu1 %vm5674_vm4, %v5673_v49 }
0x1530   :  { %5017 = vmatprep.subr.bf16.mxu1 %v5673_v49  ;;  %v1571_v23 = vpack.c.bf16 %v1570_v22, %v1570_v22 }
0x1536   :  { %5006 = vmatmul.mubr.msk.bf16.vlgmr.msra.gmra.mrb[44].mxu1 %vm413_vm10, %v1571_v23  ;;  %vm2210_vm10 = vcmask 31744  }
0x1537   :  { %5021 = vmatprep.mubr.msk.bf16.mxu1 %vm5674_vm4, %v5673_v49 }
0x15ce   :  { %v1281_v24 = vpop.f32.mrb[32].mxu1 }
0x15cf   :  { %v4971_v25 = vpop.f32.mrb[33].mxu1 }
0x15d0   :  { %v1284_v26 = vpop.f32.mrb[34].mxu1 }
0x15d1   :  { %v4972_v27 = vpop.f32.mrb[35].mxu1 }
0x15d6   :  { %v1392_v21 = vpop.f32.mrb[36].mxu1 }
0x15d7   :  { %1621 = vrot.lane.b32.xlu1 %v1392_v21, %s6907_s1  ;;  %v4983_v28 = vpop.f32.mrb[37].mxu1 }
0x15d8   :  { %v1395_v29 = vpop.f32.mrb[38].mxu1  ;;  %v5468_v28 = vld [vmem:[%s6871_s9] sm:$0xff]  }
0x15d9   :  { %v4984_v31 = vpop.f32.mrb[39].mxu1  ;;  %v5469_v29 = vld [vmem:[%s6871_s9 + $0x8] sm:$0xff]  }
0x15da   :  { %v2070_v31 = vld [vmem:[%s6880_s18 + $0x11] sm:$0x1] }
0x15db   :  { %v5407_v33 = vtrunc.f32 %v2070_v31  ;;  %v4524_v31 = vld [vmem:[%s6873_s11] ss:$0 sm:$0xff] }
0x1601   :  { %v1503_v34 = vpop.f32.mrb[40].mxu1 }
0x1602   :  { %1625 = vrot.lane.b32.xlu0 %v1503_v34, %s6908_s22  ;;  %v4995_v3 = vpop.f32.mrb[41].mxu1  ;;  %v6217_v34 = vand.u32 127, %v2085_v32 }
0x1603   :  { %v1506_v35 = vpop.f32.mrb[42].mxu1  ;;  %v2183_v3 = vshrl.u32 %v2085_v32, 7 }
0x1604   :  { %v4996_v36 = vpop.f32.mrb[43].mxu1  ;;  %v5408_v35 = vcvt.f32.s32 %v5407_v33 }
0x1605   :  { %vm2184_vm13 = vcmp.le.s32.totalorder %v6217_v34, %v2183_v3  ;;  %v2193_v36 = vsub.s32 0, %v2183_v3 }
0x1606   :  { %vm2188_vm14 = vcmp.eq.s32.totalorder %v5408_v35, 32 }
0x1609   :  { %v1614_v37 = vpop.f32.mrb[44].mxu1 }
0x160a   :  { %1629 = vrot.lane.b32.xlu1 %v1614_v37, %s6909_s5  ;;  %v5007_v38 = vpop.f32.mrb[45].mxu1  ;;  %v4546_v37 = vsel %vm2184_vm13, 1.0, %v5673_v49  ;;  %vm3041_vm13 = vcmask 392192  }
0x160b   :  { %v1617_v40 = vpop.f32.mrb[46].mxu1  ;;  %v4547_v38 = vsel %vm2188_vm14, 1.0, %v5673_v49 }
0x160c   :  { %v5008_v42 = vpop.f32.mrb[47].mxu1  ;;  %v2194_v40 = vrot.slane %v4547_v38, %v2193_v36 }
0x160e   :  { %v2195_v42 = vmul.f32 %v4546_v37, %v2194_v40 }
0x1649   :  { %v1622_v43 = vpop.permute.xlu1 %1621 }
0x164a   :  { %v1632_v45 = vsel %vm350_vm6, %v1281_v24, %v1622_v43  ;;  %v2196_v43 = vsel %vm350_vm6, %v2195_v42, 0.0 }
0x1674   :  { %v1626_v44 = vpop.permute.xlu0 %1625 }
0x1675   :  { %v1633_v46 = vsel %vm810_vm11, %v1632_v45, %v1626_v44  ;;  %v2072_v44 = vld [vmem:[%s6880_s18 + $0x20] sm:$0xff] }
0x1676   :  { %v5405_v45 = vtrunc.f32 %v2072_v44 }
0x167c   :  { %v1630_v47 = vpop.permute.xlu1 %1629 }
0x167d   :  { %v1634_v48 = vsel %vm812_vm12, %v1633_v46, %v1630_v47  ;;  %v6226_v46 = vcvt.f32.s32 %v5405_v45  ;;  %v4518_v47 = vld [vmem:[%s6866_s4 + $0x7] ss:$0 sm:$0xff] }
0x167e   :  { %v1635_v50 = vpack.c.bf16 %v1634_v48, %v1634_v48 }
0x167f   :  { %vm2179_vm15 = vcmp.eq.s32.totalorder %v6226_v46, 32 }
0x1680   :  { %5014 = vmatmul.mubr.msk.bf16.vlgmr.msra.gmra.mrb[40].mxu0 %vm302_vm5, %v1635_v50 }
0x1681   :  { %5033 = vmatprep.mubr.msk.bf16.mxu0 %vm5674_vm4, %v5673_v49  ;;  %5026 = vmatpush3.bf16.msra.mxu0 %v5464_v11  ;;  %v2102_v11 = vld [vmem:[%s6874_s12 + $0x48] sm:$0xff] }
0x1682   :  { %5027 = vmatprep.subr.bf16.mxu0 %v5673_v49 }
0x1685   :  { %5028 = vmatpush3.bf16.msra.mxu0 %v5465_v12  ;;  %v5472_v12 = vld [vmem:[%s6872_s10 + $0x10] sm:$0xff]  }
0x1686   :  { %5029 = vmatprep.subr.bf16.mxu0 %v5673_v49 }
0x1689   :  { %5030 = vmatpush3.bf16.msra.mxu0 %v5466_v13 }
0x168a   :  { %5031 = vmatprep.subr.bf16.mxu0 %v5673_v49 }
0x168d   :  { %5032 = vmatpush3.bf16.msra.mxu0 %v5467_v14  ;;  %v2103_v14 = vld [vmem:[%s6874_s12 + $0x50] sm:$0xff] }
0x1753   :  { %v1690_v51 = vpop.f32.mrb[40].mxu0 }
0x1754   :  { %v1696_v53 = vadd.f32 %v1690_v51, %v6042_v39  ;;  %v5015_v54 = vpop.f32.mrb[41].mxu0  ;;  %v5462_v39 = vld [vmem:[%s6869_s7 + $0x10] sm:$0xff]  }
0x1755   :  { %v1693_v55 = vpop.f32.mrb[42].mxu0  ;;  %5018 = vmatpush3.bf16.msra.mxu1 %v5462_v39  ;;  %v2095_v39 = vld [vmem:[%s6874_s12 + $0x10] sm:$0xff] }
0x1756   :  { %v6162_v56 = vadd.f32 %v4494_v52, %v1696_v53  ;;  %v5016_v57 = vpop.f32.mrb[43].mxu0  ;;  %5019 = vmatprep.subr.bf16.mxu1 %v5673_v49 }
0x1758   :  { %v1710_v58 = vsel %vm223_vm3, %v6162_v56, 0.0 }
0x1759   :  { %1711 = vadd.xlane.f32.xlu0 %v1710_v58  ;;  %5020 = vmatpush3.bf16.msra.mxu1 %v5463_v63  ;;  %v2096_v63 = vld [vmem:[%s6874_s12 + $0x18] sm:$0xff] }
0x175a   :  { %5037 = vmatprep.subr.bf16.mxu1 %v5673_v49 }
0x175d   :  { %2197 = vadd.xlane.f32.xlu0 %v2196_v43 }
0x1773   :  { %2088 = vperm.xlu0 %5433, %v6226_v46  }
0x17e6   :  { %v1712_v30 = vpop.xlane.xlu0 %1711 }
0x17e7   :  { %v1713_v59 = vmul.f32 0.03125, %v1712_v30 }
0x17e9   :  { %v1714_v60 = vsub.f32 %v6162_v56, %v1713_v59 }
0x17eb   :  { %v1715_v61 = vmul.f32 %v1714_v60, %v1714_v60 }
0x17ed   :  { %v1716_v62 = vsel %vm223_vm3, %v1715_v61, 0.0  ;;  %v2094_v61 = vld [vmem:[%s6874_s12 + $0x8] sm:$0xff] }
0x17ee   :  { %1717 = vadd.xlane.f32.xlu1 %v1716_v62  ;;  %v5690_v62 = vmov 0.0|0.0  }
0x17ef   :  { %5333 = vmatprep.subr.bf16.mxu0 %v5690_v62 }
0x187b   :  { %v1718_v0 = vpop.xlane.xlu1 %1717 }
0x187c   :  { %v1719_v4 = vmul.f32 0.03125, %v1718_v0  ;;  %v5337_v0 = vpack.c.bf16 %v2096_v63, %v2095_v39 }
0x187e   :  { %v1720_v41 = vadd.f32 1e-05, %v1719_v4  ;;  %v2097_v4 = vld [vmem:[%s6874_s12 + $0x20] sm:$0xff] }
0x1880   :  { %5590 = vrsqrt.f32 %v1720_v41  ;;  %v2098_v41 = vld [vmem:[%s6874_s12 + $0x28] sm:$0xff] }
0x188a   :  { %v5591_v5 = vpop.eup %5590 }
0x188b   :  { %v1722_v7 = vmul.f32 %v5591_v5, %v1714_v60  ;;  %v2093_v60 = vld [vmem:[%s6874_s12] sm:$0xff] }
0x188c   :  { %v5470_v5 = vld [vmem:[%s6872_s10] sm:$0xff]  }
0x188d   :  { %v1729_v9 = vmul.f32 %v4497_v6, %v1722_v7  ;;  %v5340_v6 = vpack.c.bf16 %v2098_v41, %v2097_v4  ;;  %v2099_v7 = vld [vmem:[%s6874_s12 + $0x30] sm:$0xff] }
0x188f   :  { %v1736_v2 = vadd.f32 %v4498_v8, %v1729_v9  ;;  %v2100_v8 = vld [vmem:[%s6874_s12 + $0x38] sm:$0xff]  ;;  %v5471_v9 = vld [vmem:[%s6872_s10 + $0x8] sm:$0xff]  }
0x1891   :  { %v1737_v10 = vpack.c.bf16 %v1736_v2, %v1736_v2  ;;  %v5343_v2 = vpack.c.bf16 %v2100_v8, %v2099_v7  ;;  %v5476_v7 = vld [vmem:[%s6876_s14 + $0x4] ss:$8 sps:$4 sm:$0xff]   ;;  %v5474_v8 = vld [vmem:[%s6876_s14] ss:$8 sps:$4 sm:$0xff]  }
0x1893   :  { %5022 = vmatmul.mubr.msk.bf16.vlgmr.msra.gmra.mrb[48].mxu1 %vm302_vm5, %v1737_v10  ;;  %v2101_v10 = vld [vmem:[%s6874_s12 + $0x40] sm:$0xff] }
0x1894   :  { %5041 = vmatprep.mubr.msk.bf16.mxu1 %vm5674_vm4, %v5673_v49  ;;  %5038 = vmatpush3.bf16.msra.mxu1 %v5468_v28  ;;  %v5346_v13 = vpack.c.bf16 %v2102_v11, %v2101_v10  ;;  %v5482_v10 = vld [vmem:[%s6876_s14 + $0x24] ss:$8 sps:$4 sm:$0xff]   ;;  %v5480_v11 = vld [vmem:[%s6876_s14 + $0x20] ss:$8 sps:$4 sm:$0xff]  }
0x1895   :  { %5039 = vmatprep.subr.bf16.mxu1 %v5673_v49 }
0x1898   :  { %5040 = vmatpush3.bf16.msra.mxu1 %v5469_v29  ;;  %v5691_v29 = vmov 1.0  }
0x1899   :  { %5045 = vmatprep.subr.bf16.mxu1 %v5673_v49 }
0x1966   :  { %v1800_v16 = vpop.f32.mrb[48].mxu1 }
0x1967   :  { %v1801_v17 = vadd.f32 %v4504_v15, %v1800_v16  ;;  %v5023_v18 = vpop.f32.mrb[49].mxu1  ;;  %v2104_v15 = vld [vmem:[%s6874_s12 + $0x58] sm:$0xff] }
0x1968   :  { %v1803_v19 = vpop.f32.mrb[50].mxu1  ;;  %v5473_v16 = vld [vmem:[%s6872_s10 + $0x18] sm:$0xff]   ;;  %v2105_v18 = vld [vmem:[%s6874_s12 + $0x60] sm:$0xff] }
0x1969   :  { %v4508_v20 = vmul.f32 -1.702, %v1801_v17  ;;  %v5024_v22 = vpop.f32.mrb[51].mxu1  ;;  %v2106_v19 = vld [vmem:[%s6874_s12 + $0x68] sm:$0xff] }
0x196a   :  { %v2198_v22 = vpop.xlane.xlu0 %2197 }
0x196b   :  { %v1808_v23 = vmul.f32 1.442695, %v4508_v20  ;;  %v5352_v20 = vpack.c.bf16 %v2106_v19, %v2105_v18  ;;  %v4538_v18 = vld [vmem:[%s6880_s18 + $0x58] sm:$0xff] }
0x196d   :  { %5592 = vpow2.f32 %v1808_v23  ;;  %v2107_v23 = vld [vmem:[%s6874_s12 + $0x70] sm:$0xff] }
0x196e   :  { %v2089_v28 = vpop.permute.xlu0 %2088 }
0x196f   :  { %vm2090_vm0 = vcmp.eq.s32.totalorder %v2089_v28, %v6217_v34 }
0x1977   :  { %v5593_v24 = vpop.eup %5592 }
0x1978   :  { %v1810_v25 = vadd.f32 1.0, %v5593_v24  ;;  %v2108_v24 = vld [vmem:[%s6874_s12 + $0x78] sm:$0xff] }
0x197a   :  { %5594 = vrcp.f32 %v1810_v25  ;;  %v2180_v25 = vsel %vm2179_vm15, 1, %v5672_v1 }
0x197b   :  { %2203 = vperm.xlu1 %5434, %v2180_v25   ;;  %v4542_v25 = vld [vmem:[%s6880_s18 + $0x78] sm:$0xff] }
0x1984   :  { %v5595_v26 = vpop.eup %5594 }
0x1985   :  { %v1813_v27 = vmul.f32 %v5595_v26, %v1801_v17  ;;  %v5349_v17 = vpack.c.bf16 %v2104_v15, %v2103_v14  ;;  %v4545_v26 = vsel %vm2179_vm15, 1.0, %v5673_v49  ;;  %v4535_v14 = vld [vmem:[%s6880_s18 + $0x40] sm:$0xff]  ;;  %v4536_v15 = vld [vmem:[%s6880_s18 + $0x48] sm:$0xff] }
0x1987   :  { %v1814_v21 = vpack.c.bf16 %v1813_v27, %v1813_v27  ;;  %v5355_v27 = vpack.c.bf16 %v2108_v24, %v2107_v23  ;;  %v4541_v24 = vld [vmem:[%s6880_s18 + $0x70] sm:$0xff] }
0x1989   :  { %5034 = vmatmul.mubr.msk.bf16.vlgmr.msra.gmra.mrb[44].mxu0 %vm176_vm1, %v1814_v21  ;;  %v2288_v21 = vsub.f32 1.0, %v4545_v26  ;;  %v6393_v26 = vpack.c.bf16 %v4542_v25, %v4541_v24 }
0x198a   :  { %5089 = vmatprep.mubr.msk.f32.mxu0 %vm5674_vm4, %v5673_v49 }
0x198b   :  { %2291 = vperm.xlu1 %5434, %v2288_v21  }
0x1a5c   :  { %v1893_v48 = vpop.f32.mrb[44].mxu0 }
0x1a5d   :  { %v1894_v50 = vadd.f32 %v4518_v47, %v1893_v48  ;;  %v5035_v51 = vpop.f32.mrb[45].mxu0 }
0x1a5e   :  { %v1896_v52 = vpop.f32.mrb[46].mxu0 }
0x1a5f   :  { %v1899_v53 = vadd.f32 %v1894_v50, %v6162_v56  ;;  %v5036_v54 = vpop.f32.mrb[47].mxu0  ;;  %v5334_v56 = vpack.c.bf16 %v2094_v61, %v2093_v60  ;;  %v4548_v52 = vadd.f32 -1.0, %v2198_v22  ;;  %v2204_v61 = vpop.permute.xlu1 %2203  ;;  %v4540_v22 = vld [vmem:[%s6880_s18 + $0x68] sm:$0xff] }
0x1a60   :  { %v4529_v54 = vld [vmem:[%s6873_s11 + $0x1] ss:$0 sm:$0xff]  ;;  %vm2205_vm7 = vcmp.eq.s32.totalorder %v2204_v61, 1  ;;  %s5693_s11 = smov [#allocation4]  }
0x1a61   :  { %v1900_v55 = vpack.c.bf16 %v1899_v53, %v1899_v53  ;;  %5335 = vmatpush3.bf16.msra.mxu0 %v5334_v56  ;;  %v5409_v53 = vtrunc.f32 %v4548_v52  ;;  %s4405_s2 = sshll.u32 %s5693_s11, 4  ;;  %s4406_s2 = int_to_ptr.vmem [resolvable:$true] %s4405_s2 }
0x1a62   :  { %5336 = vmatprep.subr.bf16.mxu0 %v5690_v62  ;;  %s5648_s29 = scalar_lea.vmem %s4406_s2, 128  ;;  %p5653_p1 = scmp.lt.s32.totalorder %s4406_s2, %s4406_s2 }
0x1a63   :  { %v1915_v57 = vshll.u32 %v1900_v55, 16  ;;  %v1913_v58 = vshrl.u32 %v1900_v55, 16  ;;  %v2292_v63 = vpop.permute.xlu1 %2291  ;;  %p5649_p0 = scmp.ne.s32.totalorder %s4406_s2, %s5648_s29  ;;  %p5654_p2 = scmp.lt.s32.totalorder %s5648_s29, %s5648_s29 }
0x1a65   :  { %v1917_v30 = vrot.slane %v1915_v57, 1  ;;  %5338 = vmatpush3.bf16.msra.mxu0 %v5337_v0  ;;  %v5410_v57 = vcvt.f32.s32 %v5409_v53  ;;  %p5655_p3 = por %p5654_p2, %p5653_p1 }
0x1a66   :  { %5339 = vmatprep.subr.bf16.mxu0 %v5690_v62 }
0x1a67   :  { %v1918_v59 = vor.u32 %v1917_v30, %v1913_v58  ;;  %vm2201_vm3 = vcmp.eq.s32.totalorder %v5410_v57, %v6217_v34  ;;  %p5656_p4 = pnand %p5655_p3, %p5649_p0 }
0x1a68   :  { %vm2206_vm8 = vmand %vm2205_vm7, %vm2201_vm3 }
0x1a69   :  { %5042 = vmatmul.mubr.msk.bf16.vlgmr.msra.gmra.mrb[52].mxu1 %vm302_vm5, %v1918_v59  ;;  %5341 = vmatpush3.bf16.msra.mxu0 %v5340_v6  ;;  %v4549_v39 = vsel %vm2206_vm8, 1.0, %v5673_v49 }
0x1a6a   :  { %5053 = vmatprep.mubr.msk.bf16.mxu1 %vm5674_vm4, %v5673_v49  ;;  %5046 = vmatpush3.bf16.msra.mxu1 %v5470_v5 }
0x1a6b   :  { %5047 = vmatprep.subr.bf16.mxu1 %v5673_v49  ;;  %5342 = vmatprep.subr.bf16.mxu0 %v5690_v62 }
0x1a6d   :  { %5344 = vmatpush3.bf16.msra.mxu0 %v5343_v2  ;;  %v5477_v2 = vld [vmem:[%s6876_s14 + $0x10] ss:$8 sps:$4 sm:$0xff]  }
0x1a6e   :  { %5048 = vmatpush3.bf16.msra.mxu1 %v5471_v9  ;;  %5345 = vmatprep.subr.bf16.mxu0 %v5690_v62  ;;  %v5479_v9 = vld [vmem:[%s6876_s14 + $0x14] ss:$8 sps:$4 sm:$0xff]  }
0x1a6f   :  { %5049 = vmatprep.subr.bf16.mxu1 %v5673_v49 }
0x1a71   :  { %5347 = vmatpush3.bf16.msra.mxu0 %v5346_v13  ;;  %v5485_v13 = vld [vmem:[%s6876_s14 + $0x34] ss:$8 sps:$4 sm:$0xff]  }
0x1a72   :  { %5050 = vmatpush3.bf16.msra.mxu1 %v5472_v12  ;;  %5348 = vmatprep.subr.bf16.mxu0 %v5690_v62  ;;  %v5483_v12 = vld [vmem:[%s6876_s14 + $0x30] ss:$8 sps:$4 sm:$0xff]  }
0x1a73   :  { %5051 = vmatprep.subr.bf16.mxu1 %v5673_v49 }
0x1a75   :  { %5350 = vmatpush3.bf16.msra.mxu0 %v5349_v17  ;;  %v6367_v17 = vpack.c.bf16 %v4536_v15, %v4535_v14 }
0x1a76   :  { %5052 = vmatpush3.bf16.msra.mxu1 %v5473_v16  ;;  %5351 = vmatprep.subr.bf16.mxu0 %v5690_v62  ;;  %v4537_v16 = vld [vmem:[%s6880_s18 + $0x50] sm:$0xff] }
0x1a77   :  { %5092 = vmatprep.subr.mxu1 %v5673_v49  ;;  %v6373_v19 = vpack.c.bf16 %v4538_v18, %v4537_v16 }
0x1a79   :  { %5353 = vmatpush3.bf16.msra.mxu0 %v5352_v20  ;;  %v4539_v20 = vld [vmem:[%s6880_s18 + $0x60] sm:$0xff] }
0x1a7a   :  { %5354 = vmatprep.subr.bf16.mxu0 %v5690_v62  ;;  %v6383_v23 = vpack.c.bf16 %v4540_v22, %v4539_v20 }
0x1a7d   :  { %5356 = vmatpush3.bf16.msra.mxu0 %v5355_v27 }
0x1a7e   :  { %5357 = vmatprep.subr.bf16.mxu0 %v5690_v62 }
0x1a80   :  { %5090 = vmatmul.mubr.msk.f32.vlgmr.msra.gmra.mrb[48].mxu0 %vm2090_vm0, %v5691_v29 }
0x1a81   :  { %5113 = vmatprep.mubr.msk.f32.mxu0 %vm5674_vm4, %v5673_v49  ;;  %5359 = vmatpush3.bf16.msra.mxu0 %v6367_v17 }
0x1a82   :  { %5360 = vmatprep.subr.bf16.mxu0 %v5690_v62 }
0x1a85   :  { %5362 = vmatpush3.bf16.msra.mxu0 %v6373_v19 }
0x1a86   :  { %5363 = vmatprep.subr.bf16.mxu0 %v5690_v62 }
0x1a89   :  { %5365 = vmatpush3.bf16.msra.mxu0 %v6383_v23 }
0x1a8a   :  { %5366 = vmatprep.subr.bf16.mxu0 %v5690_v62 }
0x1a8d   :  { %5368 = vmatpush3.bf16.msra.mxu0 %v6393_v26 }
0x1a8e   :  { %5135 = vmatprep.subr.bf16.mxu0 %v5673_v49 }
0x1b3c   :  { %v1968_v32 = vpop.f32.mrb[52].mxu1 }
0x1b3d   :  { %v1969_v33 = vadd.f32 %v4524_v31, %v1968_v32  ;;  %v5043_v3 = vpop.f32.mrb[53].mxu1  ;;  %v4553_v31 = vld [vmem:[%s6875_s13] ss:$0 sm:$0xff] }
0x1b3e   :  { %v1971_v35 = vpop.f32.mrb[54].mxu1 }
0x1b3f   :  { %v1974_v36 = vmul.f32 %v1969_v33, %v1969_v33  ;;  %v5044_v37 = vpop.f32.mrb[55].mxu1 }
0x1b41   :  { %v1975_v38 = vmul.f32 %v1974_v36, %v1969_v33 }
0x1b43   :  { %v1976_v40 = vmul.f32 0.044715, %v1975_v38 }
0x1b45   :  { %v1977_v42 = vadd.f32 %v1976_v40, %v1969_v33  ;;  %v6420_v40 = vld [vmem:[%s6880_s18] sm:$0xff] }
0x1b47   :  { %v1978_v43 = vmul.f32 0.7978846, %v1977_v42 }
0x1b49   :  { %5596 = vtanh.f32 %v1978_v43 }
0x1b53   :  { %v5597_v44 = vpop.eup %5596  ;;  %v2175_v50 = vpop.f32.mrb[48].mxu0 }
0x1b54   :  { %v1980_v45 = vadd.f32 1.0, %v5597_v44  ;;  %v5091_v51 = vpop.f32.mrb[49].mxu0  ;;  %v2294_v0 = vmul.f32 %v2292_v63, %v2175_v50  ;;  %v4552_v63 = vld [vmem:[%s6880_s18 + $0x10] ss:$0 sm:$0xff] }
0x1b56   :  { %v1981_v46 = vmul.f32 0.5, %v1980_v45  ;;  %v6435_v45 = vld [vmem:[%s6880_s18 + $0x8] sm:$0xff] }
0x1b58   :  { %v1982_v47 = vmul.f32 %v1981_v46, %v1969_v33 }
0x1b5a   :  { %v1983_v48 = vpack.c.bf16 %v1982_v47, %v1982_v47 }
0x1b5c   :  { %5054 = vmatmul.mubr.msk.bf16.vlgmr.msra.gmra.mrb[56].mxu1 %vm176_vm1, %v1983_v48 }
0x1b5d   :  { %5094 = vmatprep.mubr.msk.f32.mxu1 %vm5674_vm4, %v5673_v49 }
0x1c2f   :  { %v2061_v55 = vpop.f32.mrb[56].mxu1 }
0x1c30   :  { %v2062_v58 = vadd.f32 %v4529_v54, %v2061_v55  ;;  %v5055_v30 = vpop.f32.mrb[57].mxu1 }
0x1c31   :  { %v2064_v59 = vpop.f32.mrb[58].mxu1 }
0x1c32   :  { %2068 = vst.msk [vmem:[#allocation3] sm:$0xf] %vm2067_vm2, %v2062_v58  ;;  %v5056_v60 = vpop.f32.mrb[59].mxu1 }
0x1c33   :  { %v2071_v60 = vld [vmem:[%s6880_s18 + $0x18] sm:$0xff]  ;;  %s5692_s18 = smov 32  }
0x1c39   :  { %v2209_v56 = vld [vmem:[#allocation3] sm:$0xf] }
0x1c3a   :  { %5093 = vmatpush3.msk.msra.mxu1 %vm2214_vm9, %v2209_v56 }
0x1c3b   :  { %5095 = vmatmul.mubr.msk.f32.vlgmr.msra.gmra.mrb[60].mxu1 %vm2210_vm10, %v4549_v39  ;;  %2375 = vmatprep.subr.bf16.mxu1 %v5476_v7 }
0x1c3c   :  { %2407 = vmatprep.mubr.bf16.mxu1 %v5672_v1  ;;  %2376 = vmatpush1.bf16.msra.mxu1 %v5474_v8 }
0x1c3d   :  { %2377 = vmatprep.subr.bf16.mxu1 %v5479_v9 }
0x1c40   :  { %2378 = vmatpush1.bf16.msra.mxu1 %v5477_v2 }
0x1c41   :  { %2379 = vmatprep.subr.bf16.mxu1 %v5482_v10 }
0x1c44   :  { %2380 = vmatpush1.bf16.msra.mxu1 %v5480_v11 }
0x1c45   :  { %2381 = vmatprep.subr.bf16.mxu1 %v5485_v13 }
0x1c48   :  { %2382 = vmatpush1.bf16.msra.mxu1 %v5483_v12 }
0x1c49   :  { %5369 = vmatprep.subr.bf16.mxu1 %v5690_v62 }
0x1d0e   :  { %v2284_v4 = vpop.f32.mrb[60].mxu1 }
0x1d0f   :  { %v6328_v41 = vadd.f32 %v2294_v0, %v2284_v4  ;;  %v5096_v5 = vpop.f32.mrb[61].mxu1 }
0x1d11   :  { %v2307_v34 = vmul.f32 %v6328_v41, %v6328_v41 }
0x1d13   :  { %v2308_v6 = vsel %vm176_vm1, %v2307_v34, 0.0 }
0x1d14   :  { %2309 = vadd.xlane.f32.xlu1 %v2308_v6 }
0x1da1   :  { %v2310_v27 = vpop.xlane.xlu1 %2309 }
0x1da2   :  { %v2312_v21 = vmul.f32 0.015625, %v2310_v27 }
0x1da4   :  { %v2313_v28 = vadd.f32 1e-06, %v2312_v21 }
0x1da6   :  { %5598 = vrsqrt.f32 %v2313_v28 }
0x1db0   :  { %v5599_v29 = vpop.eup %5598 }
0x1db1   :  { %v2315_v32 = vmul.f32 %v5599_v29, %v6328_v41 }
0x1db3   :  { %v2322_v33 = vmul.f32 %v4553_v31, %v2315_v32 }
0x1db5   :  { %v2323_v3 = vpack.c.bf16 %v2322_v33, %v2322_v33 }
0x1db7   :  { %4562 = vmatmul.mubr.msk.bf16.vlgmr.msra.gmra.mrb[64].mxu1 %vm176_vm1, %v2323_v3 }
0x1db8   :  { %5371 = vmatpush3.bf16.msra.mxu1 %v6367_v17  ;;  %5132 = vmatprep.mubr.msk.f32.mxu1 %vm5674_vm4, %v5673_v49 }
0x1db9   :  { %5372 = vmatprep.subr.bf16.mxu1 %v5690_v62 }
0x1dbc   :  { %5374 = vmatpush3.bf16.msra.mxu1 %v6373_v19 }
0x1dbd   :  { %5375 = vmatprep.subr.bf16.mxu1 %v5690_v62 }
0x1dc0   :  { %5377 = vmatpush3.bf16.msra.mxu1 %v6383_v23 }
0x1dc1   :  { %5378 = vmatprep.subr.bf16.mxu1 %v5690_v62 }
0x1dc4   :  { %5380 = vmatpush3.bf16.msra.mxu1 %v6393_v26 }
0x1dc5   :  { %5141 = vmatprep.subr.bf16.mxu1 %v5673_v49 }
0x1e8a   :  { %v2409_v35 = vpop.f32.mrb[64].mxu1 }
0x1e8b   :  { %2497 = vrot.lane.b32.xlu0 %v2409_v35, %s6904_s24  ;;  %v2411_v36 = vpop.f32.mrb[65].mxu1  ;;  %5114 = vmatmul.mubr.msk.f32.vlgmr.msra.gmra.mrb[50].mxu0 %vm176_vm1, %v2409_v35  ;;  %v2416_v47 = vmul.f32 %v2409_v35, %v6420_v40 }
0x1e8c   :  { %v2413_v37 = vpop.f32.mrb[66].mxu1  ;;  %5137 = vmatprep.mubr.msk.bf16.mxu0 %vm5674_vm4, %v5673_v49  ;;  %v6424_v42 = vpack.c.bf16 %v2411_v36, %v2411_v36 }
0x1e8d   :  { %v2414_v38 = vpop.f32.mrb[67].mxu1 }
0x1e8e   :  { %v2647_v44 = vsel %vm2214_vm9, %v6424_v42, 0 }
0x1e8f   :  { %2493 = vrot.lane.b32.xlu0 %v6420_v40, %s6904_s24 }
0x1efd   :  { %v2498_v43 = vpop.permute.xlu0 %2497 }
0x1efe   :  { %5133 = vmatmul.mubr.msk.f32.vlgmr.msra.gmra.mrb[62].mxu1 %vm176_vm1, %v2498_v43 }
0x1eff   :  { %5142 = vmatpush3.bf16.msra.mxu1 %v2647_v44  ;;  %5143 = vmatprep.mubr.msk.bf16.mxu1 %vm5674_vm4, %v5673_v49 }
0x1f00   :  { %5147 = vmatprep.subr.bf16.mxu1 %v5673_v49 }
0x1f01   :  { %v6441_v55 = vpop.permute.xlu0 %2493 }
0x1f02   :  { %v2496_v57 = vmul.f32 %v6441_v55, %v2409_v35 }
0x1f5e   :  { %v2486_v46 = vpop.f32.mrb[50].mxu0 }
0x1f5f   :  { %v2490_v48 = vmul.f32 %v2486_v46, %v6435_v45  ;;  %v5115_v50 = vpop.f32.mrb[51].mxu0 }
0x1f61   :  { %v2491_v51 = vadd.f32 %v2490_v48, %v2416_v47 }
0x1f63   :  { %v2577_v39 = vpack.c.bf16 %v2491_v51, %v2491_v51 }
0x1fd1   :  { %v2567_v52 = vpop.f32.mrb[62].mxu1 }
0x1fd2   :  { %v2571_v53 = vmul.f32 %v2567_v52, %v6435_v45  ;;  %v5134_v54 = vpop.f32.mrb[63].mxu1 }
0x1fd4   :  { %2573 = vrot.lane.b32.xlu0 %v2571_v53, %s6904_s24 }
0x2046   :  { %v2574_v58 = vpop.permute.xlu0 %2573 }
0x2047   :  { %v2576_v30 = vadd.f32 %v2574_v58, %v2496_v57 }
0x2049   :  { %v2578_v59 = vpack.c.bf16 %v2576_v30, %v2576_v30 }
0x204b   :  { %2580 = vrot.lane.b32.xlu0 %v2578_v59, %s6904_s24 }
0x204f   :  { %2298 = vperm.xlu0 %5433, %v2071_v60  }
0x20bd   :  { %v2581_v61 = vpop.permute.xlu0 %2580 }
0x20be   :  { %v2586_v56 = vsel %vm810_vm11, %v2581_v61, 0 }
0x20bf   :  { %5136 = vmatpush3.bf16.xpose.msra.mxu0 %v2586_v56 }
0x20c0   :  { %5153 = vmatprep.subr.bf16.mxu0 %v5673_v49 }
0x20c6   :  { %5138 = vmatmul.mubr.msk.bf16.vlgmr.msra.gmra.mrb[52].mxu0 %vm810_vm11, %v2577_v39 }
0x20c7   :  { %5155 = vmatprep.mubr.msk.bf16.mxu0 %vm5674_vm4, %v5673_v49 }
0x20ce   :  { %v2299_v0 = vpop.permute.xlu0 %2298 }
0x20cf   :  { %vm6456_vm12 = vcmp.ge.f32.partialorder %v2299_v0, %v4552_v63 }
0x2199   :  { %v2622_v4 = vpop.f32.mrb[52].mxu0 }
0x219a   :  { %v2628_v5 = vmul.f32 0.25, %v2622_v4  ;;  %v5139_v34 = vpop.f32.mrb[53].mxu0 }
0x219b   :  { %v2625_v7 = vpop.f32.mrb[54].mxu0 }
0x219c   :  { %v5140_v8 = vpop.f32.mrb[55].mxu0  ;;  %v2629_v9 = vsel %vm6456_vm12, %v2628_v5, -1e+30 }
0x219d   :  { %v2630_v2 = vsel %vm350_vm6, %v2629_v9, -inf }
0x219e   :  { %2631 = vmax.xlane.f32.xlu1 %v2630_v2 }
0x21af   :  { %2692 = vrot.lane.b32.xlu1 %v2578_v59, %s6906_s27 }
0x21b3   :  { %2690 = vrot.lane.b32.xlu1 %v2577_v39, %s5681_s3 }
0x21b7   :  { %2805 = vrot.lane.b32.xlu1 %v2578_v59, %s5692_s18 }
0x21bb   :  { %2803 = vrot.lane.b32.xlu1 %v2577_v39, %s5675_s20 }
0x21bf   :  { %2917 = vrot.lane.b32.xlu1 %v2578_v59, %s6908_s22 }
0x222b   :  { %v2632_v10 = vpop.xlane.xlu1 %2631 }
0x222c   :  { %v2633_v11 = vsub.f32 %v2629_v9, %v2632_v10 }
0x222e   :  { %v2634_v12 = vmul.f32 1.442695, %v2633_v11 }
0x222f   :  { %v2693_v16 = vpop.permute.xlu1 %2692 }
0x2230   :  { %5600 = vpow2.f32 %v2634_v12  ;;  %v2698_v25 = vsel %vm810_vm11, %v2693_v16, 0 }
0x2233   :  { %v2691_v20 = vpop.permute.xlu1 %2690 }
0x2237   :  { %v2806_v27 = vpop.permute.xlu1 %2805 }
0x2238   :  { %v2811_v28 = vsel %vm810_vm11, %v2806_v27, 0 }
0x223a   :  { %v5601_v13 = vpop.eup %5600 }
0x223b   :  { %v2636_v14 = vsel %vm350_vm6, %v5601_v13, 0.0  ;;  %v2804_v21 = vpop.permute.xlu1 %2803 }
0x223c   :  { %2637 = vadd.xlane.f32.xlu0 %v2636_v14 }
0x223f   :  { %v2918_v29 = vpop.permute.xlu1 %2917 }
0x2240   :  { %v2923_v31 = vsel %vm810_vm11, %v2918_v29, 0 }
0x2252   :  { %2915 = vrot.lane.b32.xlu0 %v2577_v39, %s5683_s26 }
0x22c9   :  { %v2638_v15 = vpop.xlane.xlu0 %2637 }
0x22ca   :  { %5602 = vrcp.f32 %v2638_v15 }
0x22cd   :  { %v2916_v32 = vpop.permute.xlu0 %2915 }
0x22d4   :  { %v5603_v18 = vpop.eup %5602 }
0x22d5   :  { %v2640_v22 = vmul.f32 %v5603_v18, %v5601_v13 }
0x22d7   :  { %v2641_v24 = vpack.c.bf16 %v2640_v22, %v2640_v22 }
0x22d9   :  { %5144 = vmatmul.mubr.msk.bf16.vlgmr.msra.gmra.mrb[68].mxu1 %vm350_vm6, %v2641_v24 }
0x22da   :  { %5148 = vmatpush3.bf16.xpose.msra.mxu1 %v2698_v25  ;;  %5149 = vmatprep.mubr.msk.bf16.mxu1 %vm5674_vm4, %v5673_v49 }
0x22db   :  { %5159 = vmatprep.subr.bf16.mxu1 %v5673_v49 }
0x22e1   :  { %5150 = vmatmul.mubr.msk.bf16.vlgmr.msra.gmra.mrb[72].mxu1 %vm810_vm11, %v2691_v20 }
0x22e2   :  { %5160 = vmatpush3.bf16.xpose.msra.mxu1 %v2811_v28  ;;  %5161 = vmatprep.mubr.msk.bf16.mxu1 %vm5674_vm4, %v5673_v49 }
0x22e3   :  { %5171 = vmatprep.subr.bf16.mxu1 %v5673_v49 }
0x22e9   :  { %5162 = vmatmul.mubr.msk.bf16.vlgmr.msra.gmra.mrb[76].mxu1 %vm810_vm11, %v2804_v21 }
0x22ea   :  { %5172 = vmatpush3.bf16.xpose.msra.mxu1 %v2923_v31  ;;  %5173 = vmatprep.mubr.msk.bf16.mxu1 %vm5674_vm4, %v5673_v49 }
0x22eb   :  { %5183 = vmatprep.subr.bf16.mxu1 %v5673_v49 }
0x22f1   :  { %5174 = vmatmul.mubr.msk.bf16.vlgmr.msra.gmra.mrb[80].mxu1 %vm810_vm11, %v2916_v32 }
0x22f2   :  { %5191 = vmatprep.mubr.msk.bf16.mxu1 %vm5674_vm4, %v5673_v49 }
0x23ac   :  { %v6488_v33 = vpop.f32.mrb[68].mxu1 }
0x23ad   :  { %v5145_v3 = vpop.f32.mrb[69].mxu1 }
0x23ae   :  { %v2686_v35 = vpop.f32.mrb[70].mxu1 }
0x23af   :  { %v5146_v36 = vpop.f32.mrb[71].mxu1 }
0x23b4   :  { %v2734_v37 = vpop.f32.mrb[72].mxu1 }
0x23b5   :  { %v2740_v38 = vmul.f32 0.25, %v2734_v37  ;;  %v5151_v43 = vpop.f32.mrb[73].mxu1 }
0x23b6   :  { %v2737_v44 = vpop.f32.mrb[74].mxu1 }
0x23b7   :  { %v5152_v46 = vpop.f32.mrb[75].mxu1  ;;  %v2741_v47 = vsel %vm6456_vm12, %v2740_v38, -1e+30  ;;  %v5486_v44 = vld [vmem:[%s6877_s15] sm:$0xff]  }
0x23b8   :  { %v2742_v48 = vsel %vm350_vm6, %v2741_v47, -inf  ;;  %5184 = vmatpush3.bf16.msra.mxu1 %v5486_v44  ;;  %v5487_v46 = vld [vmem:[%s6877_s15 + $0x8] sm:$0xff]   ;;  %v5509_v44 = vld [vmem:[%s6879_s17 + $0x38] sm:$0xff]  }
0x23b9   :  { %2743 = vmax.xlane.f32.xlu1 %v2742_v48  ;;  %5185 = vmatprep.subr.bf16.mxu1 %v5673_v49 }
0x23bc   :  { %v2847_v50 = vpop.f32.mrb[76].mxu1  ;;  %5186 = vmatpush3.bf16.msra.mxu1 %v5487_v46 }
0x23bd   :  { %v2853_v51 = vmul.f32 0.25, %v2847_v50  ;;  %v5163_v52 = vpop.f32.mrb[77].mxu1  ;;  %5187 = vmatprep.subr.bf16.mxu1 %v5673_v49 }
0x23be   :  { %v2850_v53 = vpop.f32.mrb[78].mxu1 }
0x23bf   :  { %v5164_v54 = vpop.f32.mrb[79].mxu1  ;;  %v2854_v57 = vsel %vm6456_vm12, %v2853_v51, -1e+30  ;;  %v5489_v53 = vld [vmem:[%s6877_s15 + $0x18] sm:$0xff]  }
0x23c0   :  { %v2855_v58 = vsel %vm350_vm6, %v2854_v57, -inf }
0x23c1   :  { %2856 = vmax.xlane.f32.xlu0 %v2855_v58 }
0x23c4   :  { %v2959_v30 = vpop.f32.mrb[80].mxu1 }
0x23c5   :  { %v2965_v59 = vmul.f32 0.25, %v2959_v30  ;;  %v5175_v60 = vpop.f32.mrb[81].mxu1 }
0x23c6   :  { %v2962_v61 = vpop.f32.mrb[82].mxu1 }
0x23c7   :  { %v5176_v56 = vpop.f32.mrb[83].mxu1  ;;  %v2966_v39 = vsel %vm6456_vm12, %v2965_v59, -1e+30 }
0x23c8   :  { %v2967_v63 = vsel %vm350_vm6, %v2966_v39, -inf }
0x23c9   :  { %2968 = vmax.xlane.f32.xlu1 %v2967_v63 }
0x23d7   :  { %2755 = vrot.lane.b32.xlu0 %v6424_v42, %s5681_s3 }
0x23da   :  { %2867 = vrot.lane.b32.xlu1 %v6424_v42, %s5675_s20 }
0x2446   :  { %v2744_v0 = vpop.xlane.xlu1 %2743 }
0x2447   :  { %v2745_v4 = vsub.f32 %v2741_v47, %v2744_v0  ;;  %v5488_v47 = vld [vmem:[%s6877_s15 + $0x10] sm:$0xff]  }
0x2448   :  { %5188 = vmatpush3.bf16.msra.mxu1 %v5488_v47 }
0x2449   :  { %v2746_v5 = vmul.f32 1.442695, %v2745_v4  ;;  %5189 = vmatprep.subr.bf16.mxu1 %v5673_v49 }
0x244b   :  { %5604 = vpow2.f32 %v2746_v5 }
0x244c   :  { %5190 = vmatpush3.bf16.msra.mxu1 %v5489_v53 }
0x244d   :  { %5195 = vmatprep.subr.bf16.mxu1 %v5673_v49 }
0x244e   :  { %v2857_v34 = vpop.xlane.xlu0 %2856 }
0x244f   :  { %v2858_v7 = vsub.f32 %v2854_v57, %v2857_v34 }
0x2451   :  { %v2859_v8 = vmul.f32 1.442695, %v2858_v7 }
0x2452   :  { %v2756_v9 = vpop.permute.xlu0 %2755 }
0x2453   :  { %5606 = vpow2.f32 %v2859_v8  ;;  %v2761_v2 = vsel %vm2214_vm9, %v2756_v9, 0 }
0x2454   :  { %5154 = vmatpush3.bf16.msra.mxu0 %v2761_v2 }
0x2455   :  { %v5605_v10 = vpop.eup %5604  ;;  %5165 = vmatprep.subr.bf16.mxu0 %v5673_v49 }
0x2456   :  { %v2969_v11 = vpop.xlane.xlu1 %2968  ;;  %v2748_v12 = vsel %vm350_vm6, %v5605_v10, 0.0 }
0x2457   :  { %v2970_v13 = vsub.f32 %v2966_v39, %v2969_v11  ;;  %2749 = vadd.xlane.f32.xlu1 %v2748_v12 }
0x2459   :  { %v2971_v14 = vmul.f32 1.442695, %v2970_v13  ;;  %v5492_v13 = vld [vmem:[%s6878_s16 + $0x4] ss:$8 sps:$4 sm:$0xff]  }
0x245a   :  { %v2868_v22 = vpop.permute.xlu1 %2867 }
0x245b   :  { %5608 = vpow2.f32 %v2971_v14  ;;  %v2873_v29 = vsel %vm2214_vm9, %v2868_v22, 0  ;;  %v5490_v14 = vld [vmem:[%s6878_s16] ss:$8 sps:$4 sm:$0xff]   ;;  %v5501_v22 = vld [vmem:[%s6878_s16 + $0x34] ss:$8 sps:$4 sm:$0xff]  }
0x245d   :  { %v5607_v15 = vpop.eup %5606 }
0x245e   :  { %v2861_v16 = vsel %vm350_vm6, %v5607_v15, 0.0 }
0x245f   :  { %2862 = vadd.xlane.f32.xlu1 %v2861_v16  ;;  %v5498_v16 = vld [vmem:[%s6878_s16 + $0x24] ss:$8 sps:$4 sm:$0xff]  }
0x2465   :  { %v5609_v18 = vpop.eup %5608 }
0x2466   :  { %v2973_v20 = vsel %vm350_vm6, %v5609_v18, 0.0 }
0x2467   :  { %2974 = vadd.xlane.f32.xlu1 %v2973_v20  ;;  %v5499_v20 = vld [vmem:[%s6878_s16 + $0x30] ss:$8 sps:$4 sm:$0xff]  }
0x2478   :  { %2979 = vrot.lane.b32.xlu1 %v6424_v42, %s5683_s26 }
0x24e4   :  { %v2750_v24 = vpop.xlane.xlu1 %2749 }
0x24e5   :  { %5610 = vrcp.f32 %v2750_v24 }
0x24ec   :  { %v2863_v25 = vpop.xlane.xlu1 %2862 }
0x24ed   :  { %5612 = vrcp.f32 %v2863_v25 }
0x24ef   :  { %v5611_v27 = vpop.eup %5610 }
0x24f0   :  { %v2752_v21 = vmul.f32 %v5611_v27, %v5605_v10 }
0x24f2   :  { %v2753_v28 = vpack.c.bf16 %v2752_v21, %v2752_v21 }
0x24f4   :  { %5156 = vmatmul.mubr.msk.bf16.vlgmr.msra.gmra.mrb[56].mxu0 %vm350_vm6, %v2753_v28  ;;  %v2975_v31 = vpop.xlane.xlu1 %2974  ;;  %v4579_v28 = vld [vmem:[%s6875_s13 + $0x1] ss:$0 sm:$0xff] }
0x24f5   :  { %5166 = vmatpush3.bf16.msra.mxu0 %v2873_v29  ;;  %5614 = vrcp.f32 %v2975_v31  ;;  %5167 = vmatprep.mubr.msk.bf16.mxu0 %vm5674_vm4, %v5673_v49 }
0x24f6   :  { %5177 = vmatprep.subr.bf16.mxu0 %v5673_v49 }
0x24f7   :  { %v5613_v42 = vpop.eup %5612 }
0x24f8   :  { %v2865_v32 = vmul.f32 %v5613_v42, %v5607_v15  ;;  %v2980_v3 = vpop.permute.xlu1 %2979  ;;  %v5493_v15 = vld [vmem:[%s6878_s16 + $0x10] ss:$8 sps:$4 sm:$0xff]  }
0x24f9   :  { %v2985_v36 = vsel %vm2214_vm9, %v2980_v3, 0  ;;  %v5503_v3 = vld [vmem:[%s6879_s17 + $0x8] sm:$0xff]  }
0x24fa   :  { %v2866_v35 = vpack.c.bf16 %v2865_v32, %v2865_v32  ;;  %v5502_v32 = vld [vmem:[%s6879_s17] sm:$0xff]  }
0x24fc   :  { %5168 = vmatmul.mubr.msk.bf16.vlgmr.msra.gmra.mrb[60].mxu0 %vm350_vm6, %v2866_v35  ;;  %v5504_v35 = vld [vmem:[%s6879_s17 + $0x10] sm:$0xff]  }
0x24fd   :  { %5178 = vmatpush3.bf16.msra.mxu0 %v2985_v36  ;;  %5179 = vmatprep.mubr.msk.bf16.mxu0 %vm5674_vm4, %v5673_v49  ;;  %v5505_v36 = vld [vmem:[%s6879_s17 + $0x18] sm:$0xff]  }
0x24fe   :  { %3189 = vmatprep.subr.bf16.mxu0 %v5492_v13 }
0x24ff   :  { %v5615_v37 = vpop.eup %5614 }
0x2500   :  { %v2977_v38 = vmul.f32 %v5615_v37, %v5609_v18  ;;  %v5496_v18 = vld [vmem:[%s6878_s16 + $0x20] ss:$8 sps:$4 sm:$0xff]  }
0x2501   :  { %v5506_v37 = vld [vmem:[%s6879_s17 + $0x20] sm:$0xff]  }
0x2502   :  { %v2978_v43 = vpack.c.bf16 %v2977_v38, %v2977_v38  ;;  %v5507_v38 = vld [vmem:[%s6879_s17 + $0x28] sm:$0xff]  }
0x2504   :  { %5180 = vmatmul.mubr.msk.bf16.vlgmr.msra.gmra.mrb[64].mxu0 %vm350_vm6, %v2978_v43  ;;  %v5508_v43 = vld [vmem:[%s6879_s17 + $0x30] sm:$0xff]  }
0x2505   :  { %3221 = vmatprep.mubr.bf16.mxu0 %v5672_v1  ;;  %3190 = vmatpush1.bf16.msra.mxu0 %v5490_v14  ;;  %v4599_v14 = vld [vmem:[%s6875_s13 + $0x2] ss:$0 sm:$0xff] }
0x25c7   :  { %v2797_v48 = vpop.f32.mrb[56].mxu0 }
0x25c8   :  { %3028 = vrot.lane.b32.xlu0 %v2797_v48, %s6908_s22  ;;  %v5157_v50 = vpop.f32.mrb[57].mxu0 }
0x25c9   :  { %v2800_v51 = vpop.f32.mrb[58].mxu0 }
0x25ca   :  { %v5158_v52 = vpop.f32.mrb[59].mxu0 }
0x25cf   :  { %v2909_v54 = vpop.f32.mrb[60].mxu0 }
0x25d0   :  { %3032 = vrot.lane.b32.xlu1 %v2909_v54, %s5692_s18  ;;  %v5169_v57 = vpop.f32.mrb[61].mxu0 }
0x25d1   :  { %v2912_v58 = vpop.f32.mrb[62].mxu0 }
0x25d2   :  { %v5170_v30 = vpop.f32.mrb[63].mxu0 }
0x25d7   :  { %v3021_v59 = vpop.f32.mrb[64].mxu0 }
0x25d8   :  { %3036 = vrot.lane.b32.xlu0 %v3021_v59, %s6906_s27  ;;  %v5181_v60 = vpop.f32.mrb[65].mxu0 }
0x25d9   :  { %v3024_v61 = vpop.f32.mrb[66].mxu0 }
0x25da   :  { %v5182_v56 = vpop.f32.mrb[67].mxu0 }
0x263a   :  { %v3029_v39 = vpop.permute.xlu0 %3028 }
0x263b   :  { %v3039_v0 = vsel %vm810_vm11, %v6488_v33, %v3029_v39 }
0x2642   :  { %v3033_v63 = vpop.permute.xlu1 %3032 }
0x2643   :  { %v3040_v4 = vsel %vm302_vm5, %v3039_v0, %v3033_v63 }
0x264a   :  { %v3037_v5 = vpop.permute.xlu0 %3036 }
0x264b   :  { %v3042_v34 = vsel %vm3041_vm13, %v3040_v4, %v3037_v5  ;;  %v5512_v4 = vld [vmem:[%s6876_s14 + $0x44] ss:$8 sps:$4 sm:$0xff]   ;;  %v5510_v5 = vld [vmem:[%s6876_s14 + $0x40] ss:$8 sps:$4 sm:$0xff]  }
0x264c   :  { %v3043_v7 = vpack.c.bf16 %v3042_v34, %v3042_v34  ;;  %v5515_v34 = vld [vmem:[%s6876_s14 + $0x54] ss:$8 sps:$4 sm:$0xff]  }
0x264e   :  { %5192 = vmatmul.mubr.msk.bf16.vlgmr.msra.gmra.mrb[84].mxu1 %vm176_vm1, %v3043_v7  ;;  %v5513_v7 = vld [vmem:[%s6876_s14 + $0x50] ss:$8 sps:$4 sm:$0xff]  }
0x264f   :  { %5211 = vmatprep.mubr.msk.bf16.mxu1 %vm5674_vm4, %v5673_v49  ;;  %5196 = vmatpush3.bf16.msra.mxu1 %v5502_v32 }
0x2650   :  { %5197 = vmatprep.subr.bf16.mxu1 %v5673_v49 }
0x2653   :  { %5198 = vmatpush3.bf16.msra.mxu1 %v5503_v3 }
0x2654   :  { %5199 = vmatprep.subr.bf16.mxu1 %v5673_v49 }
0x2657   :  { %5200 = vmatpush3.bf16.msra.mxu1 %v5504_v35 }
0x2658   :  { %5201 = vmatprep.subr.bf16.mxu1 %v5673_v49 }
0x265b   :  { %5202 = vmatpush3.bf16.msra.mxu1 %v5505_v36 }
0x265c   :  { %5203 = vmatprep.subr.bf16.mxu1 %v5673_v49 }
0x265f   :  { %5204 = vmatpush3.bf16.msra.mxu1 %v5506_v37 }
0x2660   :  { %5205 = vmatprep.subr.bf16.mxu1 %v5673_v49 }
0x2663   :  { %5206 = vmatpush3.bf16.msra.mxu1 %v5507_v38 }
0x2664   :  { %5207 = vmatprep.subr.bf16.mxu1 %v5673_v49 }
0x2667   :  { %5208 = vmatpush3.bf16.msra.mxu1 %v5508_v43 }
0x2668   :  { %5209 = vmatprep.subr.bf16.mxu1 %v5673_v49 }
0x266b   :  { %5210 = vmatpush3.bf16.msra.mxu1 %v5509_v44 }
0x266c   :  { %5393 = vmatprep.subr.bf16.mxu1 %v5690_v62 }
0x2721   :  { %v3113_v8 = vpop.f32.mrb[84].mxu1 }
0x2722   :  { %v6548_v9 = vadd.f32 %v3113_v8, %v6328_v41  ;;  %v5193_v2 = vpop.f32.mrb[85].mxu1  ;;  %v5495_v41 = vld [vmem:[%s6878_s16 + $0x14] ss:$8 sps:$4 sm:$0xff]   ;;  %v5518_v8 = vld [vmem:[%s6876_s14 + $0x64] ss:$8 sps:$4 sm:$0xff]  }
0x2723   :  { %v3116_v10 = vpop.f32.mrb[86].mxu1  ;;  %3191 = vmatprep.subr.bf16.mxu0 %v5495_v41  ;;  %v5519_v2 = vld [vmem:[%s6876_s14 + $0x70] ss:$8 sps:$4 sm:$0xff]  }
0x2724   :  { %v5194_v11 = vpop.f32.mrb[87].mxu1  ;;  %v3122_v33 = vmul.f32 %v6548_v9, %v6548_v9  ;;  %3192 = vmatpush1.bf16.msra.mxu0 %v5493_v15  ;;  %v5521_v10 = vld [vmem:[%s6876_s14 + $0x74] ss:$8 sps:$4 sm:$0xff]  }
0x2725   :  { %3193 = vmatprep.subr.bf16.mxu0 %v5498_v16 }
0x2726   :  { %v3123_v12 = vsel %vm176_vm1, %v3122_v33, 0.0 }
0x2727   :  { %3124 = vadd.xlane.f32.xlu1 %v3123_v12 }
0x2728   :  { %3194 = vmatpush1.bf16.msra.mxu0 %v5496_v18 }
0x2729   :  { %3195 = vmatprep.subr.bf16.mxu0 %v5501_v22 }
0x272c   :  { %3196 = vmatpush1.bf16.msra.mxu0 %v5499_v20 }
0x272d   :  { %3414 = vmatprep.subr.bf16.mxu0 %v5512_v4 }
0x27b4   :  { %v3125_v24 = vpop.xlane.xlu1 %3124 }
0x27b5   :  { %v3126_v25 = vmul.f32 0.015625, %v3125_v24 }
0x27b7   :  { %v3127_v27 = vadd.f32 1e-06, %v3126_v25 }
0x27b9   :  { %5616 = vrsqrt.f32 %v3127_v27 }
0x27c3   :  { %v5617_v21 = vpop.eup %5616 }
0x27c4   :  { %v3129_v29 = vmul.f32 %v5617_v21, %v6548_v9 }
0x27c6   :  { %v3136_v31 = vmul.f32 %v4579_v28, %v3129_v29 }
0x27c8   :  { %v3137_v42 = vpack.c.bf16 %v3136_v31, %v3136_v31 }
0x27ca   :  { %4588 = vmatmul.mubr.msk.bf16.vlgmr.msra.gmra.mrb[68].mxu0 %vm176_vm1, %v3137_v42 }
0x27cb   :  { %3446 = vmatprep.mubr.bf16.mxu0 %v5672_v1  ;;  %3415 = vmatpush1.bf16.msra.mxu0 %v5510_v5 }
0x27cc   :  { %3416 = vmatprep.subr.bf16.mxu0 %v5515_v34 }
0x27cf   :  { %3417 = vmatpush1.bf16.msra.mxu0 %v5513_v7 }
0x27d0   :  { %3418 = vmatprep.subr.bf16.mxu0 %v5518_v8 }
0x289d   :  { %v3223_v46 = vpop.f32.mrb[68].mxu0 }
0x289e   :  { %v4589_v47 = vmul.f32 -1.442695, %v3223_v46  ;;  %v3225_v48 = vpop.f32.mrb[69].mxu0 }
0x289f   :  { %v3227_v50 = vpop.f32.mrb[70].mxu0 }
0x28a0   :  { %5618 = vpow2.f32 %v4589_v47  ;;  %v3228_v51 = vpop.f32.mrb[71].mxu0 }
0x28aa   :  { %v5619_v52 = vpop.eup %5618 }
0x28ab   :  { %v3233_v53 = vadd.f32 1.0, %v5619_v52 }
0x28ad   :  { %5620 = vrcp.f32 %v3233_v53 }
0x28b7   :  { %v5621_v54 = vpop.eup %5620 }
0x28b8   :  { %v3236_v57 = vmul.f32 %v5621_v54, %v3223_v46 }
0x28ba   :  { %v3237_v58 = vmul.f32 %v3236_v57, %v3225_v48 }
0x28bc   :  { %v3238_v30 = vpack.c.bf16 %v3237_v58, %v3237_v58 }
0x28be   :  { %5212 = vmatmul.mubr.bf16.vlgmr.msra.gmra.mrb[88].mxu1 %v3238_v30 }
0x28bf   :  { %5395 = vmatpush3.bf16.msra.mxu1 %v6367_v17  ;;  %5250 = vmatprep.mubr.msk.f32.mxu1 %vm5674_vm4, %v5673_v49 }
0x28c0   :  { %5396 = vmatprep.subr.bf16.mxu1 %v5690_v62 }
0x28c3   :  { %5398 = vmatpush3.bf16.msra.mxu1 %v6373_v19 }
0x28c4   :  { %5399 = vmatprep.subr.bf16.mxu1 %v5690_v62 }
0x28c7   :  { %5401 = vmatpush3.bf16.msra.mxu1 %v6383_v23 }
0x28c8   :  { %5402 = vmatprep.subr.bf16.mxu1 %v5690_v62 }
0x28cb   :  { %5404 = vmatpush3.bf16.msra.mxu1 %v6393_v26 }
0x28cc   :  { %5265 = vmatprep.subr.bf16.mxu1 %v5673_v49 }
0x2991   :  { %v3337_v59 = vpop.f32.mrb[88].mxu1 }
0x2992   :  { %v6626_v60 = vadd.f32 %v3337_v59, %v6548_v9  ;;  %v5213_v61 = vpop.f32.mrb[89].mxu1  ;;  %v5516_v9 = vld [vmem:[%s6876_s14 + $0x60] ss:$8 sps:$4 sm:$0xff]  }
0x2993   :  { %v3340_v56 = vpop.f32.mrb[90].mxu1  ;;  %3419 = vmatpush1.bf16.msra.mxu0 %v5516_v9 }
0x2994   :  { %v5214_v39 = vpop.f32.mrb[91].mxu1  ;;  %v3346_v63 = vmul.f32 %v6626_v60, %v6626_v60  ;;  %3420 = vmatprep.subr.bf16.mxu0 %v5521_v10 }
0x2996   :  { %v3347_v0 = vsel %vm176_vm1, %v3346_v63, 0.0 }
0x2997   :  { %3348 = vadd.xlane.f32.xlu0 %v3347_v0  ;;  %3421 = vmatpush1.bf16.msra.mxu0 %v5519_v2 }
0x2998   :  { %5381 = vmatprep.subr.bf16.mxu0 %v5690_v62 }
0x2a24   :  { %v3349_v11 = vpop.xlane.xlu0 %3348 }
0x2a25   :  { %v3350_v33 = vmul.f32 0.015625, %v3349_v11 }
0x2a27   :  { %v3351_v12 = vadd.f32 1e-06, %v3350_v33 }
0x2a29   :  { %5622 = vrsqrt.f32 %v3351_v12 }
0x2a33   :  { %v5623_v13 = vpop.eup %5622 }
0x2a34   :  { %v3353_v41 = vmul.f32 %v5623_v13, %v6626_v60 }
0x2a36   :  { %v3360_v15 = vmul.f32 %v4599_v14, %v3353_v41 }
0x2a38   :  { %v3361_v16 = vpack.c.bf16 %v3360_v15, %v3360_v15 }
0x2a3a   :  { %4616 = vmatmul.mubr.msk.bf16.vlgmr.msra.gmra.mrb[72].mxu0 %vm176_vm1, %v3361_v16 }
0x2a3b   :  { %5383 = vmatpush3.bf16.msra.mxu0 %v6367_v17  ;;  %5231 = vmatprep.mubr.msk.f32.mxu0 %vm5674_vm4, %v5673_v49 }
0x2a3c   :  { %5384 = vmatprep.subr.bf16.mxu0 %v5690_v62 }
0x2a3f   :  { %5386 = vmatpush3.bf16.msra.mxu0 %v6373_v19 }
0x2a40   :  { %5387 = vmatprep.subr.bf16.mxu0 %v5690_v62 }
0x2a43   :  { %5389 = vmatpush3.bf16.msra.mxu0 %v6383_v23 }
0x2a44   :  { %5390 = vmatprep.subr.bf16.mxu0 %v5690_v62 }
0x2a47   :  { %5392 = vmatpush3.bf16.msra.mxu0 %v6393_v26 }
0x2a48   :  { %5253 = vmatprep.subr.bf16.mxu0 %v5673_v49 }
0x2b0d   :  { %v3448_v18 = vpop.f32.mrb[72].mxu0 }
0x2b0e   :  { %3532 = vrot.lane.b32.xlu0 %v3448_v18, %s6904_s24  ;;  %v3450_v17 = vpop.f32.mrb[73].mxu0  ;;  %5232 = vmatmul.mubr.msk.f32.vlgmr.msra.gmra.mrb[76].mxu0 %vm176_vm1, %v3448_v18  ;;  %v3455_v23 = vmul.f32 %v3448_v18, %v6420_v40  ;;  %v3531_v29 = vmul.f32 %v3448_v18, %v6441_v55 }
0x2b0f   :  { %v3452_v20 = vpop.f32.mrb[74].mxu0  ;;  %5255 = vmatprep.mubr.msk.bf16.mxu0 %vm5674_vm4, %v5673_v49  ;;  %v6694_v36 = vpack.c.bf16 %v3450_v17, %v3450_v17 }
0x2b10   :  { %v3453_v19 = vpop.f32.mrb[75].mxu0 }
0x2b11   :  { %v3682_v44 = vsel %vm2214_vm9, %v6694_v36, 0 }
0x2b80   :  { %v3533_v22 = vpop.permute.xlu0 %3532 }
0x2b81   :  { %5251 = vmatmul.mubr.msk.f32.vlgmr.msra.gmra.mrb[92].mxu1 %vm176_vm1, %v3533_v22 }
0x2b82   :  { %5267 = vmatprep.mubr.msk.bf16.mxu1 %vm5674_vm4, %v5673_v49 }
0x2be1   :  { %v3525_v62 = vpop.f32.mrb[76].mxu0 }
0x2be2   :  { %v3529_v26 = vmul.f32 %v3525_v62, %v6435_v45  ;;  %v5233_v24 = vpop.f32.mrb[77].mxu0 }
0x2be4   :  { %v3530_v25 = vadd.f32 %v3529_v26, %v3455_v23 }
0x2be6   :  { %v3612_v40 = vpack.c.bf16 %v3530_v25, %v3530_v25 }
0x2c54   :  { %v3602_v27 = vpop.f32.mrb[92].mxu1 }
0x2c55   :  { %v3606_v21 = vmul.f32 %v3602_v27, %v6435_v45  ;;  %v5252_v28 = vpop.f32.mrb[93].mxu1 }
0x2c57   :  { %3608 = vrot.lane.b32.xlu1 %v3606_v21, %s6904_s24 }
0x2cc9   :  { %v3609_v31 = vpop.permute.xlu1 %3608 }
0x2cca   :  { %v3611_v42 = vadd.f32 %v3609_v31, %v3531_v29 }
0x2ccc   :  { %v3613_v32 = vpack.c.bf16 %v3611_v42, %v3611_v42 }
0x2cce   :  { %3727 = vrot.lane.b32.xlu0 %v3613_v32, %s6906_s27  ;;  %3615 = vrot.lane.b32.xlu1 %v3613_v32, %s6904_s24 }
0x2cd2   :  { %3840 = vrot.lane.b32.xlu0 %v3613_v32, %s5692_s18  ;;  %3725 = vrot.lane.b32.xlu1 %v3612_v40, %s5681_s3 }
0x2cd6   :  { %3952 = vrot.lane.b32.xlu0 %v3613_v32, %s6908_s22  ;;  %3838 = vrot.lane.b32.xlu1 %v3612_v40, %s5675_s20 }
0x2cda   :  { %3950 = vrot.lane.b32.xlu1 %v3612_v40, %s5683_s26 }
0x2d40   :  { %v3728_v45 = vpop.permute.xlu0 %3727  ;;  %v3616_v55 = vpop.permute.xlu1 %3615 }
0x2d41   :  { %v3733_v3 = vsel %vm810_vm11, %v3728_v45, 0  ;;  %v3621_v35 = vsel %vm810_vm11, %v3616_v55, 0 }
0x2d42   :  { %5254 = vmatpush3.bf16.xpose.msra.mxu0 %v3621_v35  ;;  %5266 = vmatpush3.bf16.xpose.msra.mxu1 %v3733_v3 }
0x2d43   :  { %5259 = vmatprep.subr.bf16.mxu0 %v5673_v49  ;;  %5277 = vmatprep.subr.bf16.mxu1 %v5673_v49 }
0x2d44   :  { %v3841_v37 = vpop.permute.xlu0 %3840  ;;  %v3726_v38 = vpop.permute.xlu1 %3725 }
0x2d45   :  { %v3846_v43 = vsel %vm810_vm11, %v3841_v37, 0 }
0x2d48   :  { %v3953_v46 = vpop.permute.xlu0 %3952  ;;  %v3839_v47 = vpop.permute.xlu1 %3838 }
0x2d49   :  { %5256 = vmatmul.mubr.msk.bf16.vlgmr.msra.gmra.mrb[80].mxu0 %vm810_vm11, %v3612_v40  ;;  %5268 = vmatmul.mubr.msk.bf16.vlgmr.msra.gmra.mrb[96].mxu1 %vm810_vm11, %v3726_v38  ;;  %v3958_v48 = vsel %vm810_vm11, %v3953_v46, 0 }
0x2d4a   :  { %5260 = vmatpush3.bf16.msra.mxu0 %v3682_v44  ;;  %5278 = vmatpush3.bf16.xpose.msra.mxu1 %v3846_v43 }
0x2d4b   :  { %5279 = vmatprep.mubr.msk.bf16.mxu1 %vm5674_vm4, %v5673_v49  ;;  %5289 = vmatprep.subr.bf16.mxu1 %v5673_v49 }
0x2d4c   :  { %5261 = vmatprep.mubr.msk.bf16.mxu0 %vm5674_vm4, %v5673_v49  ;;  %5271 = vmatprep.subr.bf16.mxu0 %v5673_v49  ;;  %v3951_v50 = vpop.permute.xlu1 %3950 }
0x2d51   :  { %5280 = vmatmul.mubr.msk.bf16.vlgmr.msra.gmra.mrb[100].mxu1 %vm810_vm11, %v3839_v47 }
0x2d52   :  { %5290 = vmatpush3.bf16.xpose.msra.mxu1 %v3958_v48  ;;  %5291 = vmatprep.mubr.msk.bf16.mxu1 %vm5674_vm4, %v5673_v49 }
0x2d53   :  { %5301 = vmatprep.subr.bf16.mxu1 %v5673_v49 }
0x2d59   :  { %5292 = vmatmul.mubr.msk.bf16.vlgmr.msra.gmra.mrb[104].mxu1 %vm810_vm11, %v3951_v50 }
0x2d5a   :  { %5309 = vmatprep.mubr.msk.bf16.mxu1 %vm5674_vm4, %v5673_v49 }
0x2e1c   :  { %v3657_v51 = vpop.f32.mrb[80].mxu0  ;;  %v3769_v52 = vpop.f32.mrb[96].mxu1 }
0x2e1d   :  { %v3663_v53 = vmul.f32 0.25, %v3657_v51  ;;  %v3775_v54 = vmul.f32 0.25, %v3769_v52  ;;  %v5257_v57 = vpop.f32.mrb[81].mxu0  ;;  %v5269_v58 = vpop.f32.mrb[97].mxu1 }
0x2e1e   :  { %v3660_v30 = vpop.f32.mrb[82].mxu0  ;;  %v3772_v59 = vpop.f32.mrb[98].mxu1 }
0x2e1f   :  { %v3776_v61 = vsel %vm6456_vm12, %v3775_v54, -1e+30  ;;  %v5258_v56 = vpop.f32.mrb[83].mxu0  ;;  %v5270_v39 = vpop.f32.mrb[99].mxu1  ;;  %v3664_v63 = vsel %vm6456_vm12, %v3663_v53, -1e+30 }
0x2e20   :  { %v3665_v0 = vsel %vm350_vm6, %v3664_v63, -inf  ;;  %v3777_v4 = vsel %vm350_vm6, %v3776_v61, -inf  ;;  %v5522_v56 = vld [vmem:[%s6877_s15 + $0x20] sm:$0xff]  }
0x2e21   :  { %3666 = vmax.xlane.f32.xlu0 %v3665_v0  ;;  %3778 = vmax.xlane.f32.xlu1 %v3777_v4 }
0x2e22   :  { %5302 = vmatpush3.bf16.msra.mxu1 %v5522_v56 }
0x2e23   :  { %5303 = vmatprep.subr.bf16.mxu1 %v5673_v49 }
0x2e24   :  { %v3882_v5 = vpop.f32.mrb[100].mxu1 }
0x2e25   :  { %v3888_v34 = vmul.f32 0.25, %v3882_v5  ;;  %v5281_v7 = vpop.f32.mrb[101].mxu1 }
0x2e26   :  { %v3885_v8 = vpop.f32.mrb[102].mxu1 }
0x2e27   :  { %v5282_v9 = vpop.f32.mrb[103].mxu1  ;;  %v3889_v2 = vsel %vm6456_vm12, %v3888_v34, -1e+30 }
0x2e28   :  { %v3890_v10 = vsel %vm350_vm6, %v3889_v2, -inf  ;;  %v5524_v9 = vld [vmem:[%s6877_s15 + $0x30] sm:$0xff]  }
0x2e29   :  { %3891 = vmax.xlane.f32.xlu0 %v3890_v10 }
0x2e2c   :  { %v3994_v11 = vpop.f32.mrb[104].mxu1 }
0x2e2d   :  { %v4000_v33 = vmul.f32 0.25, %v3994_v11  ;;  %v5293_v12 = vpop.f32.mrb[105].mxu1 }
0x2e2e   :  { %v3997_v13 = vpop.f32.mrb[106].mxu1 }
0x2e2f   :  { %v5294_v14 = vpop.f32.mrb[107].mxu1  ;;  %v4001_v41 = vsel %vm6456_vm12, %v4000_v33, -1e+30 }
0x2e30   :  { %v4002_v15 = vsel %vm350_vm6, %v4001_v41, -inf }
0x2e31   :  { %4003 = vmax.xlane.f32.xlu0 %v4002_v15 }
0x2eae   :  { %v3667_v16 = vpop.xlane.xlu0 %3666  ;;  %v3779_v18 = vpop.xlane.xlu1 %3778 }
0x2eaf   :  { %v3668_v17 = vsub.f32 %v3664_v63, %v3667_v16  ;;  %v3780_v20 = vsub.f32 %v3776_v61, %v3779_v18 }
0x2eb1   :  { %v3669_v19 = vmul.f32 1.442695, %v3668_v17  ;;  %v3781_v22 = vmul.f32 1.442695, %v3780_v20 }
0x2eb3   :  { %5624 = vpow2.f32 %v3669_v19 }
0x2eb4   :  { %5626 = vpow2.f32 %v3781_v22 }
0x2eb6   :  { %v3892_v62 = vpop.xlane.xlu0 %3891 }
0x2eb7   :  { %v3893_v31 = vsub.f32 %v3889_v2, %v3892_v62  ;;  %v5525_v2 = vld [vmem:[%s6877_s15 + $0x38] sm:$0xff]  }
0x2eb9   :  { %v3894_v42 = vmul.f32 1.442695, %v3893_v31  ;;  %v5529_v31 = vld [vmem:[%s6878_s16 + $0x50] ss:$8 sps:$4 sm:$0xff]  }
0x2ebd   :  { %v5625_v23 = vpop.eup %5624 }
0x2ebe   :  { %v5627_v26 = vpop.eup %5626  ;;  %v4004_v24 = vpop.xlane.xlu0 %4003  ;;  %v3671_v25 = vsel %vm350_vm6, %v5625_v23, 0.0 }
0x2ebf   :  { %v4005_v27 = vsub.f32 %v4001_v41, %v4004_v24  ;;  %3672 = vadd.xlane.f32.xlu1 %v3671_v25  ;;  %v3783_v6 = vsel %vm350_vm6, %v5627_v26, 0.0 }
0x2ec0   :  { %3784 = vadd.xlane.f32.xlu0 %v3783_v6 }
0x2ec1   :  { %v4006_v21 = vmul.f32 1.442695, %v4005_v27 }
0x2ec3   :  { %5628 = vpow2.f32 %v4006_v21 }
0x2ec4   :  { %5630 = vpow2.f32 %v3894_v42  ;;  %v5534_v42 = vld [vmem:[%s6878_s16 + $0x64] ss:$8 sps:$4 sm:$0xff]  }
0x2ecd   :  { %v5629_v28 = vpop.eup %5628 }
0x2ece   :  { %v4008_v29 = vsel %vm350_vm6, %v5629_v28, 0.0  ;;  %v5631_v32 = vpop.eup %5630 }
0x2ecf   :  { %4009 = vadd.xlane.f32.xlu0 %v4008_v29  ;;  %v3896_v40 = vsel %vm350_vm6, %v5631_v32, 0.0  ;;  %v5526_v29 = vld [vmem:[%s6878_s16 + $0x40] ss:$8 sps:$4 sm:$0xff]  }
0x2ed0   :  { %3790 = vrot.lane.b32.xlu1 %v6694_v36, %s5681_s3 }
0x2ee5   :  { %3902 = vrot.lane.b32.xlu0 %v6694_v36, %s5675_s20 }
0x2ef4   :  { %3897 = vadd.xlane.f32.xlu1 %v3896_v40  ;;  %v5535_v40 = vld [vmem:[%s6878_s16 + $0x70] ss:$8 sps:$4 sm:$0xff]  }
0x2f05   :  { %4014 = vrot.lane.b32.xlu1 %v6694_v36, %s5683_s26 }
0x2f4c   :  { %v3673_v45 = vpop.xlane.xlu1 %3672 }
0x2f4d   :  { %5632 = vrcp.f32 %v3673_v45  ;;  %v3785_v55 = vpop.xlane.xlu0 %3784  ;;  %v5537_v45 = vld [vmem:[%s6878_s16 + $0x74] ss:$8 sps:$4 sm:$0xff]  }
0x2f4e   :  { %5634 = vrcp.f32 %v3785_v55 }
0x2f50   :  { %v3791_v37 = vpop.permute.xlu1 %3790 }
0x2f51   :  { %v3796_v44 = vsel %vm2214_vm9, %v3791_v37, 0 }
0x2f57   :  { %v5633_v3 = vpop.eup %5632 }
0x2f58   :  { %v3675_v35 = vmul.f32 %v5633_v3, %v5625_v23  ;;  %v5635_v43 = vpop.eup %5634 }
0x2f59   :  { %v3787_v47 = vmul.f32 %v5635_v43, %v5627_v26 }
0x2f5a   :  { %v3676_v38 = vpack.c.bf16 %v3675_v35, %v3675_v35 }
0x2f5b   :  { %v3788_v48 = vpack.c.bf16 %v3787_v47, %v3787_v47  ;;  %v5538_v47 = vld [vmem:[%s6879_s17 + $0x40] sm:$0xff]  }
0x2f5c   :  { %5262 = vmatmul.mubr.msk.bf16.vlgmr.msra.gmra.mrb[84].mxu0 %vm350_vm6, %v3676_v38  ;;  %v4010_v46 = vpop.xlane.xlu0 %4009  ;;  %v4641_v38 = vld [vmem:[%s6875_s13 + $0x3] ss:$0 sm:$0xff] }
0x2f5d   :  { %5272 = vmatpush3.bf16.msra.mxu0 %v3796_v44  ;;  %5273 = vmatprep.mubr.msk.bf16.mxu0 %vm5674_vm4, %v5673_v49 }
0x2f5e   :  { %5283 = vmatprep.subr.bf16.mxu0 %v5673_v49 }
0x2f60   :  { %v3903_v36 = vpop.permute.xlu0 %3902 }
0x2f61   :  { %v3908_v50 = vsel %vm2214_vm9, %v3903_v36, 0  ;;  %v5539_v36 = vld [vmem:[%s6879_s17 + $0x48] sm:$0xff]  }
0x2f64   :  { %5274 = vmatmul.mubr.msk.bf16.vlgmr.msra.gmra.mrb[88].mxu0 %vm350_vm6, %v3788_v48  ;;  %v5540_v48 = vld [vmem:[%s6879_s17 + $0x50] sm:$0xff]  }
0x2f65   :  { %5284 = vmatpush3.bf16.msra.mxu0 %v3908_v50  ;;  %5285 = vmatprep.mubr.msk.bf16.mxu0 %vm5674_vm4, %v5673_v49  ;;  %v5541_v50 = vld [vmem:[%s6879_s17 + $0x58] sm:$0xff]  }
0x2f66   :  { %5295 = vmatprep.subr.bf16.mxu0 %v5673_v49 }
0x2f81   :  { %v3898_v51 = vpop.xlane.xlu1 %3897 }
0x2f82   :  { %5636 = vrcp.f32 %v3898_v51  ;;  %v5542_v51 = vld [vmem:[%s6879_s17 + $0x60] sm:$0xff]  }
0x2f83   :  { %5638 = vrcp.f32 %v4010_v46 }
0x2f85   :  { %v4015_v54 = vpop.permute.xlu1 %4014 }
0x2f86   :  { %v4020_v30 = vsel %vm2214_vm9, %v4015_v54, 0  ;;  %v5545_v54 = vld [vmem:[%s6879_s17 + $0x78] sm:$0xff]  }
0x2f8c   :  { %v5637_v52 = vpop.eup %5636 }
0x2f8d   :  { %v3900_v53 = vmul.f32 %v5637_v52, %v5631_v32  ;;  %v5639_v58 = vpop.eup %5638  ;;  %v5532_v32 = vld [vmem:[%s6878_s16 + $0x60] ss:$8 sps:$4 sm:$0xff]  }
0x2f8e   :  { %v4012_v59 = vmul.f32 %v5639_v58, %v5629_v28  ;;  %v5528_v28 = vld [vmem:[%s6878_s16 + $0x44] ss:$8 sps:$4 sm:$0xff]  }
0x2f8f   :  { %v3901_v57 = vpack.c.bf16 %v3900_v53, %v3900_v53  ;;  %v5543_v52 = vld [vmem:[%s6879_s17 + $0x68] sm:$0xff]   ;;  %v5544_v53 = vld [vmem:[%s6879_s17 + $0x70] sm:$0xff]  }
0x2f90   :  { %v4013_v61 = vpack.c.bf16 %v4012_v59, %v4012_v59 }
0x2f91   :  { %5286 = vmatmul.mubr.msk.bf16.vlgmr.msra.gmra.mrb[92].mxu0 %vm350_vm6, %v3901_v57 }
0x2f92   :  { %5296 = vmatpush3.bf16.msra.mxu0 %v4020_v30  ;;  %5297 = vmatprep.mubr.msk.bf16.mxu0 %vm5674_vm4, %v5673_v49 }
0x2f93   :  { %4225 = vmatprep.subr.bf16.mxu0 %v5528_v28 }
0x2f99   :  { %5298 = vmatmul.mubr.msk.bf16.vlgmr.msra.gmra.mrb[96].mxu0 %vm350_vm6, %v4013_v61 }
0x2f9a   :  { %4257 = vmatprep.mubr.bf16.mxu0 %v5672_v1  ;;  %v5523_v1 = vld [vmem:[%s6877_s15 + $0x28] sm:$0xff]   ;;  %4226 = vmatpush1.bf16.msra.mxu0 %v5526_v29 }
0x2f9b   :  { %5304 = vmatpush3.bf16.msra.mxu1 %v5523_v1 }
0x2f9c   :  { %5305 = vmatprep.subr.bf16.mxu1 %v5673_v49 }
0x2f9f   :  { %5306 = vmatpush3.bf16.msra.mxu1 %v5524_v9 }
0x2fa0   :  { %5307 = vmatprep.subr.bf16.mxu1 %v5673_v49 }
0x2fa3   :  { %5308 = vmatpush3.bf16.msra.mxu1 %v5525_v2 }
0x2fa4   :  { %5313 = vmatprep.subr.bf16.mxu1 %v5673_v49 }
0x302f   :  { %v3718_v39 = vpop.f32.mrb[84].mxu0 }
0x3030   :  { %v5263_v63 = vpop.f32.mrb[85].mxu0 }
0x3031   :  { %v3721_v0 = vpop.f32.mrb[86].mxu0 }
0x3032   :  { %v5264_v4 = vpop.f32.mrb[87].mxu0 }
0x3037   :  { %v3832_v5 = vpop.f32.mrb[88].mxu0 }
0x3038   :  { %4063 = vrot.lane.b32.xlu1 %v3832_v5, %s6908_s22  ;;  %v5275_v34 = vpop.f32.mrb[89].mxu0 }
0x3039   :  { %v3835_v7 = vpop.f32.mrb[90].mxu0 }
0x303a   :  { %v5276_v8 = vpop.f32.mrb[91].mxu0 }
0x3064   :  { %v3944_v10 = vpop.f32.mrb[92].mxu0 }
0x3065   :  { %4067 = vrot.lane.b32.xlu0 %v3944_v10, %s5692_s18  ;;  %v5287_v11 = vpop.f32.mrb[93].mxu0 }
0x3066   :  { %v3947_v33 = vpop.f32.mrb[94].mxu0 }
0x3067   :  { %v5288_v12 = vpop.f32.mrb[95].mxu0 }
0x306c   :  { %v4056_v13 = vpop.f32.mrb[96].mxu0 }
0x306d   :  { %4071 = vrot.lane.b32.xlu1 %v4056_v13, %s6906_s27  ;;  %v5299_v14 = vpop.f32.mrb[97].mxu0  ;;  %v4685_v13 = vld [vmem:[%s6875_s13 + $0x4] ss:$0 sm:$0xff] }
0x306e   :  { %v4059_v41 = vpop.f32.mrb[98].mxu0 }
0x306f   :  { %v5300_v15 = vpop.f32.mrb[99].mxu0 }
0x30aa   :  { %v4064_v16 = vpop.permute.xlu1 %4063 }
0x30ab   :  { %v4074_v17 = vsel %vm810_vm11, %v3718_v39, %v4064_v16 }
0x30d7   :  { %v4068_v18 = vpop.permute.xlu0 %4067 }
0x30d8   :  { %v4075_v20 = vsel %vm302_vm5, %v4074_v17, %v4068_v18 }
0x30df   :  { %v4072_v19 = vpop.permute.xlu1 %4071 }
0x30e0   :  { %v4076_v22 = vsel %vm3041_vm13, %v4075_v20, %v4072_v19 }
0x30e1   :  { %v4077_v62 = vpack.c.bf16 %v4076_v22, %v4076_v22 }
0x30e3   :  { %5310 = vmatmul.mubr.msk.bf16.vlgmr.msra.gmra.mrb[108].mxu1 %vm176_vm1, %v4077_v62 }
0x30e4   :  { %5329 = vmatprep.mubr.msk.bf16.mxu1 %vm5674_vm4, %v5673_v49  ;;  %5314 = vmatpush3.bf16.msra.mxu1 %v5538_v47 }
0x30e5   :  { %5315 = vmatprep.subr.bf16.mxu1 %v5673_v49 }
0x30e8   :  { %5316 = vmatpush3.bf16.msra.mxu1 %v5539_v36 }
0x30e9   :  { %5317 = vmatprep.subr.bf16.mxu1 %v5673_v49 }
0x30ec   :  { %5318 = vmatpush3.bf16.msra.mxu1 %v5540_v48 }
0x30ed   :  { %5319 = vmatprep.subr.bf16.mxu1 %v5673_v49 }
0x30f0   :  { %5320 = vmatpush3.bf16.msra.mxu1 %v5541_v50 }
0x30f1   :  { %5321 = vmatprep.subr.bf16.mxu1 %v5673_v49 }
0x30f4   :  { %5322 = vmatpush3.bf16.msra.mxu1 %v5542_v51 }
0x30f5   :  { %5323 = vmatprep.subr.bf16.mxu1 %v5673_v49 }
0x30f8   :  { %5324 = vmatpush3.bf16.msra.mxu1 %v5543_v52 }
0x30f9   :  { %5325 = vmatprep.subr.bf16.mxu1 %v5673_v49 }
0x30fc   :  { %5326 = vmatpush3.bf16.msra.mxu1 %v5544_v53 }
0x30fd   :  { %5327 = vmatprep.subr.bf16.mxu1 %v5673_v49 }
0x3100   :  { %5328 = vmatpush3.bf16.msra.mxu1 %v5545_v54 }
0x31b6   :  { %v4148_v23 = vpop.f32.mrb[108].mxu1 }
0x31b7   :  { %v6779_v26 = vadd.f32 %v4148_v23, %v6626_v60  ;;  %v5311_v24 = vpop.f32.mrb[109].mxu1  ;;  %v5531_v60 = vld [vmem:[%s6878_s16 + $0x54] ss:$8 sps:$4 sm:$0xff]  }
0x31b8   :  { %v4151_v25 = vpop.f32.mrb[110].mxu1  ;;  %4227 = vmatprep.subr.bf16.mxu0 %v5531_v60 }
0x31b9   :  { %v5312_v27 = vpop.f32.mrb[111].mxu1  ;;  %v4157_v6 = vmul.f32 %v6779_v26, %v6779_v26  ;;  %4228 = vmatpush1.bf16.msra.mxu0 %v5529_v31 }
0x31ba   :  { %4229 = vmatprep.subr.bf16.mxu0 %v5534_v42 }
0x31bb   :  { %v4158_v21 = vsel %vm176_vm1, %v4157_v6, 0.0 }
0x31bc   :  { %4159 = vadd.xlane.f32.xlu0 %v4158_v21 }
0x31bd   :  { %4230 = vmatpush1.bf16.msra.mxu0 %v5532_v32 }
0x31be   :  { %4231 = vmatprep.subr.bf16.mxu0 %v5537_v45 }
0x31c1   :  { %4232 = vmatpush1.bf16.msra.mxu0 %v5535_v40 }
0x3249   :  { %v4160_v55 = vpop.xlane.xlu0 %4159 }
0x324a   :  { %v4161_v3 = vmul.f32 0.015625, %v4160_v55 }
0x324c   :  { %v4162_v35 = vadd.f32 1e-06, %v4161_v3 }
0x324e   :  { %5640 = vrsqrt.f32 %v4162_v35 }
0x3258   :  { %v5641_v37 = vpop.eup %5640 }
0x3259   :  { %v4164_v43 = vmul.f32 %v5641_v37, %v6779_v26 }
0x325b   :  { %v4171_v44 = vmul.f32 %v4641_v38, %v4164_v43 }
0x325d   :  { %v4172_v46 = vpack.c.bf16 %v4171_v44, %v4171_v44 }
0x325f   :  { %4658 = vmatmul.mubr.msk.bf16.vlgmr.msra.gmra.mrb[100].mxu0 %vm176_vm1, %v4172_v46 }
0x3332   :  { %v4259_v57 = vpop.f32.mrb[100].mxu0 }
0x3333   :  { %v4659_v58 = vmul.f32 -1.442695, %v4259_v57  ;;  %v4261_v30 = vpop.f32.mrb[101].mxu0 }
0x3334   :  { %v4263_v59 = vpop.f32.mrb[102].mxu0 }
0x3335   :  { %5642 = vpow2.f32 %v4659_v58  ;;  %v4264_v61 = vpop.f32.mrb[103].mxu0 }
0x333f   :  { %v5643_v56 = vpop.eup %5642 }
0x3340   :  { %v4269_v39 = vadd.f32 1.0, %v5643_v56 }
0x3342   :  { %5644 = vrcp.f32 %v4269_v39 }
0x334c   :  { %v5645_v63 = vpop.eup %5644 }
0x334d   :  { %v4272_v0 = vmul.f32 %v5645_v63, %v4259_v57 }
0x334f   :  { %v4273_v4 = vmul.f32 %v4272_v0, %v4261_v30 }
0x3351   :  { %v4274_v5 = vpack.c.bf16 %v4273_v4, %v4273_v4 }
0x3353   :  { %5330 = vmatmul.mubr.bf16.vlgmr.msra.gmra.mrb[112].mxu1 %v4274_v5 }
0x3426   :  { %v4374_v49 = vpop.f32.mrb[112].mxu1 }
0x3427   :  { %v4380_v34 = vadd.f32 %v4374_v49, %v6779_v26  ;;  %v5331_v7 = vpop.f32.mrb[113].mxu1 }
0x3428   :  { %v4377_v8 = vpop.f32.mrb[114].mxu1 }
0x3429   :  { %v4383_v1 = vmul.f32 %v4380_v34, %v4380_v34  ;;  %v5332_v9 = vpop.f32.mrb[115].mxu1 }
0x342b   :  { %v4384_v2 = vsel %vm176_vm1, %v4383_v1, 0.0 }
0x342c   :  { %4385 = vadd.xlane.f32.xlu1 %v4384_v2 }
0x34b9   :  { %v4386_v10 = vpop.xlane.xlu1 %4385 }
0x34ba   :  { %v4387_v11 = vmul.f32 0.015625, %v4386_v10 }
0x34bc   :  { %v4388_v33 = vadd.f32 1e-06, %v4387_v11 }
0x34be   :  { %5646 = vrsqrt.f32 %v4388_v33 }
0x34c8   :  { %v5647_v12 = vpop.eup %5646 }
0x34c9   :  { %v4390_v14 = vmul.f32 %v5647_v12, %v4380_v34 }
0x34cb   :  { %v4397_v41 = vmul.f32 %v4685_v13, %v4390_v14 }
0x34cd   :  { %4398 = vst.msk [vmem:[#allocation4] sm:$0xff] %vm176_vm1, %v4397_v41 }
0x34ce   :  { %5659 = shalt.err (!%p5656_p4)
}
0x34cf   :  { %s5660_s0 = scalar_lea.hbm %s6881_s19, 128 }
0x34d0   :  { %p5661_p5 = scmp.ne.s32.totalorder %s6881_s19, %s5660_s0  ;;  %p5664_p6 = scmp.lt.u32.totalorder %s5660_s0, %s6881_s19 }
0x34d2   :  { %p5666_p7 = pnand %p5664_p6, %p5661_p5 }
0x34d4   :  { %5669 = shalt.err (!%p5666_p7)
}
0x34d5   :  { %4408 = dma.vmem_to_hbm [thread:$0]  %s4406_s2, 128, %s6881_s19, [#allocation5]  }
0x34d6   :  { %5670 = dma.done.wait [#allocation5], 128  }
0x34d7   :  { %5671 = vsyncadd [#allocation5], 4294967168 }
0x34d8   :  { %4412 = vsyncpa [#allocation5], 1 }

</bundles_post_ra>
